<compile_context>
chip_gen: v6e
topology: v6e:2x2x1
jax: 0.10.0
libtpu: 0.0.40
codegen_flags: <defaults>
</compile_context>

<pallas_src>
import functools

import jax
import jax.numpy as jnp
from jax import lax
from jax.experimental import pallas as pl
from jax.experimental.pallas import tpu as pltpu


# ----------------------------------------------------------------------------
# math helpers
# ----------------------------------------------------------------------------
def _silu(x):
    return x * (1.0 / (1.0 + jnp.exp(-x)))


# ----------------------------------------------------------------------------
# fused Bottleneck kernel
# ----------------------------------------------------------------------------
def _bottleneck_kernel(x_ref, w1_ref, b1_ref, w2_ref, b2_ref, o_ref,
                       xpad_ref, hpad_ref, *, add):
    """conv3x3+BN(folded)+SiLU -> conv3x3+BN(folded)+SiLU -> (+x), one image per step."""
    _, H, W, C1 = x_ref.shape
    Cm = w1_ref.shape[2]
    C2 = w2_ref.shape[2]

    x = x_ref[0].astype(jnp.float32)                       # (H, W, C1)

    # ---- conv1: zero-pad into VMEM scratch (halo handled in-kernel, no HBM pad array) ----
    xpad_ref[...] = jnp.zeros_like(xpad_ref)
    xpad_ref[1:H + 1, 1:W + 1, :] = x
    xp = xpad_ref[...]                                     # (H+2, W+2, C1)

    acc = jnp.zeros((H * W, Cm), jnp.float32)
    for t in range(9):
        kh, kw = t // 3, t % 3
        patch = xp[kh:kh + H, kw:kw + W, :].reshape(H * W, C1)
        acc = acc + jnp.dot(patch, w1_ref[t], preferred_element_type=jnp.float32)
    h = _silu(acc + b1_ref[...])                           # (H*W, Cm)

    # ---- conv2: intermediate stays in VMEM (never written back to HBM) ----
    hpad_ref[...] = jnp.zeros_like(hpad_ref)
    hpad_ref[1:H + 1, 1:W + 1, :] = h.reshape(H, W, Cm)
    hp = hpad_ref[...]                                     # (H+2, W+2, Cm)

    acc = jnp.zeros((H * W, C2), jnp.float32)
    for t in range(9):
        kh, kw = t // 3, t % 3
        patch = hp[kh:kh + H, kw:kw + W, :].reshape(H * W, Cm)
        acc = acc + jnp.dot(patch, w2_ref[t], preferred_element_type=jnp.float32)
    y = _silu(acc + b2_ref[...])                           # (H*W, C2)

    if add:                                                # shortcut and c1 == c2
        y = y + x.reshape(H * W, C1)

    o_ref[0] = y.reshape(H, W, C2).astype(o_ref.dtype)


def bottleneck_pallas(x_nhwc, params, *, add):
    B, H, W, C1 = x_nhwc.shape
    w1, b1 = params["w1"], params["b1"]                    # (9, C1, Cm), (1, Cm)
    w2, b2 = params["w2"], params["b2"]                    # (9, Cm, C2), (1, C2)
    Cm = w1.shape[2]
    C2 = w2.shape[2]

    kern = functools.partial(_bottleneck_kernel, add=add)
    return pl.pallas_call(
        kern,
        out_shape=jax.ShapeDtypeStruct((B, H, W, C2), jnp.float32),
        grid=(B,),
        in_specs=[
            pl.BlockSpec((1, H, W, C1), lambda b: (b, 0, 0, 0)),
            pl.BlockSpec((9, C1, Cm), lambda b: (0, 0, 0)),
            pl.BlockSpec((1, Cm), lambda b: (0, 0)),
            pl.BlockSpec((9, Cm, C2), lambda b: (0, 0, 0)),
            pl.BlockSpec((1, C2), lambda b: (0, 0)),
        ],
        out_specs=pl.BlockSpec((1, H, W, C2), lambda b: (b, 0, 0, 0)),
        scratch_shapes=[
            pltpu.VMEM((H + 2, W + 2, C1), jnp.float32),   # zero-padded input
            pltpu.VMEM((H + 2, W + 2, Cm), jnp.float32),   # zero-padded intermediate
        ],
        compiler_params=pltpu.CompilerParams(dimension_semantics=("parallel",)),
    )(x_nhwc, w1, b1, w2, b2)


def bottleneck_forward(x_nchw, params, *, shortcut=True):
    """Public wrapper: NCHW in / NCHW out, exactly like the PyTorch module."""
    B, C1, H, W = x_nchw.shape
    C2 = params["w2"].shape[2]
    add = bool(shortcut and C1 == C2)
    x = jnp.transpose(x_nchw, (0, 2, 3, 1))                # NCHW -> NHWC
    y = bottleneck_pallas(x, params, add=add)
    return jnp.transpose(y, (0, 3, 1, 2))                  # back to NCHW


# ----------------------------------------------------------------------------
# parameter init (synthetic weights, BN folded: w' = w * scale, b = shift)
# ----------------------------------------------------------------------------
def _conv_bn_fold(key, cin, cout):
    ks = jax.random.split(key, 5)
    w = (0.3 * jax.random.normal(ks[0], (9, cin, cout))).astype(jnp.float32)  # tap-major (kh*3+kw)
    gamma = 1.0 + 0.1 * jax.random.normal(ks[1], (cout,))
    beta = 0.1 * jax.random.normal(ks[2], (cout,))
    mean = 0.1 * jax.random.normal(ks[3], (cout,))
    var = 1.0 + 0.1 * jnp.abs(jax.random.normal(ks[4], (cout,)))
    scale = gamma * lax.rsqrt(var + 1e-5)
    shift = beta - mean * scale
    wf = (w * scale.reshape(1, 1, cout)).astype(jnp.float32)   # static BN fold
    return wf, shift.reshape(1, cout).astype(jnp.float32)


def init_bottleneck_params(key, c1, c2, e=0.5):
    c_ = int(c2 * e)
    k1, k2 = jax.random.split(key)
    w1, b1 = _conv_bn_fold(k1, c1, c_)
    w2, b2 = _conv_bn_fold(k2, c_, c2)
    return {"w1": w1, "b1": b1, "w2": w2, "b2": b2}


# ----------------------------------------------------------------------------
# pure-JAX reference (independent math path for correctness cross-check)
# ----------------------------------------------------------------------------
def _ref_conv3x3_silu(x, w9, b):
    cin, cout = w9.shape[1], w9.shape[2]
    k = w9.reshape(3, 3, cin, cout)                        # HWIO (tap-major matches kh,kw)
    y = lax.conv_general_dilated(
        x, k, window_strides=(1, 1), padding=((1, 1), (1, 1)),
        dimension_numbers=("NHWC", "HWIO", "NHWC"))
    return _silu(y + b.reshape(1, 1, 1, cout))


def bottleneck_reference(x_nchw, params, *, shortcut=True):
    x = jnp.transpose(x_nchw, (0, 2, 3, 1))
    y = _ref_conv3x3_silu(x, params["w1"], params["b1"])
    y = _ref_conv3x3_silu(y, params["w2"], params["b2"])
    if shortcut and x.shape[-1] == y.shape[-1]:
        y = y + x
    return jnp.transpose(y, (0, 3, 1, 2))


# ----------------------------------------------------------------------------
if __name__ == "__main__":
    key = jax.random.PRNGKey(0)
    kp, kx = jax.random.split(key)

    B, H, W = 2, 16, 16
    c1 = c2 = 16                                           # c1 == c2 -> residual path active

    params = init_bottleneck_params(kp, c1, c2, e=0.5)
    x = jax.random.normal(kx, (B, c1, H, W), jnp.float32)  # NCHW like PyTorch

    out = jax.block_until_ready(bottleneck_forward(x, params, shortcut=True))
    assert out.shape == (B, c2, H, W)

    ref = jax.block_until_ready(bottleneck_reference(x, params, shortcut=True))
    max_err = float(jnp.max(jnp.abs(out - ref)))
    if not bool(jnp.allclose(out, ref, atol=1e-3, rtol=1e-3)):
        raise AssertionError(f"Pallas vs pure-JAX reference mismatch, max abs err={max_err}")

    print("KERNEL_OK")
</pallas_src>

<mosaic_0001>
module attributes {stable_mosaic.version = 11 : i64} {
  func.func @_bottleneck_kernel(%arg0: i32, %arg1: memref<1x16x16x16xf32, #tpu.memory_space<vmem>>, %arg2: memref<9x16x8xf32, #tpu.memory_space<vmem>>, %arg3: memref<1x8xf32, #tpu.memory_space<vmem>>, %arg4: memref<9x8x16xf32, #tpu.memory_space<vmem>>, %arg5: memref<1x16xf32, #tpu.memory_space<vmem>>, %arg6: memref<1x16x16x16xf32, #tpu.memory_space<vmem>>, %arg7: memref<18x18x16xf32, #tpu.memory_space<vmem>>, %arg8: memref<18x18x8xf32, #tpu.memory_space<vmem>>) attributes {dimension_semantics = [#tpu.dimension_semantics<parallel>], iteration_bounds = array<i64: 2>, scalar_prefetch = 0 : i64, scratch_operands = 2 : i64, tpu.core_type = #tpu.core_type<tc>, window_params = [{transform_indices = @transform_0, window_bounds = array<i64: 1, 16, 16, 16>}, {pipeline_mode = #tpu.pipeline_mode<synchronous>, transform_indices = @transform_1, window_bounds = array<i64: 9, 16, 8>}, {pipeline_mode = #tpu.pipeline_mode<synchronous>, transform_indices = @transform_2, window_bounds = array<i64: 1, 8>}, {pipeline_mode = #tpu.pipeline_mode<synchronous>, transform_indices = @transform_3, window_bounds = array<i64: 9, 8, 16>}, {pipeline_mode = #tpu.pipeline_mode<synchronous>, transform_indices = @transform_4, window_bounds = array<i64: 1, 16>}, {transform_indices = @transform_5, window_bounds = array<i64: 1, 16, 16, 16>}]} {
    %c0 = arith.constant 0 : index
    %c0_0 = arith.constant 0 : index
    %c0_1 = arith.constant 0 : index
    %c0_2 = arith.constant 0 : index
    %0 = vector.load %arg1[%c0, %c0_0, %c0_1, %c0_2] : memref<1x16x16x16xf32, #tpu.memory_space<vmem>>, vector<1x16x16x16xf32>
    %1 = vector.shape_cast %0 : vector<1x16x16x16xf32> to vector<16x16x16xf32>
    %cst = arith.constant 0.000000e+00 : f32
    %2 = vector.broadcast %cst : f32 to vector<18x18x16xf32>
    %c0_3 = arith.constant 0 : index
    %c0_4 = arith.constant 0 : index
    %c0_5 = arith.constant 0 : index
    %3 = vector.load %arg7[%c0_3, %c0_4, %c0_5] : memref<18x18x16xf32, #tpu.memory_space<vmem>>, vector<18x18x16xf32>
    tpu.vector_store %arg7[%c0_3, %c0_4, %c0_5], %2 {strides = array<i32>} : memref<18x18x16xf32, #tpu.memory_space<vmem>>, vector<18x18x16xf32>,
    %c1 = arith.constant 1 : index
    %c1_6 = arith.constant 1 : index
    %c0_7 = arith.constant 0 : index
    %4 = vector.load %arg7[%c1, %c1_6, %c0_7] : memref<18x18x16xf32, #tpu.memory_space<vmem>>, vector<16x16x16xf32>
    tpu.vector_store %arg7[%c1, %c1_6, %c0_7], %1 {strides = array<i32>} : memref<18x18x16xf32, #tpu.memory_space<vmem>>, vector<16x16x16xf32>,
    %c0_8 = arith.constant 0 : index
    %c0_9 = arith.constant 0 : index
    %c0_10 = arith.constant 0 : index
    %5 = vector.load %arg7[%c0_8, %c0_9, %c0_10] : memref<18x18x16xf32, #tpu.memory_space<vmem>>, vector<18x18x16xf32>
    %cst_11 = arith.constant 0.000000e+00 : f32
    %6 = vector.broadcast %cst_11 : f32 to vector<256x8xf32>
    %7 = vector.extract_strided_slice %5 {offsets = [0, 0, 0], sizes = [16, 16, 16], strides = [1, 1, 1]} : vector<18x18x16xf32> to vector<16x16x16xf32>
    %8 = vector.shape_cast %7 : vector<16x16x16xf32> to vector<256x16xf32>
    %c0_12 = arith.constant 0 : index
    %c0_13 = arith.constant 0 : index
    %c0_14 = arith.constant 0 : index
    %9 = vector.load %arg2[%c0_12, %c0_13, %c0_14] : memref<9x16x8xf32, #tpu.memory_space<vmem>>, vector<1x16x8xf32>
    %10 = vector.shape_cast %9 : vector<1x16x8xf32> to vector<16x8xf32>
    %cst_15 = arith.constant dense<0.000000e+00> : vector<256x8xf32>
    %11 = tpu.matmul %8, %10, %cst_15 {dimension_numbers = #tpu.dot_dimension_numbers<[1], [0], [0], [1], [0, 0, 1, 1], [], []>} : vector<256x16xf32>, vector<16x8xf32>, vector<256x8xf32> -> vector<256x8xf32>
    %12 = arith.addf %6, %11 : vector<256x8xf32>
    %13 = vector.extract_strided_slice %5 {offsets = [0, 1, 0], sizes = [16, 16, 16], strides = [1, 1, 1]} : vector<18x18x16xf32> to vector<16x16x16xf32>
    %14 = vector.shape_cast %13 : vector<16x16x16xf32> to vector<256x16xf32>
    %c1_16 = arith.constant 1 : index
    %c0_17 = arith.constant 0 : index
    %c0_18 = arith.constant 0 : index
    %15 = vector.load %arg2[%c1_16, %c0_17, %c0_18] : memref<9x16x8xf32, #tpu.memory_space<vmem>>, vector<1x16x8xf32>
    %16 = vector.shape_cast %15 : vector<1x16x8xf32> to vector<16x8xf32>
    %cst_19 = arith.constant dense<0.000000e+00> : vector<256x8xf32>
    %17 = tpu.matmul %14, %16, %cst_19 {dimension_numbers = #tpu.dot_dimension_numbers<[1], [0], [0], [1], [0, 0, 1, 1], [], []>} : vector<256x16xf32>, vector<16x8xf32>, vector<256x8xf32> -> vector<256x8xf32>
    %18 = arith.addf %12, %17 : vector<256x8xf32>
    %19 = vector.extract_strided_slice %5 {offsets = [0, 2, 0], sizes = [16, 16, 16], strides = [1, 1, 1]} : vector<18x18x16xf32> to vector<16x16x16xf32>
    %20 = vector.shape_cast %19 : vector<16x16x16xf32> to vector<256x16xf32>
    %c2 = arith.constant 2 : index
    %c0_20 = arith.constant 0 : index
    %c0_21 = arith.constant 0 : index
    %21 = vector.load %arg2[%c2, %c0_20, %c0_21] : memref<9x16x8xf32, #tpu.memory_space<vmem>>, vector<1x16x8xf32>
    %22 = vector.shape_cast %21 : vector<1x16x8xf32> to vector<16x8xf32>
    %cst_22 = arith.constant dense<0.000000e+00> : vector<256x8xf32>
    %23 = tpu.matmul %20, %22, %cst_22 {dimension_numbers = #tpu.dot_dimension_numbers<[1], [0], [0], [1], [0, 0, 1, 1], [], []>} : vector<256x16xf32>, vector<16x8xf32>, vector<256x8xf32> -> vector<256x8xf32>
    %24 = arith.addf %18, %23 : vector<256x8xf32>
    %25 = vector.extract_strided_slice %5 {offsets = [1, 0, 0], sizes = [16, 16, 16], strides = [1, 1, 1]} : vector<18x18x16xf32> to vector<16x16x16xf32>
    %26 = vector.shape_cast %25 : vector<16x16x16xf32> to vector<256x16xf32>
    %c3 = arith.constant 3 : index
    %c0_23 = arith.constant 0 : index
    %c0_24 = arith.constant 0 : index
    %27 = vector.load %arg2[%c3, %c0_23, %c0_24] : memref<9x16x8xf32, #tpu.memory_space<vmem>>, vector<1x16x8xf32>
    %28 = vector.shape_cast %27 : vector<1x16x8xf32> to vector<16x8xf32>
    %cst_25 = arith.constant dense<0.000000e+00> : vector<256x8xf32>
    %29 = tpu.matmul %26, %28, %cst_25 {dimension_numbers = #tpu.dot_dimension_numbers<[1], [0], [0], [1], [0, 0, 1, 1], [], []>} : vector<256x16xf32>, vector<16x8xf32>, vector<256x8xf32> -> vector<256x8xf32>
    %30 = arith.addf %24, %29 : vector<256x8xf32>
    %31 = vector.extract_strided_slice %5 {offsets = [1, 1, 0], sizes = [16, 16, 16], strides = [1, 1, 1]} : vector<18x18x16xf32> to vector<16x16x16xf32>
    %32 = vector.shape_cast %31 : vector<16x16x16xf32> to vector<256x16xf32>
    %c4 = arith.constant 4 : index
    %c0_26 = arith.constant 0 : index
    %c0_27 = arith.constant 0 : index
    %33 = vector.load %arg2[%c4, %c0_26, %c0_27] : memref<9x16x8xf32, #tpu.memory_space<vmem>>, vector<1x16x8xf32>
    %34 = vector.shape_cast %33 : vector<1x16x8xf32> to vector<16x8xf32>
    %cst_28 = arith.constant dense<0.000000e+00> : vector<256x8xf32>
    %35 = tpu.matmul %32, %34, %cst_28 {dimension_numbers = #tpu.dot_dimension_numbers<[1], [0], [0], [1], [0, 0, 1, 1], [], []>} : vector<256x16xf32>, vector<16x8xf32>, vector<256x8xf32> -> vector<256x8xf32>
    %36 = arith.addf %30, %35 : vector<256x8xf32>
    %37 = vector.extract_strided_slice %5 {offsets = [1, 2, 0], sizes = [16, 16, 16], strides = [1, 1, 1]} : vector<18x18x16xf32> to vector<16x16x16xf32>
    %38 = vector.shape_cast %37 : vector<16x16x16xf32> to vector<256x16xf32>
    %c5 = arith.constant 5 : index
    %c0_29 = arith.constant 0 : index
    %c0_30 = arith.constant 0 : index
    %39 = vector.load %arg2[%c5, %c0_29, %c0_30] : memref<9x16x8xf32, #tpu.memory_space<vmem>>, vector<1x16x8xf32>
    %40 = vector.shape_cast %39 : vector<1x16x8xf32> to vector<16x8xf32>
    %cst_31 = arith.constant dense<0.000000e+00> : vector<256x8xf32>
    %41 = tpu.matmul %38, %40, %cst_31 {dimension_numbers = #tpu.dot_dimension_numbers<[1], [0], [0], [1], [0, 0, 1, 1], [], []>} : vector<256x16xf32>, vector<16x8xf32>, vector<256x8xf32> -> vector<256x8xf32>
    %42 = arith.addf %36, %41 : vector<256x8xf32>
    %43 = vector.extract_strided_slice %5 {offsets = [2, 0, 0], sizes = [16, 16, 16], strides = [1, 1, 1]} : vector<18x18x16xf32> to vector<16x16x16xf32>
    %44 = vector.shape_cast %43 : vector<16x16x16xf32> to vector<256x16xf32>
    %c6 = arith.constant 6 : index
    %c0_32 = arith.constant 0 : index
    %c0_33 = arith.constant 0 : index
    %45 = vector.load %arg2[%c6, %c0_32, %c0_33] : memref<9x16x8xf32, #tpu.memory_space<vmem>>, vector<1x16x8xf32>
    %46 = vector.shape_cast %45 : vector<1x16x8xf32> to vector<16x8xf32>
    %cst_34 = arith.constant dense<0.000000e+00> : vector<256x8xf32>
    %47 = tpu.matmul %44, %46, %cst_34 {dimension_numbers = #tpu.dot_dimension_numbers<[1], [0], [0], [1], [0, 0, 1, 1], [], []>} : vector<256x16xf32>, vector<16x8xf32>, vector<256x8xf32> -> vector<256x8xf32>
    %48 = arith.addf %42, %47 : vector<256x8xf32>
    %49 = vector.extract_strided_slice %5 {offsets = [2, 1, 0], sizes = [16, 16, 16], strides = [1, 1, 1]} : vector<18x18x16xf32> to vector<16x16x16xf32>
    %50 = vector.shape_cast %49 : vector<16x16x16xf32> to vector<256x16xf32>
    %c7 = arith.constant 7 : index
    %c0_35 = arith.constant 0 : index
    %c0_36 = arith.constant 0 : index
    %51 = vector.load %arg2[%c7, %c0_35, %c0_36] : memref<9x16x8xf32, #tpu.memory_space<vmem>>, vector<1x16x8xf32>
    %52 = vector.shape_cast %51 : vector<1x16x8xf32> to vector<16x8xf32>
    %cst_37 = arith.constant dense<0.000000e+00> : vector<256x8xf32>
    %53 = tpu.matmul %50, %52, %cst_37 {dimension_numbers = #tpu.dot_dimension_numbers<[1], [0], [0], [1], [0, 0, 1, 1], [], []>} : vector<256x16xf32>, vector<16x8xf32>, vector<256x8xf32> -> vector<256x8xf32>
    %54 = arith.addf %48, %53 : vector<256x8xf32>
    %55 = vector.extract_strided_slice %5 {offsets = [2, 2, 0], sizes = [16, 16, 16], strides = [1, 1, 1]} : vector<18x18x16xf32> to vector<16x16x16xf32>
    %56 = vector.shape_cast %55 : vector<16x16x16xf32> to vector<256x16xf32>
    %c8 = arith.constant 8 : index
    %c0_38 = arith.constant 0 : index
    %c0_39 = arith.constant 0 : index
    %57 = vector.load %arg2[%c8, %c0_38, %c0_39] : memref<9x16x8xf32, #tpu.memory_space<vmem>>, vector<1x16x8xf32>
    %58 = vector.shape_cast %57 : vector<1x16x8xf32> to vector<16x8xf32>
    %cst_40 = arith.constant dense<0.000000e+00> : vector<256x8xf32>
    %59 = tpu.matmul %56, %58, %cst_40 {dimension_numbers = #tpu.dot_dimension_numbers<[1], [0], [0], [1], [0, 0, 1, 1], [], []>} : vector<256x16xf32>, vector<16x8xf32>, vector<256x8xf32> -> vector<256x8xf32>
    %60 = arith.addf %54, %59 : vector<256x8xf32>
    %c0_41 = arith.constant 0 : index
    %c0_42 = arith.constant 0 : index
    %61 = vector.load %arg3[%c0_41, %c0_42] : memref<1x8xf32, #tpu.memory_space<vmem>>, vector<1x8xf32>
    %62 = vector.broadcast %61 : vector<1x8xf32> to vector<256x8xf32>
    %63 = arith.addf %60, %62 : vector<256x8xf32>
    %cst_43 = arith.constant 0.000000e+00 : f32
    %64 = vector.broadcast %cst_43 : f32 to vector<256x8xf32>
    %65 = arith.subf %64, %63 : vector<256x8xf32>
    %66 = math.exp %65 : vector<256x8xf32>
    %cst_44 = arith.constant 1.000000e+00 : f32
    %67 = vector.broadcast %cst_44 : f32 to vector<256x8xf32>
    %68 = arith.addf %67, %66 : vector<256x8xf32>
    %cst_45 = arith.constant 1.000000e+00 : f32
    %69 = vector.broadcast %cst_45 : f32 to vector<256x8xf32>
    %70 = arith.divf %69, %68 : vector<256x8xf32>
    %71 = arith.mulf %63, %70 : vector<256x8xf32>
    %cst_46 = arith.constant 0.000000e+00 : f32
    %72 = vector.broadcast %cst_46 : f32 to vector<18x18x8xf32>
    %c0_47 = arith.constant 0 : index
    %c0_48 = arith.constant 0 : index
    %c0_49 = arith.constant 0 : index
    %73 = vector.load %arg8[%c0_47, %c0_48, %c0_49] : memref<18x18x8xf32, #tpu.memory_space<vmem>>, vector<18x18x8xf32>
    tpu.vector_store %arg8[%c0_47, %c0_48, %c0_49], %72 {strides = array<i32>} : memref<18x18x8xf32, #tpu.memory_space<vmem>>, vector<18x18x8xf32>,
    %74 = vector.shape_cast %71 : vector<256x8xf32> to vector<16x16x8xf32>
    %c1_50 = arith.constant 1 : index
    %c1_51 = arith.constant 1 : index
    %c0_52 = arith.constant 0 : index
    %75 = vector.load %arg8[%c1_50, %c1_51, %c0_52] : memref<18x18x8xf32, #tpu.memory_space<vmem>>, vector<16x16x8xf32>
    tpu.vector_store %arg8[%c1_50, %c1_51, %c0_52], %74 {strides = array<i32>} : memref<18x18x8xf32, #tpu.memory_space<vmem>>, vector<16x16x8xf32>,
    %c0_53 = arith.constant 0 : index
    %c0_54 = arith.constant 0 : index
    %c0_55 = arith.constant 0 : index
    %76 = vector.load %arg8[%c0_53, %c0_54, %c0_55] : memref<18x18x8xf32, #tpu.memory_space<vmem>>, vector<18x18x8xf32>
    %cst_56 = arith.constant 0.000000e+00 : f32
    %77 = vector.broadcast %cst_56 : f32 to vector<256x16xf32>
    %78 = vector.extract_strided_slice %76 {offsets = [0, 0, 0], sizes = [16, 16, 8], strides = [1, 1, 1]} : vector<18x18x8xf32> to vector<16x16x8xf32>
    %79 = vector.shape_cast %78 : vector<16x16x8xf32> to vector<256x8xf32>
    %c0_57 = arith.constant 0 : index
    %c0_58 = arith.constant 0 : index
    %c0_59 = arith.constant 0 : index
    %80 = vector.load %arg4[%c0_57, %c0_58, %c0_59] : memref<9x8x16xf32, #tpu.memory_space<vmem>>, vector<1x8x16xf32>
    %81 = vector.shape_cast %80 : vector<1x8x16xf32> to vector<8x16xf32>
    %cst_60 = arith.constant dense<0.000000e+00> : vector<256x16xf32>
    %82 = tpu.matmul %79, %81, %cst_60 {dimension_numbers = #tpu.dot_dimension_numbers<[1], [0], [0], [1], [0, 0, 1, 1], [], []>} : vector<256x8xf32>, vector<8x16xf32>, vector<256x16xf32> -> vector<256x16xf32>
    %83 = arith.addf %77, %82 : vector<256x16xf32>
    %84 = vector.extract_strided_slice %76 {offsets = [0, 1, 0], sizes = [16, 16, 8], strides = [1, 1, 1]} : vector<18x18x8xf32> to vector<16x16x8xf32>
    %85 = vector.shape_cast %84 : vector<16x16x8xf32> to vector<256x8xf32>
    %c1_61 = arith.constant 1 : index
    %c0_62 = arith.constant 0 : index
    %c0_63 = arith.constant 0 : index
    %86 = vector.load %arg4[%c1_61, %c0_62, %c0_63] : memref<9x8x16xf32, #tpu.memory_space<vmem>>, vector<1x8x16xf32>
    %87 = vector.shape_cast %86 : vector<1x8x16xf32> to vector<8x16xf32>
    %cst_64 = arith.constant dense<0.000000e+00> : vector<256x16xf32>
    %88 = tpu.matmul %85, %87, %cst_64 {dimension_numbers = #tpu.dot_dimension_numbers<[1], [0], [0], [1], [0, 0, 1, 1], [], []>} : vector<256x8xf32>, vector<8x16xf32>, vector<256x16xf32> -> vector<256x16xf32>
    %89 = arith.addf %83, %88 : vector<256x16xf32>
    %90 = vector.extract_strided_slice %76 {offsets = [0, 2, 0], sizes = [16, 16, 8], strides = [1, 1, 1]} : vector<18x18x8xf32> to vector<16x16x8xf32>
    %91 = vector.shape_cast %90 : vector<16x16x8xf32> to vector<256x8xf32>
    %c2_65 = arith.constant 2 : index
    %c0_66 = arith.constant 0 : index
    %c0_67 = arith.constant 0 : index
    %92 = vector.load %arg4[%c2_65, %c0_66, %c0_67] : memref<9x8x16xf32, #tpu.memory_space<vmem>>, vector<1x8x16xf32>
    %93 = vector.shape_cast %92 : vector<1x8x16xf32> to vector<8x16xf32>
    %cst_68 = arith.constant dense<0.000000e+00> : vector<256x16xf32>
    %94 = tpu.matmul %91, %93, %cst_68 {dimension_numbers = #tpu.dot_dimension_numbers<[1], [0], [0], [1], [0, 0, 1, 1], [], []>} : vector<256x8xf32>, vector<8x16xf32>, vector<256x16xf32> -> vector<256x16xf32>
    %95 = arith.addf %89, %94 : vector<256x16xf32>
    %96 = vector.extract_strided_slice %76 {offsets = [1, 0, 0], sizes = [16, 16, 8], strides = [1, 1, 1]} : vector<18x18x8xf32> to vector<16x16x8xf32>
    %97 = vector.shape_cast %96 : vector<16x16x8xf32> to vector<256x8xf32>
    %c3_69 = arith.constant 3 : index
    %c0_70 = arith.constant 0 : index
    %c0_71 = arith.constant 0 : index
    %98 = vector.load %arg4[%c3_69, %c0_70, %c0_71] : memref<9x8x16xf32, #tpu.memory_space<vmem>>, vector<1x8x16xf32>
    %99 = vector.shape_cast %98 : vector<1x8x16xf32> to vector<8x16xf32>
    %cst_72 = arith.constant dense<0.000000e+00> : vector<256x16xf32>
    %100 = tpu.matmul %97, %99, %cst_72 {dimension_numbers = #tpu.dot_dimension_numbers<[1], [0], [0], [1], [0, 0, 1, 1], [], []>} : vector<256x8xf32>, vector<8x16xf32>, vector<256x16xf32> -> vector<256x16xf32>
    %101 = arith.addf %95, %100 : vector<256x16xf32>
    %102 = vector.extract_strided_slice %76 {offsets = [1, 1, 0], sizes = [16, 16, 8], strides = [1, 1, 1]} : vector<18x18x8xf32> to vector<16x16x8xf32>
    %103 = vector.shape_cast %102 : vector<16x16x8xf32> to vector<256x8xf32>
    %c4_73 = arith.constant 4 : index
    %c0_74 = arith.constant 0 : index
    %c0_75 = arith.constant 0 : index
    %104 = vector.load %arg4[%c4_73, %c0_74, %c0_75] : memref<9x8x16xf32, #tpu.memory_space<vmem>>, vector<1x8x16xf32>
    %105 = vector.shape_cast %104 : vector<1x8x16xf32> to vector<8x16xf32>
    %cst_76 = arith.constant dense<0.000000e+00> : vector<256x16xf32>
    %106 = tpu.matmul %103, %105, %cst_76 {dimension_numbers = #tpu.dot_dimension_numbers<[1], [0], [0], [1], [0, 0, 1, 1], [], []>} : vector<256x8xf32>, vector<8x16xf32>, vector<256x16xf32> -> vector<256x16xf32>
    %107 = arith.addf %101, %106 : vector<256x16xf32>
    %108 = vector.extract_strided_slice %76 {offsets = [1, 2, 0], sizes = [16, 16, 8], strides = [1, 1, 1]} : vector<18x18x8xf32> to vector<16x16x8xf32>
    %109 = vector.shape_cast %108 : vector<16x16x8xf32> to vector<256x8xf32>
    %c5_77 = arith.constant 5 : index
    %c0_78 = arith.constant 0 : index
    %c0_79 = arith.constant 0 : index
    %110 = vector.load %arg4[%c5_77, %c0_78, %c0_79] : memref<9x8x16xf32, #tpu.memory_space<vmem>>, vector<1x8x16xf32>
    %111 = vector.shape_cast %110 : vector<1x8x16xf32> to vector<8x16xf32>
    %cst_80 = arith.constant dense<0.000000e+00> : vector<256x16xf32>
    %112 = tpu.matmul %109, %111, %cst_80 {dimension_numbers = #tpu.dot_dimension_numbers<[1], [0], [0], [1], [0, 0, 1, 1], [], []>} : vector<256x8xf32>, vector<8x16xf32>, vector<256x16xf32> -> vector<256x16xf32>
    %113 = arith.addf %107, %112 : vector<256x16xf32>
    %114 = vector.extract_strided_slice %76 {offsets = [2, 0, 0], sizes = [16, 16, 8], strides = [1, 1, 1]} : vector<18x18x8xf32> to vector<16x16x8xf32>
    %115 = vector.shape_cast %114 : vector<16x16x8xf32> to vector<256x8xf32>
    %c6_81 = arith.constant 6 : index
    %c0_82 = arith.constant 0 : index
    %c0_83 = arith.constant 0 : index
    %116 = vector.load %arg4[%c6_81, %c0_82, %c0_83] : memref<9x8x16xf32, #tpu.memory_space<vmem>>, vector<1x8x16xf32>
    %117 = vector.shape_cast %116 : vector<1x8x16xf32> to vector<8x16xf32>
    %cst_84 = arith.constant dense<0.000000e+00> : vector<256x16xf32>
    %118 = tpu.matmul %115, %117, %cst_84 {dimension_numbers = #tpu.dot_dimension_numbers<[1], [0], [0], [1], [0, 0, 1, 1], [], []>} : vector<256x8xf32>, vector<8x16xf32>, vector<256x16xf32> -> vector<256x16xf32>
    %119 = arith.addf %113, %118 : vector<256x16xf32>
    %120 = vector.extract_strided_slice %76 {offsets = [2, 1, 0], sizes = [16, 16, 8], strides = [1, 1, 1]} : vector<18x18x8xf32> to vector<16x16x8xf32>
    %121 = vector.shape_cast %120 : vector<16x16x8xf32> to vector<256x8xf32>
    %c7_85 = arith.constant 7 : index
    %c0_86 = arith.constant 0 : index
    %c0_87 = arith.constant 0 : index
    %122 = vector.load %arg4[%c7_85, %c0_86, %c0_87] : memref<9x8x16xf32, #tpu.memory_space<vmem>>, vector<1x8x16xf32>
    %123 = vector.shape_cast %122 : vector<1x8x16xf32> to vector<8x16xf32>
    %cst_88 = arith.constant dense<0.000000e+00> : vector<256x16xf32>
    %124 = tpu.matmul %121, %123, %cst_88 {dimension_numbers = #tpu.dot_dimension_numbers<[1], [0], [0], [1], [0, 0, 1, 1], [], []>} : vector<256x8xf32>, vector<8x16xf32>, vector<256x16xf32> -> vector<256x16xf32>
    %125 = arith.addf %119, %124 : vector<256x16xf32>
    %126 = vector.extract_strided_slice %76 {offsets = [2, 2, 0], sizes = [16, 16, 8], strides = [1, 1, 1]} : vector<18x18x8xf32> to vector<16x16x8xf32>
    %127 = vector.shape_cast %126 : vector<16x16x8xf32> to vector<256x8xf32>
    %c8_89 = arith.constant 8 : index
    %c0_90 = arith.constant 0 : index
    %c0_91 = arith.constant 0 : index
    %128 = vector.load %arg4[%c8_89, %c0_90, %c0_91] : memref<9x8x16xf32, #tpu.memory_space<vmem>>, vector<1x8x16xf32>
    %129 = vector.shape_cast %128 : vector<1x8x16xf32> to vector<8x16xf32>
    %cst_92 = arith.constant dense<0.000000e+00> : vector<256x16xf32>
    %130 = tpu.matmul %127, %129, %cst_92 {dimension_numbers = #tpu.dot_dimension_numbers<[1], [0], [0], [1], [0, 0, 1, 1], [], []>} : vector<256x8xf32>, vector<8x16xf32>, vector<256x16xf32> -> vector<256x16xf32>
    %131 = arith.addf %125, %130 : vector<256x16xf32>
    %c0_93 = arith.constant 0 : index
    %c0_94 = arith.constant 0 : index
    %132 = vector.load %arg5[%c0_93, %c0_94] : memref<1x16xf32, #tpu.memory_space<vmem>>, vector<1x16xf32>
    %133 = vector.broadcast %132 : vector<1x16xf32> to vector<256x16xf32>
    %134 = arith.addf %131, %133 : vector<256x16xf32>
    %cst_95 = arith.constant 0.000000e+00 : f32
    %135 = vector.broadcast %cst_95 : f32 to vector<256x16xf32>
    %136 = arith.subf %135, %134 : vector<256x16xf32>
    %137 = math.exp %136 : vector<256x16xf32>
    %cst_96 = arith.constant 1.000000e+00 : f32
    %138 = vector.broadcast %cst_96 : f32 to vector<256x16xf32>
    %139 = arith.addf %138, %137 : vector<256x16xf32>
    %cst_97 = arith.constant 1.000000e+00 : f32
    %140 = vector.broadcast %cst_97 : f32 to vector<256x16xf32>
    %141 = arith.divf %140, %139 : vector<256x16xf32>
    %142 = arith.mulf %134, %141 : vector<256x16xf32>
    %143 = vector.shape_cast %1 : vector<16x16x16xf32> to vector<256x16xf32>
    %144 = arith.addf %142, %143 : vector<256x16xf32>
    %145 = vector.shape_cast %144 : vector<256x16xf32> to vector<16x16x16xf32>
    %c0_98 = arith.constant 0 : index
    %c0_99 = arith.constant 0 : index
    %c0_100 = arith.constant 0 : index
    %c0_101 = arith.constant 0 : index
    %146 = vector.load %arg6[%c0_98, %c0_99, %c0_100, %c0_101] : memref<1x16x16x16xf32, #tpu.memory_space<vmem>>, vector<1x16x16x16xf32>
    %147 = vector.shape_cast %146 : vector<1x16x16x16xf32> to vector<16x16x16xf32>
    %148 = vector.shape_cast %145 : vector<16x16x16xf32> to vector<1x16x16x16xf32>
    tpu.vector_store %arg6[%c0_98, %c0_99, %c0_100, %c0_101], %148 {strides = array<i32>} : memref<1x16x16x16xf32, #tpu.memory_space<vmem>>, vector<1x16x16x16xf32>,
    return
  }
  func.func @transform_0(%arg0: i32) -> (i32, i32, i32, i32) {
    %c0_i32 = arith.constant 0 : i32
    %c0_i32_0 = arith.constant 0 : i32
    %c0_i32_1 = arith.constant 0 : i32
    %c0_i32_2 = arith.constant 0 : i32
    return %arg0, %c0_i32, %c0_i32_0, %c0_i32_1 : i32, i32, i32, i32
  }
  func.func @transform_1(%arg0: i32) -> (i32, i32, i32) {
    %c0_i32 = arith.constant 0 : i32
    %c0_i32_0 = arith.constant 0 : i32
    %c0_i32_1 = arith.constant 0 : i32
    %c0_i32_2 = arith.constant 0 : i32
    return %c0_i32, %c0_i32_0, %c0_i32_1 : i32, i32, i32
  }
  func.func @transform_2(%arg0: i32) -> (i32, i32) {
    %c0_i32 = arith.constant 0 : i32
    %c0_i32_0 = arith.constant 0 : i32
    %c0_i32_1 = arith.constant 0 : i32
    return %c0_i32, %c0_i32_0 : i32, i32
  }
  func.func @transform_3(%arg0: i32) -> (i32, i32, i32) {
    %c0_i32 = arith.constant 0 : i32
    %c0_i32_0 = arith.constant 0 : i32
    %c0_i32_1 = arith.constant 0 : i32
    %c0_i32_2 = arith.constant 0 : i32
    return %c0_i32, %c0_i32_0, %c0_i32_1 : i32, i32, i32
  }
  func.func @transform_4(%arg0: i32) -> (i32, i32) {
    %c0_i32 = arith.constant 0 : i32
    %c0_i32_0 = arith.constant 0 : i32
    %c0_i32_1 = arith.constant 0 : i32
    return %c0_i32, %c0_i32_0 : i32, i32
  }
  func.func @transform_5(%arg0: i32) -> (i32, i32, i32, i32) {
    %c0_i32 = arith.constant 0 : i32
    %c0_i32_0 = arith.constant 0 : i32
    %c0_i32_1 = arith.constant 0 : i32
    %c0_i32_2 = arith.constant 0 : i32
    return %arg0, %c0_i32, %c0_i32_0, %c0_i32_1 : i32, i32, i32, i32
  }
}

</mosaic_0001>

<bundles_post_ra>
// kernel: tpu_custom_call.1
= control target key start
LH: loop header
LB: loop body
LE: loop exit
PB: predicated region body
PF: predicated region fallthrough
CT: control target
= control target key end

     0   :  { %10 = vsyncpa [#allocation5], 0  ;;  %s13667_s0 = inlined_call_operand.hbm [shape: f32[2,16,16,16], index: 0, kind: input, shape index: {}]   ;;  %s13668_s1 = inlined_call_operand.vmem [shape: f32[9,16,8], index: 1, kind: input, shape index: {}]   ;;  %s13669_s2 = inlined_call_operand.vmem [shape: f32[1,8], index: 2, kind: input, shape index: {}]   ;;  %s13670_s3 = inlined_call_operand.vmem [shape: f32[9,8,16], index: 3, kind: input, shape index: {}]   ;;  %s13671_s4 = inlined_call_operand.vmem [shape: f32[1,16], index: 4, kind: input, shape index: {}]   ;;  %s13672_s5 = inlined_call_operand.hbm [shape: f32[2,16,16,16], index: 5, kind: output, shape index: {}]  }
   0x1   :  { %12 = vsyncpa [#allocation5 + $0x1], 0 }
   0x2   :  { %13 = vsyncpa [#allocation6], 0 }
   0x3   :  { %15 = vsyncpa [#allocation6 + $0x1], 0  ;;  %s9270_s18 = smov 0   ;;  %s9272_s19 = smov 0  }
   0x4   :  { %s9274_s20 = smov 0   ;;  %s9276_s21 = smov 0  }
   0x5 LB: > { %s9291_s22 = sadd.s32 4294967295, %s9231_s21   ;;  %s6681_s23 = sadd.s32 4294967294, %s9231_s21   ;;  %s9231_s21 = sphi %s9276_s21, %s14428_s21   ;;  %s9227_s20 = sphi %s9274_s20, %s14427_s20   ;;  %s9223_s19 = sphi %s9272_s19, %s14426_s19   ;;  %s9219_s18 = sphi %s9270_s18, %s14425_s18  }
   0x6   : > { %s9295_s24 = sadd.s32 1, %s9231_s21   ;;  %s28_s25 = sadd.s32 1, %s9227_s20 }
   0x7   : > { %s25_s26 = ssub.s32 %s9231_s21, %s9295_s24  ;;  %p35_p0 = scmp.ne.s32.totalorder %s9227_s20, %s9223_s19 }
   0x8   : > { %p26_p1 = scmp.eq.s32.totalorder %s25_s26, 0  ;;  %p36_p2 = scmp.eq.s32.totalorder %s9231_s21, 0 }
   0x9   : > { %p41_p3 = scmp.ne.s32.totalorder %s9223_s19, %s9219_s18  ;;  %p42_p4 = scmp.eq.s32.totalorder %s9291_s22, 0 }
   0xa   : > { %s9307_s27 = scalar_select %p26_p1, %s9227_s20, %s28_s25  }
   0xb   : > { %p9309_p5 = por %p36_p2, %p35_p0  ;;  %p9313_p6 = por %p42_p4, %p41_p3 }
   0xc   : > { %p149_p7 = scmp.eq.s32.totalorder %s9291_s22, 1  ;;  %p155_p8 = scmp.eq.s32.totalorder %s6681_s23, 1 }
   0xd   : > { %s13856_s29 = scalar_select %p9313_p6, 1, 0 }
   0xe   : > { %p8832_p10 = scmp.lt.s32.totalorder %s9231_s21, 2  ;;  %p9320_p11 = por %p149_p7, %p35_p0 }
   0xf   : > { %p9324_p12 = por %p155_p8, %p41_p3  ;;  %s187_s7 = sand.u32 1, %s9227_s20  }
  0x10   : > { %s13857_s30 = scalar_select %p9320_p11, 1, 0 }
  0x11   : > { %s13858_s6 = scalar_select %p9324_p12, 1, 0 }
  0x12   : > { %s7297_s8 = sshll.u32 %s9231_s21, 12  ;;  %s6684_s9 = sshll.u32 %s187_s7, 8 }
  0x13   : > { %s9333_s12 = scalar_lea.hbm %s13667_s0, %s7297_s8  ;;  %s191_s13 = scalar_lea.vmem [#allocation4], %s6684_s9 }
  0x14   : > { %s198_s14 = sshll.u32 %s191_s13, 4  ;;  %p9337_p13 = pnand %p8832_p10, %p9309_p5  ;;  %s9341_s14 = int_to_ptr.vmem [resolvable:$true] %s198_s14 }
  0x15   : > { %s9343_s16 = scalar_lea.sflag [#allocation5], %s187_s7  ;;  %s9139_s17 = scalar_lea.hbm %s9333_s12, 4096 }
  0x16   : > { %p9140_p0 = scmp.ne.s32.totalorder %s9333_s12, %s9139_s17  ;;  %p9141_p1 = pneg %p9337_p13 }
  0x17   : > { %s9144_s26 = scalar_lea.hbm %s13667_s0, 8192  ;;  %p9145_p4 = scmp.lt.s32.totalorder %s9333_s12, %s13667_s0 }
  0x18   : > { %p9142_p2 = pnand %p9141_p1, %p9140_p0  ;;  %p9146_p5 = scmp.lt.s32.totalorder %s9144_s26, %s9139_s17 }
  0x1a   : > { %p9143_p3 = pneg %p9142_p2  ;;  %p9147_p7 = por %p9146_p5, %p9145_p4 }
  0x1c   : > { %p9148_p8 = pnand %p9147_p7, %p9143_p3 }
  0x1e   : > { %9151 = shalt.err (!%p9148_p8)
}
  0x1f   : > { %s9152_s7 = scalar_lea.vmem %s9341_s14, 4096  ;;  %s9233_s9 = smov [#allocation4]  }
  0x20   : > { %p9153_p10 = scmp.ne.s32.totalorder %s9341_s14, %s9152_s7  ;;  %s9157_s10 = sshll.u32 %s9233_s9, 4  ;;  %s9158_s10 = int_to_ptr.vmem [resolvable:$false] %s9157_s10 }
  0x21   : > { %s9159_s11 = scalar_lea.vmem %s9158_s10, 8192  ;;  %p9160_p2 = scmp.lt.s32.totalorder %s9341_s14, %s9158_s10 }
  0x22   : > { %p9155_p9 = pnand %p9153_p10, %p9141_p1  ;;  %p9161_p12 = scmp.lt.s32.totalorder %s9159_s11, %s9152_s7 }
  0x24   : > { %p9156_p0 = pneg %p9155_p9  ;;  %p9162_p11 = por %p9161_p12, %p9160_p2 }
  0x26   : > { %p9163_p6 = pnand %p9162_p11, %p9156_p0 }
  0x28   : > { %9166 = shalt.err (!%p9163_p6)
}
  0x29   : > { %s9234_s13 = smov 128   ;;  %s9235_s17 = smov 8  }
  0x2a   : > { %8827 = dma.hbm_to_vmem [thread:$0]  (!%p9337_p13), %s9333_s12, 4096, %s9341_s14, %s9343_s16, %s9234_s13, %s9234_s13, %s9235_s17  }
  0x2b   : > { %p6687_p9 = scmp.ge.s32.totalorder %s9231_s21, 1  ;;  %p206_p1 = scmp.lt.s32.totalorder %s9231_s21, 3 }
  0x2d   : > { %p207_p3 = pnand %p6687_p9, %p206_p1 }
  0x2f   : > { %210 = sbr.rel (%p207_p3) target bundleno = 1194 (0x4aa), region = 40 }
  0x34   : > { %s9367_s23 = sand.u32 1, %s9223_s19   ;;  %p13860_p6 = scmp.ne.s32.totalorder %s13856_s29, 0 }
  0x35   : > { %s6688_s25 = sshll.u32 %s9367_s23, 8  ;;  %s213_s26 = scalar_lea.sflag [#allocation5], %s9367_s23 }
  0x36   : > { %s9373_s28 = scalar_lea.vmem [#allocation4], %s6688_s25 }
  0x37   : > { %9210 = dma.done.wait (%p13860_p6), %s213_s26, 4096  }
  0x38   : > { %9212 = vsyncadd (%p13860_p6), %s213_s26, 4294963200  ;;  %vm275_vm0 = vcmask 130048   ;;  %vm278_vm1 = vcmask 123904   ;;  %v13675_v0 = vmov 0.0   ;;  %v6691_v1 = vld [vmem:[%s13668_s1 + $0x18] sm:$0xff]  ;;  %v419_v2 = vld [vmem:[%s13668_s1 + $0x8] sm:$0xff] }
  0x39   : > { %276 = vst.msk [vmem:[#allocation2] sm:$0xff] %vm275_vm0, %v13675_v0  ;;  %277 = vst.msk [vmem:[#allocation2 + $0x8] sm:$0xff] %vm275_vm0, %v13675_v0  ;;  %v6690_v3 = vld [vmem:[%s13668_s1 + $0x10] sm:$0xff]  ;;  %7902 = vmatprep.subr.mxu0 %v6691_v1  ;;  %7954 = vmatprep.subr.mxu1 %v419_v2  ;;  %v418_v4 = vld [vmem:[%s13668_s1] sm:$0xff]  ;;  %vm468_vm2 = vcmask 1046528   ;;  %vm1130_vm3 = vcmask 1045504  }
  0x3a   : > { %280 = vst.msk [vmem:[#allocation2 + $0x18] sm:$0xff] %vm275_vm0, %v13675_v0  ;;  %281 = vst.msk [vmem:[#allocation2 + $0x20] sm:$0xff] %vm275_vm0, %v13675_v0  ;;  %7903 = vmatpush3.msra.mxu0 %v6691_v1  ;;  %7955 = vmatpush3.msra.mxu1 %v419_v2  ;;  %v6757_v10 = vld [vmem:[%s13668_s1 + $0x28] sm:$0xff]  ;;  %v9503_v11 = vld [vmem:[%s9373_s28] sm:$0xff]  ;;  %vm3408_vm4 = vcmask 64512   ;;  %vm3411_vm5 = vcmask 58368  }
  0x3b   : > { %283 = vst.msk [vmem:[#allocation2 + $0x30] sm:$0xff] %vm275_vm0, %v13675_v0  ;;  %284 = vst.msk [vmem:[#allocation2 + $0x38] sm:$0xff] %vm275_vm0, %v13675_v0  ;;  %7904 = vmatprep.subr.mxu0 %v6690_v3  ;;  %7956 = vmatprep.subr.mxu1 %v418_v4  ;;  %v9506_v14 = vld [vmem:[%s9373_s28 + $0x8] sm:$0xff]  ;;  %v9511_v15 = vld [vmem:[%s9373_s28 + $0x10] sm:$0xff]  ;;  %p14422_p12 = scmp.ne.s32.totalorder %s13857_s30, 0  ;;  %s9237_s13 = smov [#allocation7]  }
  0x3c   : > { %286 = vst.msk [vmem:[#allocation2 + $0x48] sm:$0xff] %vm275_vm0, %v13675_v0  ;;  %287 = vst.msk [vmem:[#allocation2 + $0x50] sm:$0xff] %vm275_vm0, %v13675_v0  ;;  %v9514_v16 = vld [vmem:[%s9373_s28 + $0x18] sm:$0xff]  ;;  %7905 = vmatpush3.msra.mxu0 %v6690_v3  ;;  %7957 = vmatpush3.msra.mxu1 %v418_v4  ;;  %v9524_v19 = vld [vmem:[%s9373_s28 + $0x20] sm:$0xff]  ;;  %s9171_s17 = sshll.u32 %s9237_s13, 4  ;;  %s9172_s17 = int_to_ptr.vmem [resolvable:$false] %s9171_s17 }
  0x3d   : > { %289 = vst.msk [vmem:[#allocation2 + $0x60] sm:$0xff] %vm275_vm0, %v13675_v0  ;;  %290 = vst.msk [vmem:[#allocation2 + $0x68] sm:$0xff] %vm275_vm0, %v13675_v0  ;;  %v9527_v20 = vld [vmem:[%s9373_s28 + $0x28] sm:$0xff]  ;;  %v9530_v21 = vld [vmem:[%s9373_s28 + $0x30] sm:$0xff]  ;;  %8006 = vmatprep.subr.mxu0 %v6757_v10  ;;  %s9173_s26 = scalar_lea.vmem %s9172_s17, 8192 }
  0x3e   : > { %292 = vst.msk [vmem:[#allocation2 + $0x78] sm:$0xff] %vm275_vm0, %v13675_v0  ;;  %293 = vst.msk [vmem:[#allocation2 + $0x80] sm:$0xff] %vm275_vm0, %v13675_v0  ;;  %v9540_v24 = vld [vmem:[%s9373_s28 + $0x38] sm:$0xff]  ;;  %v9545_v25 = vld [vmem:[%s9373_s28 + $0x40] sm:$0xff] }
  0x3f   : > { %295 = vst.msk [vmem:[#allocation2 + $0x90] sm:$0xff] %vm275_vm0, %v13675_v0  ;;  %296 = vst.msk [vmem:[#allocation2 + $0x98] sm:$0xff] %vm275_vm0, %v13675_v0  ;;  %v9548_v26 = vld [vmem:[%s9373_s28 + $0x48] sm:$0xff]  ;;  %v9559_v27 = vld [vmem:[%s9373_s28 + $0x50] sm:$0xff] }
  0x40   : > { %298 = vst.msk [vmem:[#allocation2 + $0xa8] sm:$0xff] %vm275_vm0, %v13675_v0  ;;  %299 = vst.msk [vmem:[#allocation2 + $0xb0] sm:$0xff] %vm275_vm0, %v13675_v0  ;;  %v364_v5 = vld [vmem:[#allocation2] sm:$0xff]  ;;  %v365_v6 = vld [vmem:[#allocation2 + $0x8] sm:$0xff] }
  0x41   : > { %301 = vst.msk [vmem:[#allocation2 + $0xc0] sm:$0xff] %vm275_vm0, %v13675_v0  ;;  %302 = vst.msk [vmem:[#allocation2 + $0xc8] sm:$0xff] %vm275_vm0, %v13675_v0  ;;  %v469_v7 = vrot.slane %v364_v5, 1  ;;  %v470_v8 = vrot.slane %v365_v6, 1  ;;  %v1131_v17 = vrot.slane %v364_v5, 2  ;;  %v1132_v22 = vrot.slane %v365_v6, 2  ;;  %7958 = vmatprep.mubr.msk.f32.mxu1 %vm275_vm0, %v364_v5 }
  0x42   : > { %304 = vst.msk [vmem:[#allocation2 + $0xd8] sm:$0xff] %vm275_vm0, %v13675_v0  ;;  %305 = vst.msk [vmem:[#allocation2 + $0xe0] sm:$0xff] %vm275_vm0, %v13675_v0  ;;  %7959 = vmatmul.mubr.msk.f32.vlgmr.msra.gmra.mxu1 %vm275_vm0, %v365_v6  ;;  %v9562_v28 = vld [vmem:[%s9373_s28 + $0x58] sm:$0xff]  ;;  %v9565_v29 = vld [vmem:[%s9373_s28 + $0x60] sm:$0xff] }
  0x43   : > { %307 = vst.msk [vmem:[#allocation2 + $0xf0] sm:$0xff] %vm275_vm0, %v13675_v0  ;;  %308 = vst.msk [vmem:[#allocation2 + $0xf8] sm:$0xff] %vm275_vm0, %v13675_v0  ;;  %v471_v18 = vsel %vm468_vm2, %v469_v7, %v470_v8  ;;  %v9568_v30 = vsel %vm1130_vm3, %v1131_v17, %v1132_v22  ;;  %v9578_v32 = vld [vmem:[%s9373_s28 + $0x68] sm:$0xff]  ;;  %v9583_v33 = vld [vmem:[%s9373_s28 + $0x70] sm:$0xff] }
  0x44   : > { %310 = vst.msk [vmem:[#allocation2 + $0x108] sm:$0xff] %vm275_vm0, %v13675_v0  ;;  %311 = vst.msk [vmem:[#allocation2 + $0x110] sm:$0xff] %vm275_vm0, %v13675_v0  ;;  %7906 = vmatprep.mubr.msk.f32.mxu0 %vm275_vm0, %v471_v18  ;;  %v9586_v34 = vld [vmem:[%s9373_s28 + $0x78] sm:$0xff]  ;;  %v6756_v35 = vld [vmem:[%s13668_s1 + $0x20] sm:$0xff] }
  0x45   : > { %313 = vst.msk [vmem:[#allocation2 + $0x120] sm:$0xff] %vm275_vm0, %v13675_v0  ;;  %314 = vst.msk [vmem:[#allocation2 + $0x128] sm:$0xff] %vm275_vm0, %v13675_v0  ;;  %v9598_v36 = vld [vmem:[%s9373_s28 + $0x80] sm:$0xff]  ;;  %v9601_v37 = vld [vmem:[%s9373_s28 + $0x88] sm:$0xff] }
  0x46   : > { %316 = vst.msk [vmem:[#allocation2 + $0x138] sm:$0xff] %vm275_vm0, %v13675_v0  ;;  %317 = vst.msk [vmem:[#allocation2 + $0x140] sm:$0xff] %vm275_vm0, %v13675_v0  ;;  %v9608_v38 = vld [vmem:[%s9373_s28 + $0x90] sm:$0xff]  ;;  %v9611_v39 = vld [vmem:[%s9373_s28 + $0x98] sm:$0xff] }
  0x47   : > { %319 = vst.msk [vmem:[#allocation2 + $0x150] sm:$0xff] %vm275_vm0, %v13675_v0  ;;  %320 = vst.msk [vmem:[#allocation2 + $0x158] sm:$0xff] %vm275_vm0, %v13675_v0  ;;  %v9614_v40 = vld [vmem:[%s9373_s28 + $0xa0] sm:$0xff]  ;;  %v9623_v42 = vld [vmem:[%s9373_s28 + $0xa8] sm:$0xff] }
  0x48   : > { %322 = vst.msk [vmem:[#allocation2 + $0x168] sm:$0xff] %vm275_vm0, %v13675_v0  ;;  %323 = vst.msk [vmem:[#allocation2 + $0x170] sm:$0xff] %vm275_vm0, %v13675_v0  ;;  %v9628_v43 = vld [vmem:[%s9373_s28 + $0xb0] sm:$0xff] }
  0x49   : > { %325 = vst.msk [vmem:[#allocation2 + $0x180] sm:$0xff] %vm275_vm0, %v13675_v0  ;;  %326 = vst.msk [vmem:[#allocation2 + $0x188] sm:$0xff] %vm275_vm0, %v13675_v0 }
  0x4a   : > { %328 = vst.msk [vmem:[#allocation2 + $0x198] sm:$0xff] %vm275_vm0, %v13675_v0  ;;  %329 = vst.msk [vmem:[#allocation2 + $0x1a0] sm:$0xff] %vm275_vm0, %v13675_v0 }
  0x4b   : > { %279 = vst.msk [vmem:[#allocation2 + $0x10] sm:$0x3] %vm278_vm1, %v13675_v0  ;;  %282 = vst.msk [vmem:[#allocation2 + $0x28] sm:$0x3] %vm278_vm1, %v13675_v0 }
  0x4c   : > { %285 = vst.msk [vmem:[#allocation2 + $0x40] sm:$0x3] %vm278_vm1, %v13675_v0  ;;  %288 = vst.msk [vmem:[#allocation2 + $0x58] sm:$0x3] %vm278_vm1, %v13675_v0 }
  0x4d   : > { %291 = vst.msk [vmem:[#allocation2 + $0x70] sm:$0x3] %vm278_vm1, %v13675_v0  ;;  %294 = vst.msk [vmem:[#allocation2 + $0x88] sm:$0x3] %vm278_vm1, %v13675_v0 }
  0x4e   : > { %297 = vst.msk [vmem:[#allocation2 + $0xa0] sm:$0x3] %vm278_vm1, %v13675_v0  ;;  %300 = vst.msk [vmem:[#allocation2 + $0xb8] sm:$0x3] %vm278_vm1, %v13675_v0 }
  0x4f   : > { %303 = vst.msk [vmem:[#allocation2 + $0xd0] sm:$0x3] %vm278_vm1, %v13675_v0  ;;  %306 = vst.msk [vmem:[#allocation2 + $0xe8] sm:$0x3] %vm278_vm1, %v13675_v0 }
  0x50   : > { %309 = vst.msk [vmem:[#allocation2 + $0x100] sm:$0x3] %vm278_vm1, %v13675_v0  ;;  %312 = vst.msk [vmem:[#allocation2 + $0x118] sm:$0x3] %vm278_vm1, %v13675_v0 }
  0x51   : > { %315 = vst.msk [vmem:[#allocation2 + $0x130] sm:$0x3] %vm278_vm1, %v13675_v0  ;;  %318 = vst.msk [vmem:[#allocation2 + $0x148] sm:$0x3] %vm278_vm1, %v13675_v0 }
  0x52   : > { %321 = vst.msk [vmem:[#allocation2 + $0x160] sm:$0x3] %vm278_vm1, %v13675_v0  ;;  %324 = vst.msk [vmem:[#allocation2 + $0x178] sm:$0x3] %vm278_vm1, %v13675_v0  ;;  %v366_v9 = vld [vmem:[#allocation2 + $0x10] sm:$0x3] }
  0x53   : > { %327 = vst.msk [vmem:[#allocation2 + $0x190] sm:$0x3] %vm278_vm1, %v13675_v0  ;;  %330 = vst.msk [vmem:[#allocation2 + $0x1a8] sm:$0x3] %vm278_vm1, %v13675_v0  ;;  %v472_v12 = vrot.slane %v366_v9, 1  ;;  %v1134_v13 = vrot.slane %v366_v9, 2 }
  0x54   : > { %13861 = vst [vmem:[#allocation10_spill] sm:$0xff] %v9503_v11  ;;  %13862 = vst [vmem:[#allocation11_spill] sm:$0xff] %v9506_v14 }
  0x55   : > { %332 = vst.msk [vmem:[#allocation2 + $0x19] sm:$0xff] %vm275_vm0, %v9503_v11  ;;  %13863 = vst [vmem:[#allocation12_spill] sm:$0xff] %v9511_v15  ;;  %v473_v23 = vsel %vm468_vm2, %v470_v8, %v472_v12  ;;  %v9571_v31 = vsel %vm1130_vm3, %v1132_v22, %v1134_v13 }
  0x56   : > { %13864 = vst [vmem:[#allocation13_spill] sm:$0xff] %v9514_v16  ;;  %333 = vst.msk [vmem:[#allocation2 + $0x21] sm:$0xff] %vm275_vm0, %v9506_v14  ;;  %7907 = vmatmul.mubr.msk.f32.vlgmr.msra.gmra.mxu0 %vm275_vm0, %v473_v23 }
  0x57   : > { %334 = vst.msk [vmem:[#allocation2 + $0x31] sm:$0xff] %vm275_vm0, %v9511_v15  ;;  %335 = vst.msk [vmem:[#allocation2 + $0x39] sm:$0xff] %vm275_vm0, %v9514_v16  ;;  %8007 = vmatpush3.msra.mxu0 %v6757_v10 }
  0x58   : > { %13865 = vst [vmem:[#allocation14_spill] sm:$0xff] %v9524_v19  ;;  %13866 = vst [vmem:[#allocation15_spill] sm:$0xff] %v9527_v20  ;;  %8008 = vmatprep.subr.mxu0 %v6756_v35 }
  0x59   : > { %13867 = vst [vmem:[#allocation16_spill] sm:$0xff] %v9530_v21  ;;  %336 = vst.msk [vmem:[#allocation2 + $0x49] sm:$0xff] %vm275_vm0, %v9524_v19  ;;  %8009 = vmatpush3.msra.mxu0 %v6756_v35 }
  0x5a   : > { %337 = vst.msk [vmem:[#allocation2 + $0x51] sm:$0xff] %vm275_vm0, %v9527_v20  ;;  %13868 = vst [vmem:[#allocation17_spill] sm:$0xff] %v9540_v24 }
  0x5b   : > { %338 = vst.msk [vmem:[#allocation2 + $0x61] sm:$0xff] %vm275_vm0, %v9530_v21  ;;  %13869 = vst [vmem:[#allocation18_spill] sm:$0xff] %v9545_v25 }
  0x5c   : > { %13870 = vst [vmem:[#allocation19_spill] sm:$0xff] %v9548_v26  ;;  %339 = vst.msk [vmem:[#allocation2 + $0x69] sm:$0xff] %vm275_vm0, %v9540_v24  ;;  %v9616_v41 = vld [vmem:[#allocation2 + $0x18] sm:$0xff] }
  0x5d   : > { %340 = vst.msk [vmem:[#allocation2 + $0x79] sm:$0xff] %vm275_vm0, %v9545_v25  ;;  %341 = vst.msk [vmem:[#allocation2 + $0x81] sm:$0xff] %vm275_vm0, %v9548_v26  ;;  %v9630_v44 = vld [vmem:[#allocation2 + $0x20] sm:$0xff]  ;;  %v474_v45 = vrot.slane %v9616_v41, 1  ;;  %7961 = vmatprep.mubr.msk.f32.mxu1 %vm275_vm0, %v9616_v41  ;;  %v9635_v46 = vld [vmem:[#allocation2 + $0x28] sm:$0x3] }
  0x5e   : > { %13871 = vst [vmem:[#allocation20_spill] sm:$0xff] %v9559_v27  ;;  %13872 = vst [vmem:[#allocation21_spill] sm:$0xff] %v9562_v28  ;;  %v9637_v47 = vld [vmem:[#allocation2 + $0x30] sm:$0xff]  ;;  %v475_v48 = vrot.slane %v9630_v44, 1  ;;  %v477_v49 = vrot.slane %v9635_v46, 1  ;;  %7962 = vmatmul.mubr.msk.f32.gmra.mxu1 %vm275_vm0, %v9630_v44  ;;  %v9647_v50 = vld [vmem:[#allocation2 + $0x38] sm:$0xff] }
  0x5f   : > { %13873 = vst [vmem:[#allocation22_spill] sm:$0xff] %v9565_v29  ;;  %342 = vst.msk [vmem:[#allocation2 + $0x91] sm:$0xff] %vm275_vm0, %v9559_v27  ;;  %v479_v51 = vrot.slane %v9637_v47, 1  ;;  %v9650_v52 = vld [vmem:[#allocation2 + $0x40] sm:$0x3]  ;;  %v480_v53 = vrot.slane %v9647_v50, 1  ;;  %7964 = vmatprep.mubr.msk.f32.mxu1 %vm275_vm0, %v9637_v47 }
  0x60   : > { %343 = vst.msk [vmem:[#allocation2 + $0x99] sm:$0xff] %vm275_vm0, %v9562_v28  ;;  %13874 = vst [vmem:[#allocation23_spill] sm:$0xff] %v9578_v32  ;;  %v482_v54 = vrot.slane %v9650_v52, 1  ;;  %v9656_v55 = vld [vmem:[#allocation2 + $0x48] sm:$0xff]  ;;  %v9661_v57 = vsel %vm468_vm2, %v474_v45, %v475_v48  ;;  %v9664_v58 = vsel %vm468_vm2, %v475_v48, %v477_v49  ;;  %v9726_v45 = vld [vmem:[%s9373_s28 + $0xb8] sm:$0xff] }
  0x61   : > { %344 = vst.msk [vmem:[#allocation2 + $0xa9] sm:$0xff] %vm275_vm0, %v9565_v29  ;;  %13875 = vst [vmem:[#allocation24_spill] sm:$0xff] %v9583_v33  ;;  %v9658_v56 = vld [vmem:[#allocation2 + $0x50] sm:$0xff]  ;;  %v484_v59 = vrot.slane %v9656_v55, 1  ;;  %v9668_v61 = vld [vmem:[#allocation2 + $0x58] sm:$0x3]  ;;  %7909 = vmatprep.mubr.msk.f32.mxu0 %vm275_vm0, %v9661_v57  ;;  %v9673_v62 = vsel %vm468_vm2, %v479_v51, %v480_v53 }
  0x62   : > { %13876 = vst [vmem:[#allocation25_spill] sm:$0xff] %v9586_v34  ;;  %345 = vst.msk [vmem:[#allocation2 + $0xb1] sm:$0xff] %vm275_vm0, %v9578_v32  ;;  %v485_v60 = vrot.slane %v9658_v56, 1  ;;  %v9675_v63 = vld [vmem:[#allocation2 + $0x60] sm:$0xff]  ;;  %7910 = vmatmul.mubr.msk.f32.gmra.mxu0 %vm275_vm0, %v9664_v58  ;;  %7965 = vmatmul.mubr.msk.f32.gmra.mxu1 %vm275_vm0, %v9647_v50  ;;  %v9686_v2 = vsel %vm468_vm2, %v480_v53, %v482_v54  ;;  %v487_v3 = vrot.slane %v9668_v61, 1  ;;  %v9738_v49 = vld [vmem:[%s9373_s28 + $0xc8] sm:$0xff] }
  0x63   : > { %346 = vst.msk [vmem:[#allocation2 + $0xc1] sm:$0xff] %vm275_vm0, %v9583_v33  ;;  %347 = vst.msk [vmem:[#allocation2 + $0xc9] sm:$0xff] %vm275_vm0, %v9586_v34  ;;  %v9677_v1 = vld [vmem:[#allocation2 + $0x68] sm:$0xff]  ;;  %7912 = vmatprep.mubr.msk.f32.mxu0 %vm275_vm0, %v9673_v62  ;;  %7967 = vmatprep.mubr.msk.f32.mxu1 %vm275_vm0, %v9656_v55  ;;  %v489_v5 = vrot.slane %v9675_v63, 1  ;;  %v9696_v7 = vld [vmem:[#allocation2 + $0x70] sm:$0x3] }
  0x64   : > { %13877 = vst [vmem:[#allocation26_spill] sm:$0xff] %v9598_v36  ;;  %13878 = vst [vmem:[#allocation27_spill] sm:$0xff] %v9601_v37  ;;  %v9692_v4 = vsel %vm468_vm2, %v484_v59, %v485_v60  ;;  %v490_v6 = vrot.slane %v9677_v1, 1  ;;  %v9698_v8 = vld [vmem:[#allocation2 + $0x78] sm:$0xff]  ;;  %v9700_v9 = vld [vmem:[#allocation2 + $0x80] sm:$0xff]  ;;  %v9709_v10 = vsel %vm468_vm2, %v485_v60, %v487_v3  ;;  %v492_v12 = vrot.slane %v9696_v7, 1 }
  0x65   : > { %348 = vst.msk [vmem:[#allocation2 + $0xd9] sm:$0xff] %vm275_vm0, %v9598_v36  ;;  %349 = vst.msk [vmem:[#allocation2 + $0xe1] sm:$0xff] %vm275_vm0, %v9601_v37  ;;  %v494_v17 = vrot.slane %v9698_v8, 1  ;;  %v495_v18 = vrot.slane %v9700_v9, 1  ;;  %v9719_v22 = vld [vmem:[#allocation2 + $0x88] sm:$0x3] }
  0x66   : > { %13879 = vst [vmem:[#allocation28_spill] sm:$0xff] %v9608_v38  ;;  %13880 = vst [vmem:[#allocation29_spill] sm:$0xff] %v9611_v39  ;;  %7913 = vmatmul.mubr.msk.f32.gmra.mxu0 %vm275_vm0, %v9686_v2  ;;  %7968 = vmatmul.mubr.msk.f32.gmra.mxu1 %vm275_vm0, %v9658_v56  ;;  %v9715_v13 = vsel %vm468_vm2, %v489_v5, %v490_v6  ;;  %v9721_v23 = vld [vmem:[#allocation2 + $0x90] sm:$0xff]  ;;  %v9729_v48 = vld [vmem:[%s9373_s28 + $0xc0] sm:$0xff]  ;;  %v9751_v54 = vsel %vm468_vm2, %v490_v6, %v492_v12  ;;  %v497_v59 = vrot.slane %v9719_v22, 1 }
  0x67   : > { %13881 = vst [vmem:[#allocation30_spill] sm:$0xff] %v9614_v40  ;;  %350 = vst.msk [vmem:[#allocation2 + $0xf1] sm:$0xff] %vm275_vm0, %v9608_v38  ;;  %7915 = vmatprep.mubr.msk.f32.mxu0 %vm275_vm0, %v9692_v4  ;;  %7970 = vmatprep.mubr.msk.f32.mxu1 %vm275_vm0, %v9675_v63  ;;  %v9723_v35 = vld [vmem:[#allocation2 + $0x98] sm:$0xff]  ;;  %v9743_v51 = vld [vmem:[%s9373_s28 + $0xd0] sm:$0xff]  ;;  %v9774_v12 = vsel %vm468_vm2, %v494_v17, %v495_v18  ;;  %v499_v0 = vrot.slane %v9721_v23, 1 }
  0x68   : > { %351 = vst.msk [vmem:[#allocation2 + $0xf9] sm:$0xff] %vm275_vm0, %v9611_v39  ;;  %13882 = vst [vmem:[#allocation31_spill] sm:$0xff] %v9623_v42  ;;  %v9746_v53 = vld [vmem:[%s9373_s28 + $0xd8] sm:$0xff]  ;;  %v9756_v60 = vld [vmem:[#allocation2 + $0xa8] sm:$0xff] }
  0x69   : > { %352 = vst.msk [vmem:[#allocation2 + $0x109] sm:$0xff] %vm275_vm0, %v9614_v40  ;;  %13883 = vst [vmem:[#allocation32_spill] sm:$0xff] %v9628_v43  ;;  %v9765_v3 = vld [vmem:[%s9373_s28 + $0xe0] sm:$0xff]  ;;  %v9768_v5 = vld [vmem:[%s9373_s28 + $0xe8] sm:$0xff]  ;;  %v504_v40 = vrot.slane %v9756_v60, 1 }
  0x6a   : > { %353 = vst.msk [vmem:[#allocation2 + $0x111] sm:$0xff] %vm275_vm0, %v9623_v42  ;;  %354 = vst.msk [vmem:[#allocation2 + $0x121] sm:$0xff] %vm275_vm0, %v9628_v43  ;;  %7916 = vmatmul.mubr.msk.f32.gmra.mxu0 %vm275_vm0, %v9709_v10  ;;  %7971 = vmatmul.mubr.msk.f32.gmra.mxu1 %vm275_vm0, %v9677_v1  ;;  %v6791_v6 = vld [vmem:[%s13668_s1 + $0x38] sm:$0xff]  ;;  %v9789_v17 = vld [vmem:[%s13668_s1 + $0x48] sm:$0xff] }
  0x6b   : > { %13884 = vst [vmem:[#allocation33_spill] sm:$0xff] %v9675_v63  ;;  %13885 = vst [vmem:[#allocation34_spill] sm:$0xff] %v9698_v8  ;;  %7918 = vmatprep.mubr.msk.f32.mxu0 %vm275_vm0, %v9715_v13  ;;  %7973 = vmatprep.mubr.msk.f32.mxu1 %vm275_vm0, %v9698_v8  ;;  %v9796_v43 = vld [vmem:[%s9373_s28 + $0xf0] sm:$0xff]  ;;  %v9822_v42 = vld [vmem:[#allocation2 + $0xb8] sm:$0x3] }
  0x6c   : > { %13886 = vst [vmem:[#allocation35_spill] sm:$0xff] %v9709_v10  ;;  %13887 = vst [vmem:[#allocation36_spill] sm:$0xff] %v9715_v13  ;;  %8058 = vmatprep.subr.mxu1 %v6791_v6  ;;  %8110 = vmatprep.subr.mxu0 %v9789_v17  ;;  %v9826_v38 = vld [vmem:[#allocation2 + $0xc8] sm:$0xff]  ;;  %v9850_v37 = vld [vmem:[#allocation2 + $0xd0] sm:$0x3] }
  0x6d   : > { %13888 = vst [vmem:[#allocation37_spill] sm:$0xff] %v9721_v23  ;;  %13889 = vst [vmem:[#allocation38_spill] sm:$0xff] %v9726_v45  ;;  %8059 = vmatpush3.msra.mxu1 %v6791_v6  ;;  %v9812_v6 = vsel %vm468_vm2, %v495_v18, %v497_v59  ;;  %v9831_v18 = vld [vmem:[%s13668_s1 + $0x58] sm:$0xff]  ;;  %v510_v36 = vrot.slane %v9826_v38, 1  ;;  %v9874_v27 = vld [vmem:[#allocation2 + $0xe8] sm:$0x3] }
  0x6e   : > { %13890 = vst [vmem:[#allocation39_spill] sm:$0xff] %v9729_v48  ;;  %355 = vst.msk [vmem:[#allocation2 + $0x129] sm:$0xff] %vm275_vm0, %v9726_v45  ;;  %v9799_v45 = vld [vmem:[%s9373_s28 + $0xf8] sm:$0xff]  ;;  %7919 = vmatmul.mubr.msk.f32.gmra.mxu0 %vm275_vm0, %v9751_v54  ;;  %7974 = vmatmul.mubr.msk.f32.gmra.mxu1 %vm275_vm0, %v9700_v9  ;;  %v9876_v28 = vld [vmem:[#allocation2 + $0xf0] sm:$0xff]  ;;  %s13430_s28 = scalar_lea.vmem [#allocation7], %s6688_s25  ;;  %s7298_s25 = sshll.u32 %s9291_s22, 12 }
  0x6f   : > { %13891 = vst [vmem:[#allocation40_spill] sm:$0xff] %v9738_v49  ;;  %356 = vst.msk [vmem:[#allocation2 + $0x139] sm:$0xff] %vm275_vm0, %v9729_v48  ;;  %v9778_v48 = vld [vmem:[#allocation2 + $0xa0] sm:$0x3]  ;;  %7921 = vmatprep.mubr.msk.f32.mxu0 %vm275_vm0, %v9774_v12  ;;  %7976 = vmatprep.mubr.msk.f32.mxu1 %vm275_vm0, %v9721_v23  ;;  %v9853_v33 = vld [vmem:[#allocation2 + $0xd8] sm:$0xff]  ;;  %v519_v26 = vrot.slane %v9876_v28, 1  ;;  %s13615_s10 = scalar_lea.hbm %s13672_s5, %s7298_s25 }
  0x70   : > { %13892 = vst [vmem:[#allocation41_spill] sm:$0xff] %v9743_v51  ;;  %13893 = vst [vmem:[#allocation42_spill] sm:$0xff] %v9746_v53  ;;  %v514_v29 = vrot.slane %v9853_v33, 1  ;;  %v9878_v25 = vld [vmem:[#allocation2 + $0xf8] sm:$0xff]  ;;  %v9897_v24 = vld [vmem:[#allocation2 + $0x100] sm:$0x3] }
  0x71   : > { %13894 = vst [vmem:[#allocation43_spill] sm:$0xff] %v9751_v54  ;;  %13895 = vst [vmem:[#allocation44_spill] sm:$0xff] %v9756_v60  ;;  %v520_v21 = vrot.slane %v9878_v25, 1  ;;  %v9899_v19 = vld [vmem:[#allocation2 + $0x108] sm:$0xff]  ;;  %v9901_v20 = vld [vmem:[#allocation2 + $0x110] sm:$0xff]  ;;  %s6608_s8 = sshll.u32 %s13430_s28, 4  ;;  %s13617_s8 = int_to_ptr.vmem [resolvable:$true] %s6608_s8 }
  0x72   : > { %357 = vst.msk [vmem:[#allocation2 + $0x141] sm:$0xff] %vm275_vm0, %v9738_v49  ;;  %358 = vst.msk [vmem:[#allocation2 + $0x151] sm:$0xff] %vm275_vm0, %v9743_v51  ;;  %v500_v51 = vrot.slane %v9723_v35, 1  ;;  %v6790_v49 = vld [vmem:[%s13668_s1 + $0x30] sm:$0xff]  ;;  %7922 = vmatmul.mubr.msk.f32.gmra.mxu0 %vm275_vm0, %v9812_v6  ;;  %7977 = vmatmul.mubr.msk.f32.gmra.mxu1 %vm275_vm0, %v9723_v35  ;;  %v524_v15 = vrot.slane %v9899_v19, 1  ;;  %v525_v16 = vrot.slane %v9901_v20, 1  ;;  %p9174_p5 = scmp.lt.s32.totalorder %s13617_s8, %s9172_s17 }
  0x73   : > { %359 = vst.msk [vmem:[#allocation2 + $0x159] sm:$0xff] %vm275_vm0, %v9746_v53  ;;  %13896 = vst [vmem:[#allocation45_spill] sm:$0xff] %v9765_v3  ;;  %v9780_v53 = vld [vmem:[#allocation2 + $0xb0] sm:$0xff]  ;;  %8060 = vmatprep.subr.mxu1 %v6790_v49  ;;  %7979 = vmatprep.mubr.msk.f32.mxu1 %vm275_vm0, %v9756_v60  ;;  %v9920_v11 = vld [vmem:[#allocation2 + $0x118] sm:$0x3]  ;;  %s6595_s22 = scalar_lea.sflag [#allocation6], %s9367_s23 }
  0x74   : > { %13897 = vst [vmem:[#allocation46_spill] sm:$0xff] %v9768_v5  ;;  %13898 = vst [vmem:[#allocation47_spill] sm:$0xff] %v9774_v12  ;;  %8061 = vmatpush3.msra.mxu1 %v6790_v49  ;;  %v507_v49 = vrot.slane %v9822_v42, 1  ;;  %v9922_v14 = vld [vmem:[#allocation2 + $0x120] sm:$0xff]  ;;  %s9167_s11 = scalar_lea.vmem %s13617_s8, 4096 }
  0x75   : > { %360 = vst.msk [vmem:[#allocation2 + $0x169] sm:$0xff] %vm275_vm0, %v9765_v3  ;;  %361 = vst.msk [vmem:[#allocation2 + $0x171] sm:$0xff] %vm275_vm0, %v9768_v5  ;;  %v502_v3 = vrot.slane %v9778_v48, 1  ;;  %v9818_v5 = vsel %vm468_vm2, %v499_v0, %v500_v51  ;;  %8162 = vmatprep.subr.mxu1 %v9831_v18  ;;  %p9168_p11 = scmp.ne.s32.totalorder %s13617_s8, %s9167_s11  ;;  %p9175_p7 = scmp.lt.s32.totalorder %s9173_s26, %s9167_s11 }
  0x76   : > { %13899 = vst [vmem:[#allocation48_spill] sm:$0xff] %v9796_v43  ;;  %13900 = vst [vmem:[#allocation49_spill] sm:$0xff] %v9799_v45  ;;  %7924 = vmatprep.mubr.msk.f32.mxu0 %vm275_vm0, %v9818_v5  ;;  %7980 = vmatmul.mubr.msk.f32.gmra.mxu1 %vm275_vm0, %v9780_v53 }
  0x77   : > { %362 = vst.msk [vmem:[#allocation2 + $0x181] sm:$0xff] %vm275_vm0, %v9796_v43  ;;  %363 = vst.msk [vmem:[#allocation2 + $0x189] sm:$0xff] %vm275_vm0, %v9799_v45  ;;  %v505_v43 = vrot.slane %v9780_v53, 1  ;;  %v9824_v45 = vld [vmem:[#allocation2 + $0xc0] sm:$0xff]  ;;  %v9840_v0 = vsel %vm468_vm2, %v500_v51, %v502_v3  ;;  %v512_v3 = vrot.slane %v9850_v37, 1  ;;  %p9169_p13 = pnand %p9168_p11, %p14422_p12  ;;  %p9176_p8 = por %p9175_p7, %p9174_p5 }
  0x78   : > { %13901 = vst [vmem:[#allocation50_spill] sm:$0xff] %v9812_v6  ;;  %13902 = vst [vmem:[#allocation51_spill] sm:$0xff] %v9818_v5  ;;  %v509_v39 = vrot.slane %v9824_v45, 1  ;;  %v9855_v51 = vld [vmem:[#allocation2 + $0xe0] sm:$0xff]  ;;  %7925 = vmatmul.mubr.msk.f32.gmra.mxu0 %vm275_vm0, %v9840_v0  ;;  %7982 = vmatprep.mubr.msk.f32.mxu1 %vm275_vm0, %v9824_v45 }
  0x79   : > { %13903 = vst [vmem:[#allocation52_spill] sm:$0xff] %v9824_v45  ;;  %13904 = vst [vmem:[#allocation53_spill] sm:$0xff] %v9840_v0  ;;  %v9846_v59 = vsel %vm468_vm2, %v504_v40, %v505_v43  ;;  %v9864_v40 = vsel %vm468_vm2, %v505_v43, %v507_v49  ;;  %v515_v32 = vrot.slane %v9855_v51, 1  ;;  %v517_v43 = vrot.slane %v9874_v27, 1  ;;  %v9966_v0 = vld [vmem:[#allocation2 + $0x148] sm:$0x3]  ;;  %p9170_p4 = pneg %p9169_p13 }
  0x7a   : > { %13905 = vst [vmem:[#allocation54_spill] sm:$0xff] %v9846_v59  ;;  %13906 = vst [vmem:[#allocation55_spill] sm:$0xff] %v9853_v33  ;;  %7927 = vmatprep.mubr.msk.f32.mxu0 %vm275_vm0, %v9846_v59  ;;  %v9870_v34 = vsel %vm468_vm2, %v509_v39, %v510_v36  ;;  %7983 = vmatmul.mubr.msk.f32.gmra.mxu1 %vm275_vm0, %v9826_v38  ;;  %v9887_v39 = vsel %vm468_vm2, %v510_v36, %v512_v3  ;;  %v522_v36 = vrot.slane %v9897_v24, 1  ;;  %v9968_v5 = vld [vmem:[#allocation2 + $0x150] sm:$0xff]  ;;  %v9989_v12 = vld [vmem:[#allocation2 + $0x160] sm:$0x3] }
  0x7b   : > { %13907 = vst [vmem:[#allocation56_spill] sm:$0xff] %v9864_v40  ;;  %13908 = vst [vmem:[#allocation57_spill] sm:$0xff] %v9870_v34  ;;  %7985 = vmatprep.mubr.msk.f32.mxu1 %vm275_vm0, %v9853_v33  ;;  %v9893_v49 = vsel %vm468_vm2, %v514_v29, %v515_v32  ;;  %v9910_v29 = vsel %vm468_vm2, %v515_v32, %v517_v43  ;;  %v9916_v3 = vsel %vm468_vm2, %v519_v26, %v520_v21  ;;  %p9177_p10 = pnand %p9176_p8, %p9170_p4 }
  0x7c   : > { %13909 = vst [vmem:[#allocation58_spill] sm:$0xff] %v9876_v28  ;;  %7928 = vmatmul.mubr.msk.f32.gmra.mxu0 %vm275_vm0, %v9864_v40  ;;  %13910 = vst [vmem:[#allocation59_spill] sm:$0xff] %v9887_v39  ;;  %v9933_v26 = vsel %vm468_vm2, %v520_v21, %v522_v36  ;;  %v527_v32 = vrot.slane %v9920_v11, 1  ;;  %v9939_v43 = vsel %vm468_vm2, %v524_v15, %v525_v16  ;;  %v9945_v40 = vld [vmem:[#allocation2 + $0x138] sm:$0xff]  ;;  %v539_v6 = vrot.slane %v9968_v5, 1  ;;  %v9991_v54 = vld [vmem:[#allocation2 + $0x168] sm:$0xff] }
  0x7d   : > { %7930 = vmatprep.mubr.msk.f32.mxu0 %vm275_vm0, %v9870_v34  ;;  %13911 = vst [vmem:[#allocation60_spill] sm:$0xff] %v9893_v49  ;;  %13912 = vst [vmem:[#allocation61_spill] sm:$0xff] %v9899_v19  ;;  %v9943_v34 = vld [vmem:[#allocation2 + $0x130] sm:$0x3]  ;;  %v534_v59 = vrot.slane %v9945_v40, 1  ;;  %v544_v13 = vrot.slane %v9991_v54, 1 }
  0x7e   : > { %7986 = vmatmul.mubr.msk.f32.gmra.mxu1 %vm275_vm0, %v9855_v51  ;;  %13913 = vst [vmem:[#allocation62_spill] sm:$0xff] %v9910_v29  ;;  %13914 = vst [vmem:[#allocation63_spill] sm:$0xff] %v9916_v3  ;;  %v9956_v15 = vsel %vm468_vm2, %v525_v16, %v527_v32  ;;  %v532_v21 = vrot.slane %v9943_v34, 1  ;;  %v10012_v10 = vld [vmem:[#allocation2 + $0x178] sm:$0x3] }
  0x7f   : > { %7988 = vmatprep.mubr.msk.f32.mxu1 %vm275_vm0, %v9876_v28  ;;  %13915 = vst [vmem:[#allocation64_spill] sm:$0xff] %v9922_v14  ;;  %13916 = vst [vmem:[#allocation65_spill] sm:$0xff] %v9933_v26 }
  0x80   : > { %7931 = vmatmul.mubr.msk.f32.gmra.mxu0 %vm275_vm0, %v9887_v39  ;;  %13917 = vst [vmem:[#allocation66_spill] sm:$0xff] %v9939_v43  ;;  %v529_v39 = vrot.slane %v9922_v14, 1  ;;  %13918 = vst [vmem:[#allocation67_spill] sm:$0xff] %v9945_v40 }
  0x81   : > { %7933 = vmatprep.mubr.msk.f32.mxu0 %vm275_vm0, %v9893_v49  ;;  %v9924_v49 = vld [vmem:[#allocation2 + $0x128] sm:$0xff]  ;;  %13920 = vst [vmem:[#allocation69_spill] sm:$0xff] %v9956_v15  ;;  %13922 = vst [vmem:[#allocation71_spill] sm:$0xff] %v9968_v5 }
  0x82   : > { %7989 = vmatmul.mubr.msk.f32.gmra.mxu1 %vm275_vm0, %v9878_v25 }
  0x83   : > { %7991 = vmatprep.mubr.msk.f32.mxu1 %vm275_vm0, %v9899_v19 }
  0x84   : > { %7934 = vmatmul.mubr.msk.f32.gmra.mxu0 %vm275_vm0, %v9910_v29  ;;  %v530_v29 = vrot.slane %v9924_v49, 1 }
  0x85   : > { %7936 = vmatprep.mubr.msk.f32.mxu0 %vm275_vm0, %v9916_v3  ;;  %v9947_v3 = vld [vmem:[#allocation2 + $0x140] sm:$0xff] }
  0x86   : > { %13919 = vst [vmem:[#allocation68_spill] sm:$0xff] %v9947_v3  ;;  %7992 = vmatmul.mubr.msk.f32.gmra.mxu1 %vm275_vm0, %v9901_v20  ;;  %v9962_v36 = vsel %vm468_vm2, %v529_v39, %v530_v29  ;;  %v9979_v16 = vsel %vm468_vm2, %v530_v29, %v532_v21  ;;  %v537_v39 = vrot.slane %v9966_v0, 1  ;;  %v542_v29 = vrot.slane %v9989_v12, 1 }
  0x87   : > { %7994 = vmatprep.mubr.msk.f32.mxu1 %vm275_vm0, %v9922_v14  ;;  %13921 = vst [vmem:[#allocation70_spill] sm:$0xff] %v9962_v36  ;;  %13923 = vst [vmem:[#allocation72_spill] sm:$0xff] %v9979_v16 }
  0x88   : > { %7937 = vmatmul.mubr.msk.f32.gmra.mxu0 %vm275_vm0, %v9933_v26  ;;  %v535_v26 = vrot.slane %v9947_v3, 1 }
  0x89   : > { %7939 = vmatprep.mubr.msk.f32.mxu0 %vm275_vm0, %v9939_v43  ;;  %v9970_v43 = vld [vmem:[#allocation2 + $0x158] sm:$0xff] }
  0x8a   : > { %7995 = vmatmul.mubr.msk.f32.gmra.mxu1 %vm275_vm0, %v9924_v49  ;;  %v9985_v32 = vsel %vm468_vm2, %v534_v59, %v535_v26  ;;  %v10002_v59 = vsel %vm468_vm2, %v535_v26, %v537_v39 }
  0x8b   : > { %7997 = vmatprep.mubr.msk.f32.mxu1 %vm275_vm0, %v9945_v40 }
  0x8c   : > { %7940 = vmatmul.mubr.msk.f32.gmra.mxu0 %vm275_vm0, %v9956_v15  ;;  %v540_v15 = vrot.slane %v9970_v43, 1 }
  0x8d   : > { %7942 = vmatprep.mubr.msk.f32.mxu0 %vm275_vm0, %v9962_v36  ;;  %v9993_v36 = vld [vmem:[#allocation2 + $0x170] sm:$0xff] }
  0x8e   : > { %7998 = vmatmul.mubr.msk.f32.gmra.mxu1 %vm275_vm0, %v9947_v3  ;;  %v10008_v21 = vsel %vm468_vm2, %v539_v6, %v540_v15  ;;  %v10021_v26 = vsel %vm468_vm2, %v540_v15, %v542_v29  ;;  %v547_v6 = vrot.slane %v10012_v10, 1  ;;  %v1136_v29 = vrot.slane %v9616_v41, 2 }
  0x8f   : > { %8000 = vmatprep.mubr.msk.f32.mxu1 %vm275_vm0, %v9968_v5 }
  0x90   : > { %7943 = vmatmul.mubr.msk.f32.gmra.mxu0 %vm275_vm0, %v9979_v16  ;;  %v545_v16 = vrot.slane %v9993_v36, 1 }
  0x91   : > { %7945 = vmatprep.mubr.msk.f32.mxu0 %vm275_vm0, %v9985_v32 }
  0x92   : > { %8001 = vmatmul.mubr.msk.f32.gmra.mxu1 %vm275_vm0, %v9970_v43  ;;  %v10027_v39 = vsel %vm468_vm2, %v544_v13, %v545_v16  ;;  %v10036_v15 = vsel %vm468_vm2, %v545_v16, %v547_v6  ;;  %v1137_v13 = vrot.slane %v9630_v44, 2  ;;  %v1139_v16 = vrot.slane %v9635_v46, 2 }
  0x93   : > { %8003 = vmatprep.mubr.msk.f32.mxu1 %vm275_vm0, %v9991_v54  ;;  %13924 = vst [vmem:[#allocation73_spill] sm:$0xff] %v10027_v39  ;;  %13925 = vst [vmem:[#allocation74_spill] sm:$0xff] %v10036_v15  ;;  %v1141_v6 = vrot.slane %v9637_v47, 2  ;;  %v1144_v46 = vrot.slane %v9650_v52, 2  ;;  %v10089_v52 = vld [vmem:[%s13668_s1 + $0x78] sm:$0xff] }
  0x94   : > { %7946 = vmatmul.mubr.msk.f32.gmra.mxu0 %vm275_vm0, %v10002_v59 }
  0x95   : > { %7948 = vmatprep.mubr.msk.f32.mxu0 %vm275_vm0, %v10008_v21 }
  0x96   : > { %8004 = vmatmul.mubr.msk.f32.gmra.mxu1 %vm275_vm0, %v9993_v36 }
  0x97   : > { %8062 = vmatprep.mubr.msk.f32.mxu1 %vm275_vm0, %v9616_v41  ;;  %v10055_v41 = vsel %vm1130_vm3, %v1136_v29, %v1137_v13  ;;  %v1147_v29 = vrot.slane %v9658_v56, 2 }
  0x98   : > { %7949 = vmatmul.mubr.msk.f32.gmra.mxu0 %vm275_vm0, %v10021_v26 }
  0x99   : > { %7951 = vmatprep.mubr.msk.f32.mxu0 %vm275_vm0, %v10027_v39  ;;  %v6858_v39 = vld [vmem:[%s13668_s1 + $0x50] sm:$0xff] }
  0x9a   : > { %8063 = vmatmul.mubr.msk.f32.vlgmr.msra.gmra.mxu1 %vm275_vm0, %v9630_v44  ;;  %v6824_v44 = vld [vmem:[%s13668_s1 + $0x40] sm:$0xff] }
  0x9b   : > { %8065 = vmatprep.mubr.msk.f32.mxu1 %vm275_vm0, %v9637_v47  ;;  %8163 = vmatpush3.msra.mxu1 %v9831_v18 }
  0x9c   : > { %7952 = vmatmul.mubr.msk.f32.gmra.mxu0 %vm275_vm0, %v10036_v15  ;;  %v1142_v15 = vrot.slane %v9647_v50, 2  ;;  %8164 = vmatprep.subr.mxu1 %v6858_v39 }
  0x9d   : > { %8010 = vmatprep.mubr.msk.f32.mxu0 %vm275_vm0, %v9568_v30  ;;  %v10071_v30 = vsel %vm1130_vm3, %v1137_v13, %v1139_v16  ;;  %8165 = vmatpush3.msra.mxu1 %v6858_v39  ;;  %v1149_v16 = vrot.slane %v9668_v61, 2 }
  0x9e   : > { %8066 = vmatmul.mubr.msk.f32.gmra.mxu1 %vm275_vm0, %v9647_v50  ;;  %v10075_v18 = vsel %vm1130_vm3, %v1141_v6, %v1142_v15  ;;  %v10098_v13 = vsel %vm1130_vm3, %v1142_v15, %v1144_v46  ;;  %v1151_v6 = vrot.slane %v9675_v63, 2  ;;  %8266 = vmatprep.subr.mxu1 %v10089_v52  ;;  %v1154_v15 = vrot.slane %v9696_v7, 2 }
  0x9f   : > { %8068 = vmatprep.mubr.msk.f32.mxu1 %vm275_vm0, %v9656_v55  ;;  %v10117_v61 = vsel %vm1130_vm3, %v1147_v29, %v1149_v16 }
  0xa0   : > { %8011 = vmatmul.mubr.msk.f32.vlgmr.msra.gmra.mxu0 %vm275_vm0, %v9571_v31  ;;  %v1146_v31 = vrot.slane %v9656_v55, 2 }
  0xa1   : > { %8111 = vmatpush3.msra.mxu0 %v9789_v17  ;;  %8013 = vmatprep.mubr.msk.f32.mxu0 %vm275_vm0, %v10055_v41  ;;  %v10084_v17 = vld [vmem:[%s13668_s1 + $0x68] sm:$0xff] }
  0xa2   : > { %8112 = vmatprep.subr.mxu0 %v6824_v44  ;;  %8069 = vmatmul.mubr.msk.f32.gmra.mxu1 %vm275_vm0, %v9658_v56  ;;  %v10104_v39 = vsel %vm1130_vm3, %v1146_v31, %v1147_v29  ;;  %v1156_v31 = vrot.slane %v9698_v8, 2  ;;  %v1159_v29 = vrot.slane %v9719_v22, 2 }
  0xa3   : > { %8113 = vmatpush3.msra.mxu0 %v6824_v44  ;;  %8071 = vmatprep.mubr.msk.f32.mxu1 %vm275_vm0, %v9675_v63  ;;  %v1152_v44 = vrot.slane %v9677_v1, 2  ;;  %v1157_v63 = vrot.slane %v9700_v9, 2 }
  0xa4   : > { %8014 = vmatmul.mubr.msk.f32.gmra.mxu0 %vm275_vm0, %v10071_v30  ;;  %8214 = vmatprep.subr.mxu0 %v10084_v17 }
  0xa5   : > { %8016 = vmatprep.mubr.msk.f32.mxu0 %vm275_vm0, %v10075_v18  ;;  %v10123_v46 = vsel %vm1130_vm3, %v1151_v6, %v1152_v44  ;;  %v10134_v7 = vsel %vm1130_vm3, %v1152_v44, %v1154_v15  ;;  %v10140_v16 = vsel %vm1130_vm3, %v1156_v31, %v1157_v63  ;;  %v1161_v6 = vrot.slane %v9721_v23, 2 }
  0xa6   : > { %8072 = vmatmul.mubr.msk.f32.gmra.mxu1 %vm275_vm0, %v9677_v1  ;;  %v10151_v22 = vsel %vm1130_vm3, %v1157_v63, %v1159_v29  ;;  %v1164_v44 = vrot.slane %v9778_v48, 2  ;;  %v1166_v31 = vrot.slane %v9756_v60, 2  ;;  %v1169_v48 = vrot.slane %v9822_v42, 2 }
  0xa7   : > { %8074 = vmatprep.mubr.msk.f32.mxu1 %vm275_vm0, %v9698_v8  ;;  %v1162_v8 = vrot.slane %v9723_v35, 2  ;;  %13926 = vst [vmem:[#allocation75_spill] sm:$0xff] %v10151_v22 }
  0xa8   : > { %8017 = vmatmul.mubr.msk.f32.gmra.mxu0 %vm275_vm0, %v10098_v13 }
  0xa9   : > { %8019 = vmatprep.mubr.msk.f32.mxu0 %vm275_vm0, %v10104_v39  ;;  %v10157_v15 = vsel %vm1130_vm3, %v1161_v6, %v1162_v8  ;;  %v10168_v63 = vsel %vm1130_vm3, %v1162_v8, %v1164_v44  ;;  %v1171_v6 = vrot.slane %v9824_v45, 2  ;;  %v1174_v8 = vrot.slane %v9850_v37, 2 }
  0xaa   : > { %8075 = vmatmul.mubr.msk.f32.gmra.mxu1 %vm275_vm0, %v9700_v9  ;;  %13927 = vst [vmem:[#allocation76_spill] sm:$0xff] %v10157_v15  ;;  %13928 = vst [vmem:[#allocation77_spill] sm:$0xff] %v10168_v63 }
  0xab   : > { %8077 = vmatprep.mubr.msk.f32.mxu1 %vm275_vm0, %v9721_v23  ;;  %v1167_v23 = vrot.slane %v9780_v53, 2 }
  0xac   : > { %8020 = vmatmul.mubr.msk.f32.gmra.mxu0 %vm275_vm0, %v10117_v61 }
  0xad   : > { %8022 = vmatprep.mubr.msk.f32.mxu0 %vm275_vm0, %v10123_v46  ;;  %v10174_v29 = vsel %vm1130_vm3, %v1166_v31, %v1167_v23  ;;  %v10185_v42 = vsel %vm1130_vm3, %v1167_v23, %v1169_v48  ;;  %v1176_v31 = vrot.slane %v9853_v33, 2  ;;  %v1179_v23 = vrot.slane %v9874_v27, 2 }
  0xae   : > { %8078 = vmatmul.mubr.msk.f32.gmra.mxu1 %vm275_vm0, %v9723_v35  ;;  %13929 = vst [vmem:[#allocation78_spill] sm:$0xff] %v10174_v29  ;;  %13930 = vst [vmem:[#allocation79_spill] sm:$0xff] %v10185_v42 }
  0xaf   : > { %8080 = vmatprep.mubr.msk.f32.mxu1 %vm275_vm0, %v9756_v60  ;;  %v1172_v60 = vrot.slane %v9826_v38, 2 }
  0xb0   : > { %8023 = vmatmul.mubr.msk.f32.gmra.mxu0 %vm275_vm0, %v10134_v7 }
  0xb1   : > { %8025 = vmatprep.mubr.msk.f32.mxu0 %vm275_vm0, %v10140_v16  ;;  %v10191_v44 = vsel %vm1130_vm3, %v1171_v6, %v1172_v60  ;;  %v10202_v37 = vsel %vm1130_vm3, %v1172_v60, %v1174_v8  ;;  %v1181_v6 = vrot.slane %v9876_v28, 2  ;;  %v1184_v60 = vrot.slane %v9897_v24, 2 }
  0xb2   : > { %8081 = vmatmul.mubr.msk.f32.gmra.mxu1 %vm275_vm0, %v9780_v53  ;;  %13931 = vst [vmem:[#allocation80_spill] sm:$0xff] %v10191_v44  ;;  %13932 = vst [vmem:[#allocation81_spill] sm:$0xff] %v10202_v37 }
  0xb3   : > { %8083 = vmatprep.mubr.msk.f32.mxu1 %vm275_vm0, %v9824_v45  ;;  %v1177_v45 = vrot.slane %v9855_v51, 2 }
  0xb4   : > { %8026 = vmatmul.mubr.msk.f32.gmra.mxu0 %vm275_vm0, %v10151_v22 }
  0xb5   : > { %8028 = vmatprep.mubr.msk.f32.mxu0 %vm275_vm0, %v10157_v15  ;;  %v10208_v48 = vsel %vm1130_vm3, %v1176_v31, %v1177_v45  ;;  %v10219_v27 = vsel %vm1130_vm3, %v1177_v45, %v1179_v23  ;;  %v1186_v31 = vrot.slane %v9899_v19, 2  ;;  %v1189_v45 = vrot.slane %v9920_v11, 2 }
  0xb6   : > { %8084 = vmatmul.mubr.msk.f32.gmra.mxu1 %vm275_vm0, %v9826_v38  ;;  %13933 = vst [vmem:[#allocation82_spill] sm:$0xff] %v10208_v48  ;;  %13934 = vst [vmem:[#allocation83_spill] sm:$0xff] %v10219_v27 }
  0xb7   : > { %8086 = vmatprep.mubr.msk.f32.mxu1 %vm275_vm0, %v9853_v33  ;;  %v1182_v33 = vrot.slane %v9878_v25, 2 }
  0xb8   : > { %8029 = vmatmul.mubr.msk.f32.gmra.mxu0 %vm275_vm0, %v10168_v63 }
  0xb9   : > { %8031 = vmatprep.mubr.msk.f32.mxu0 %vm275_vm0, %v10174_v29  ;;  %v10225_v8 = vsel %vm1130_vm3, %v1181_v6, %v1182_v33  ;;  %v10236_v24 = vsel %vm1130_vm3, %v1182_v33, %v1184_v60  ;;  %v1191_v6 = vrot.slane %v9922_v14, 2  ;;  %v1194_v33 = vrot.slane %v9943_v34, 2 }
  0xba   : > { %8087 = vmatmul.mubr.msk.f32.gmra.mxu1 %vm275_vm0, %v9855_v51  ;;  %13935 = vst [vmem:[#allocation84_spill] sm:$0xff] %v10225_v8  ;;  %13936 = vst [vmem:[#allocation85_spill] sm:$0xff] %v10236_v24  ;;  %v1199_v34 = vrot.slane %v9966_v0, 2  ;;  %v1204_v0 = vrot.slane %v9989_v12, 2  ;;  %v1209_v12 = vrot.slane %v10012_v10, 2  ;;  %v6926_v10 = vld [vmem:[%s13668_s1 + $0x70] sm:$0xff] }
  0xbb   : > { %8089 = vmatprep.mubr.msk.f32.mxu1 %vm275_vm0, %v9876_v28  ;;  %v1187_v28 = vrot.slane %v9901_v20, 2 }
  0xbc   : > { %8032 = vmatmul.mubr.msk.f32.gmra.mxu0 %vm275_vm0, %v10185_v42 }
  0xbd   : > { %8034 = vmatprep.mubr.msk.f32.mxu0 %vm275_vm0, %v10191_v44  ;;  %v10242_v23 = vsel %vm1130_vm3, %v1186_v31, %v1187_v28  ;;  %v10253_v11 = vsel %vm1130_vm3, %v1187_v28, %v1189_v45  ;;  %v1196_v31 = vrot.slane %v9945_v40, 2 }
  0xbe   : > { %8090 = vmatmul.mubr.msk.f32.gmra.mxu1 %vm275_vm0, %v9878_v25  ;;  %13937 = vst [vmem:[#allocation86_spill] sm:$0xff] %v10242_v23  ;;  %13938 = vst [vmem:[#allocation87_spill] sm:$0xff] %v10253_v11 }
  0xbf   : > { %8092 = vmatprep.mubr.msk.f32.mxu1 %vm275_vm0, %v9899_v19  ;;  %v1192_v19 = vrot.slane %v9924_v49, 2 }
  0xc0   : > { %8035 = vmatmul.mubr.msk.f32.gmra.mxu0 %vm275_vm0, %v10202_v37 }
  0xc1   : > { %8037 = vmatprep.mubr.msk.f32.mxu0 %vm275_vm0, %v10208_v48  ;;  %v10259_v60 = vsel %vm1130_vm3, %v1191_v6, %v1192_v19  ;;  %v10270_v28 = vsel %vm1130_vm3, %v1192_v19, %v1194_v33  ;;  %v1201_v6 = vrot.slane %v9968_v5, 2 }
  0xc2   : > { %8093 = vmatmul.mubr.msk.f32.gmra.mxu1 %vm275_vm0, %v9901_v20  ;;  %13939 = vst [vmem:[#allocation88_spill] sm:$0xff] %v10259_v60  ;;  %13940 = vst [vmem:[#allocation89_spill] sm:$0xff] %v10270_v28 }
  0xc3   : > { %8095 = vmatprep.mubr.msk.f32.mxu1 %vm275_vm0, %v9922_v14  ;;  %v1197_v14 = vrot.slane %v9947_v3, 2 }
  0xc4   : > { %8038 = vmatmul.mubr.msk.f32.gmra.mxu0 %vm275_vm0, %v10219_v27 }
  0xc5   : > { %8040 = vmatprep.mubr.msk.f32.mxu0 %vm275_vm0, %v10225_v8  ;;  %v10276_v45 = vsel %vm1130_vm3, %v1196_v31, %v1197_v14  ;;  %v10287_v19 = vsel %vm1130_vm3, %v1197_v14, %v1199_v34  ;;  %v1206_v31 = vrot.slane %v9991_v54, 2  ;;  %v10311_v34 = vld [vmem:[#allocation2 + $0x188] sm:$0xff] }
  0xc6   : > { %8096 = vmatmul.mubr.msk.f32.gmra.mxu1 %vm275_vm0, %v9924_v49  ;;  %13941 = vst [vmem:[#allocation90_spill] sm:$0xff] %v10276_v45  ;;  %13942 = vst [vmem:[#allocation91_spill] sm:$0xff] %v10287_v19 }
  0xc7   : > { %8098 = vmatprep.mubr.msk.f32.mxu1 %vm275_vm0, %v9945_v40  ;;  %v1202_v40 = vrot.slane %v9970_v43, 2 }
  0xc8   : > { %8041 = vmatmul.mubr.msk.f32.gmra.mxu0 %vm275_vm0, %v10236_v24 }
  0xc9   : > { %8043 = vmatprep.mubr.msk.f32.mxu0 %vm275_vm0, %v10242_v23  ;;  %v10293_v33 = vsel %vm1130_vm3, %v1201_v6, %v1202_v40  ;;  %v10306_v14 = vsel %vm1130_vm3, %v1202_v40, %v1204_v0  ;;  %v13952_v0 = vld [vmem:[#allocation51_spill] sm:$0xff] }
  0xca   : > { %8099 = vmatmul.mubr.msk.f32.gmra.mxu1 %vm275_vm0, %v9947_v3  ;;  %13943 = vst [vmem:[#allocation92_spill] sm:$0xff] %v10293_v33  ;;  %v10297_v3 = vld [vmem:[#allocation2 + $0x180] sm:$0xff]  ;;  %13944 = vst [vmem:[#allocation93_spill] sm:$0xff] %v10306_v14 }
  0xcb   : > { %8101 = vmatprep.mubr.msk.f32.mxu1 %vm275_vm0, %v9968_v5  ;;  %v1207_v5 = vrot.slane %v9993_v36, 2 }
  0xcc   : > { %8044 = vmatmul.mubr.msk.f32.gmra.mxu0 %vm275_vm0, %v10253_v11 }
  0xcd   : > { %8046 = vmatprep.mubr.msk.f32.mxu0 %vm275_vm0, %v10259_v60  ;;  %v10314_v6 = vsel %vm1130_vm3, %v1206_v31, %v1207_v5  ;;  %v10323_v40 = vsel %vm1130_vm3, %v1207_v5, %v1209_v12  ;;  %v6892_v5 = vld [vmem:[%s13668_s1 + $0x60] sm:$0xff]  ;;  %v13953_v31 = vld [vmem:[#allocation53_spill] sm:$0xff] }
  0xce   : > { %8102 = vmatmul.mubr.msk.f32.gmra.mxu1 %vm275_vm0, %v9970_v43  ;;  %13945 = vst [vmem:[#allocation94_spill] sm:$0xff] %v10314_v6  ;;  %13946 = vst [vmem:[#allocation95_spill] sm:$0xff] %v10323_v40  ;;  %v13954_v12 = vld [vmem:[#allocation54_spill] sm:$0xff] }
  0xcf   : > { %8104 = vmatprep.mubr.msk.f32.mxu1 %vm275_vm0, %v9991_v54 }
  0xd0   : > { %8047 = vmatmul.mubr.msk.f32.gmra.mxu0 %vm275_vm0, %v10270_v28 }
  0xd1   : > { %8049 = vmatprep.mubr.msk.f32.mxu0 %vm275_vm0, %v10276_v45 }
  0xd2   : > { %8105 = vmatmul.mubr.msk.f32.gmra.mxu1 %vm275_vm0, %v9993_v36 }
  0xd3   : > { %8107 = vmatprep.mubr.msk.f32.mxu1 %vm275_vm0, %v10297_v3 }
  0xd4   : > { %8050 = vmatmul.mubr.msk.f32.gmra.mxu0 %vm275_vm0, %v10287_v19 }
  0xd5   : > { %8052 = vmatprep.mubr.msk.f32.mxu0 %vm275_vm0, %v10293_v33 }
  0xd6   : > { %8108 = vmatmul.mubr.msk.f32.gmra.mxu1 %vm275_vm0, %v10311_v34 }
  0xd7   : > { %8166 = vmatprep.mubr.msk.f32.mxu1 %vm275_vm0, %v10055_v41  ;;  %v13948_v41 = vld [vmem:[#allocation36_spill] sm:$0xff] }
  0xd8   : > { %8053 = vmatmul.mubr.msk.f32.gmra.mxu0 %vm275_vm0, %v10306_v14 }
  0xd9   : > { %8055 = vmatprep.mubr.msk.f32.mxu0 %vm275_vm0, %v10314_v6 }
  0xda   : > { %8167 = vmatmul.mubr.msk.f32.vlgmr.msra.gmra.mxu1 %vm275_vm0, %v10071_v30  ;;  %v13949_v30 = vld [vmem:[#allocation43_spill] sm:$0xff] }
  0xdb   : > { %8169 = vmatprep.mubr.msk.f32.mxu1 %vm275_vm0, %v10075_v18  ;;  %8267 = vmatpush3.msra.mxu1 %v10089_v52  ;;  %v13951_v52 = vld [vmem:[#allocation50_spill] sm:$0xff] }
  0xdc   : > { %8056 = vmatmul.mubr.msk.f32.gmra.mxu0 %vm275_vm0, %v10323_v40  ;;  %8268 = vmatprep.subr.mxu1 %v6926_v10 }
  0xdd   : > { %8114 = vmatprep.mubr.msk.f32.mxu0 %vm275_vm0, %v9661_v57  ;;  %v10354_v57 = vld [vmem:[%s13668_s1 + $0x88] sm:$0xff]  ;;  %8269 = vmatpush3.msra.mxu1 %v6926_v10  ;;  %v13955_v10 = vld [vmem:[#allocation56_spill] sm:$0xff] }
  0xde   : > { %8170 = vmatmul.mubr.msk.f32.gmra.mxu1 %vm275_vm0, %v10098_v13 }
  0xdf   : > { %8172 = vmatprep.mubr.msk.f32.mxu1 %vm275_vm0, %v10104_v39 }
  0xe0   : > { %8115 = vmatmul.mubr.msk.f32.vlgmr.msra.gmra.mxu0 %vm275_vm0, %v9664_v58  ;;  %v13947_v58 = vld [vmem:[#allocation35_spill] sm:$0xff] }
  0xe1   : > { %8215 = vmatpush3.msra.mxu0 %v10084_v17  ;;  %8117 = vmatprep.mubr.msk.f32.mxu0 %vm275_vm0, %v9673_v62  ;;  %v13950_v17 = vld [vmem:[#allocation47_spill] sm:$0xff] }
  0xe2   : > { %8216 = vmatprep.subr.mxu0 %v6892_v5  ;;  %8173 = vmatmul.mubr.msk.f32.gmra.mxu1 %vm275_vm0, %v10117_v61 }
  0xe3   : > { %8217 = vmatpush3.msra.mxu0 %v6892_v5  ;;  %8175 = vmatprep.mubr.msk.f32.mxu1 %vm275_vm0, %v10123_v46  ;;  %v13956_v5 = vld [vmem:[#allocation57_spill] sm:$0xff] }
  0xe4   : > { %8118 = vmatmul.mubr.msk.f32.gmra.mxu0 %vm275_vm0, %v9686_v2  ;;  %8318 = vmatprep.subr.mxu0 %v10354_v57 }
  0xe5   : > { %8120 = vmatprep.mubr.msk.f32.mxu0 %vm275_vm0, %v9692_v4 }
  0xe6   : > { %8176 = vmatmul.mubr.msk.f32.gmra.mxu1 %vm275_vm0, %v10134_v7 }
  0xe7   : > { %8178 = vmatprep.mubr.msk.f32.mxu1 %vm275_vm0, %v10140_v16 }
  0xe8   : > { %8121 = vmatmul.mubr.msk.f32.gmra.mxu0 %vm275_vm0, %v13947_v58 }
  0xe9   : > { %8123 = vmatprep.mubr.msk.f32.mxu0 %vm275_vm0, %v13948_v41 }
  0xea   : > { %8179 = vmatmul.mubr.msk.f32.gmra.mxu1 %vm275_vm0, %v10151_v22 }
  0xeb   : > { %8181 = vmatprep.mubr.msk.f32.mxu1 %vm275_vm0, %v10157_v15 }
  0xec   : > { %8124 = vmatmul.mubr.msk.f32.gmra.mxu0 %vm275_vm0, %v13949_v30 }
  0xed   : > { %8126 = vmatprep.mubr.msk.f32.mxu0 %vm275_vm0, %v13950_v17 }
  0xee   : > { %8182 = vmatmul.mubr.msk.f32.gmra.mxu1 %vm275_vm0, %v10168_v63 }
  0xef   : > { %8184 = vmatprep.mubr.msk.f32.mxu1 %vm275_vm0, %v10174_v29  ;;  %v13957_v29 = vld [vmem:[#allocation59_spill] sm:$0xff] }
  0xf0   : > { %8127 = vmatmul.mubr.msk.f32.gmra.mxu0 %vm275_vm0, %v13951_v52 }
  0xf1   : > { %8129 = vmatprep.mubr.msk.f32.mxu0 %vm275_vm0, %v13952_v0 }
  0xf2   : > { %8185 = vmatmul.mubr.msk.f32.gmra.mxu1 %vm275_vm0, %v10185_v42  ;;  %v13958_v42 = vld [vmem:[#allocation60_spill] sm:$0xff] }
  0xf3   : > { %8187 = vmatprep.mubr.msk.f32.mxu1 %vm275_vm0, %v10191_v44  ;;  %v13959_v44 = vld [vmem:[#allocation62_spill] sm:$0xff] }
  0xf4   : > { %8130 = vmatmul.mubr.msk.f32.gmra.mxu0 %vm275_vm0, %v13953_v31 }
  0xf5   : > { %8132 = vmatprep.mubr.msk.f32.mxu0 %vm275_vm0, %v13954_v12 }
  0xf6   : > { %8188 = vmatmul.mubr.msk.f32.gmra.mxu1 %vm275_vm0, %v10202_v37  ;;  %v13960_v37 = vld [vmem:[#allocation63_spill] sm:$0xff] }
  0xf7   : > { %8190 = vmatprep.mubr.msk.f32.mxu1 %vm275_vm0, %v10208_v48  ;;  %v13961_v48 = vld [vmem:[#allocation65_spill] sm:$0xff] }
  0xf8   : > { %8133 = vmatmul.mubr.msk.f32.gmra.mxu0 %vm275_vm0, %v13955_v10 }
  0xf9   : > { %8135 = vmatprep.mubr.msk.f32.mxu0 %vm275_vm0, %v13956_v5 }
  0xfa   : > { %8191 = vmatmul.mubr.msk.f32.gmra.mxu1 %vm275_vm0, %v10219_v27  ;;  %v13962_v27 = vld [vmem:[#allocation66_spill] sm:$0xff] }
  0xfb   : > { %8193 = vmatprep.mubr.msk.f32.mxu1 %vm275_vm0, %v10225_v8  ;;  %v13963_v8 = vld [vmem:[#allocation69_spill] sm:$0xff] }
  0xfc   : > { %8136 = vmatmul.mubr.msk.f32.gmra.mxu0 %vm275_vm0, %v13957_v29 }
  0xfd   : > { %8138 = vmatprep.mubr.msk.f32.mxu0 %vm275_vm0, %v13958_v42 }
  0xfe   : > { %8194 = vmatmul.mubr.msk.f32.gmra.mxu1 %vm275_vm0, %v10236_v24  ;;  %v13964_v24 = vld [vmem:[#allocation70_spill] sm:$0xff] }
  0xff   : > { %8196 = vmatprep.mubr.msk.f32.mxu1 %vm275_vm0, %v10242_v23  ;;  %v13965_v23 = vld [vmem:[#allocation72_spill] sm:$0xff] }
 0x100   : > { %8139 = vmatmul.mubr.msk.f32.gmra.mxu0 %vm275_vm0, %v13959_v44 }
 0x101   : > { %8141 = vmatprep.mubr.msk.f32.mxu0 %vm275_vm0, %v13960_v37 }
 0x102   : > { %8197 = vmatmul.mubr.msk.f32.gmra.mxu1 %vm275_vm0, %v10253_v11  ;;  %v1803_v11 = vrot.slane %v10311_v34, 1 }
 0x103   : > { %8199 = vmatprep.mubr.msk.f32.mxu1 %vm275_vm0, %v10259_v60  ;;  %v2072_v60 = vrot.slane %v10311_v34, 2 }
 0x104   : > { %8142 = vmatmul.mubr.msk.f32.gmra.mxu0 %vm275_vm0, %v13961_v48 }
 0x105   : > { %8144 = vmatprep.mubr.msk.f32.mxu0 %vm275_vm0, %v13962_v27 }
 0x106   : > { %8200 = vmatmul.mubr.msk.f32.gmra.mxu1 %vm275_vm0, %v10270_v28  ;;  %v2071_v28 = vrot.slane %v10297_v3, 2 }
 0x107   : > { %8202 = vmatprep.mubr.msk.f32.mxu1 %vm275_vm0, %v10276_v45  ;;  %v414_v45 = vld [vmem:[#allocation2 + $0x190] sm:$0x3] }
 0x108   : > { %8145 = vmatmul.mubr.msk.f32.gmra.mxu0 %vm275_vm0, %v13963_v8  ;;  %v10458_v63 = vsel %vm1130_vm3, %v2071_v28, %v2072_v60  ;;  %v1805_v15 = vrot.slane %v414_v45, 1  ;;  %v13968_v28 = vld [vmem:[#allocation74_spill] sm:$0xff] }
 0x109   : > { %8147 = vmatprep.mubr.msk.f32.mxu0 %vm275_vm0, %v13964_v24  ;;  %13966 = vst [vmem:[#allocation35_spill] sm:$0xff] %v10458_v63 }
 0x10a   : > { %8203 = vmatmul.mubr.msk.f32.gmra.mxu1 %vm275_vm0, %v10287_v19  ;;  %v2074_v19 = vrot.slane %v414_v45, 2  ;;  %v10481_v45 = vsel %vm468_vm2, %v1803_v11, %v1805_v15 }
 0x10b   : > { %8205 = vmatprep.mubr.msk.f32.mxu1 %vm275_vm0, %v10293_v33  ;;  %v1802_v33 = vrot.slane %v10297_v3, 1 }
 0x10c   : > { %8148 = vmatmul.mubr.msk.f32.gmra.mxu0 %vm275_vm0, %v13965_v23 }
 0x10d   : > { %8150 = vmatprep.mubr.msk.f32.mxu0 %vm275_vm0, %v9985_v32  ;;  %v10472_v22 = vsel %vm468_vm2, %v1802_v33, %v1803_v11 }
 0x10e   : > { %8206 = vmatmul.mubr.msk.f32.gmra.mxu1 %vm275_vm0, %v10306_v14  ;;  %v13967_v14 = vld [vmem:[#allocation73_spill] sm:$0xff] }
 0x10f   : > { %8208 = vmatprep.mubr.msk.f32.mxu1 %vm275_vm0, %v10314_v6  ;;  %v10469_v6 = vsel %vm1130_vm3, %v2072_v60, %v2074_v19  ;;  %v7960_v19 = vpop.f32.mrf.mxu1 }
 0x110   : > { %8151 = vmatmul.mubr.msk.f32.gmra.mxu0 %vm275_vm0, %v10002_v59 }
 0x111   : > { %8153 = vmatprep.mubr.msk.f32.mxu0 %vm275_vm0, %v10008_v21 }
 0x112   : > { %8209 = vmatmul.mubr.msk.f32.gmra.mxu1 %vm275_vm0, %v10323_v40  ;;  %v971_v40 = vpop.f32.mrf.mxu1 }
 0x113   : > { %8211 = vmatprep.mubr.msk.f32.mxu1 %vm275_vm0, %v10458_v63 }
 0x114   : > { %8154 = vmatmul.mubr.msk.f32.gmra.mxu0 %vm275_vm0, %v10021_v26 }
 0x115   : > { %8156 = vmatprep.mubr.msk.f32.mxu0 %vm275_vm0, %v13967_v14 }
 0x116   : > { %8212 = vmatmul.mubr.msk.f32.gmra.mxu1 %vm275_vm0, %v10469_v6  ;;  %v7908_v60 = vpop.f32.mrf.mxu0 }
 0x117   : > { %8270 = vmatprep.mubr.msk.f32.mxu1 %vm275_vm0, %v9673_v62  ;;  %v10485_v63 = vadd.f32 %v7960_v19, %v7908_v60  ;;  %v6960_v62 = vld [vmem:[%s13668_s1 + $0x80] sm:$0xff] }
 0x118   : > { %8157 = vmatmul.mubr.msk.f32.gmra.mxu0 %vm275_vm0, %v13968_v28  ;;  %v682_v33 = vpop.f32.mrf.mxu0  ;;  %v13970_v60 = vld [vmem:[#allocation34_spill] sm:$0xff] }
 0x119   : > { %8159 = vmatprep.mubr.msk.f32.mxu0 %vm275_vm0, %v10472_v22  ;;  %v10493_v15 = vadd.f32 %v971_v40, %v682_v33  ;;  %v13969_v40 = vld [vmem:[#allocation33_spill] sm:$0xff] }
 0x11a   : > { %8271 = vmatmul.mubr.msk.f32.vlgmr.msra.gmra.mxu1 %vm275_vm0, %v9686_v2 }
 0x11b   : > { %8273 = vmatprep.mubr.msk.f32.mxu1 %vm275_vm0, %v9692_v4 }
 0x11c   : > { %8160 = vmatmul.mubr.msk.f32.gmra.mxu0 %vm275_vm0, %v10481_v45 }
 0x11d   : > { %8218 = vmatprep.mubr.msk.f32.mxu0 %vm275_vm0, %v9637_v47 }
 0x11e   : > { %v7963_v11 = vpop.f32.mrf.mxu1  ;;  %8274 = vmatmul.mubr.msk.f32.gmra.mxu1 %vm275_vm0, %v13947_v58 }
 0x11f   : > { %8276 = vmatprep.mubr.msk.f32.mxu1 %vm275_vm0, %v13948_v41 }
 0x120   : > { %8219 = vmatmul.mubr.msk.f32.vlgmr.msra.gmra.mxu0 %vm275_vm0, %v9647_v50  ;;  %v981_v47 = vpop.f32.mrf.mxu1 }
 0x121   : > { %8319 = vmatpush3.msra.mxu0 %v10354_v57  ;;  %8221 = vmatprep.mubr.msk.f32.mxu0 %vm275_vm0, %v9656_v55 }
 0x122   : > { %8320 = vmatprep.subr.mxu0 %v6960_v62  ;;  %v7911_v2 = vpop.f32.mrf.mxu0  ;;  %v7966_v50 = vpop.f32.mrf.mxu1  ;;  %8277 = vmatmul.mubr.msk.f32.gmra.mxu1 %vm275_vm0, %v13949_v30 }
 0x123   : > { %8321 = vmatpush3.msra.mxu0 %v6960_v62  ;;  %v10513_v4 = vadd.f32 %v7963_v11, %v7911_v2  ;;  %8279 = vmatprep.mubr.msk.f32.mxu1 %vm275_vm0, %v13950_v17  ;;  %v13971_v11 = vld [vmem:[#allocation37_spill] sm:$0xff] }
 0x124   : > { %8222 = vmatmul.mubr.msk.f32.gmra.mxu0 %vm275_vm0, %v9658_v56  ;;  %v692_v55 = vpop.f32.mrf.mxu0  ;;  %v991_v57 = vpop.f32.mrf.mxu1 }
 0x125   : > { %8224 = vmatprep.mubr.msk.f32.mxu0 %vm275_vm0, %v13969_v40  ;;  %v10519_v58 = vadd.f32 %v981_v47, %v692_v55  ;;  %v13972_v40 = vld [vmem:[#allocation44_spill] sm:$0xff] }
 0x126   : > { %v7914_v41 = vpop.f32.mrf.mxu0  ;;  %v7969_v56 = vpop.f32.mrf.mxu1  ;;  %8280 = vmatmul.mubr.msk.f32.gmra.mxu1 %vm275_vm0, %v13951_v52 }
 0x127   : > { %v10525_v30 = vadd.f32 %v7966_v50, %v7914_v41  ;;  %8282 = vmatprep.mubr.msk.f32.mxu1 %vm275_vm0, %v13952_v0 }
 0x128   : > { %8225 = vmatmul.mubr.msk.f32.gmra.mxu0 %vm275_vm0, %v9677_v1  ;;  %v702_v17 = vpop.f32.mrf.mxu0  ;;  %v1001_v19 = vpop.f32.mrf.mxu1 }
 0x129   : > { %8227 = vmatprep.mubr.msk.f32.mxu0 %vm275_vm0, %v13970_v60  ;;  %v10531_v33 = vadd.f32 %v991_v57, %v702_v17 }
 0x12a   : > { %v7917_v62 = vpop.f32.mrf.mxu0  ;;  %v7972_v1 = vpop.f32.mrf.mxu1  ;;  %8283 = vmatmul.mubr.msk.f32.gmra.mxu1 %vm275_vm0, %v13953_v31 }
 0x12b   : > { %v10537_v52 = vadd.f32 %v7969_v56, %v7917_v62  ;;  %8285 = vmatprep.mubr.msk.f32.mxu1 %vm275_vm0, %v13954_v12  ;;  %v13973_v56 = vld [vmem:[#allocation52_spill] sm:$0xff]  ;;  %v13974_v62 = vld [vmem:[#allocation55_spill] sm:$0xff] }
 0x12c   : > { %8228 = vmatmul.mubr.msk.f32.gmra.mxu0 %vm275_vm0, %v9700_v9  ;;  %v712_v0 = vpop.f32.mrf.mxu0  ;;  %v1011_v47 = vpop.f32.mrf.mxu1 }
 0x12d   : > { %8230 = vmatprep.mubr.msk.f32.mxu0 %vm275_vm0, %v13971_v11  ;;  %v10543_v2 = vadd.f32 %v1001_v19, %v712_v0 }
 0x12e   : > { %v7920_v50 = vpop.f32.mrf.mxu0  ;;  %v7975_v9 = vpop.f32.mrf.mxu1  ;;  %8286 = vmatmul.mubr.msk.f32.gmra.mxu1 %vm275_vm0, %v13955_v10 }
 0x12f   : > { %v10549_v31 = vadd.f32 %v7972_v1, %v7920_v50  ;;  %8288 = vmatprep.mubr.msk.f32.mxu1 %vm275_vm0, %v13956_v5 }
 0x130   : > { %8231 = vmatmul.mubr.msk.f32.gmra.mxu0 %vm275_vm0, %v9723_v35  ;;  %v722_v12 = vpop.f32.mrf.mxu0  ;;  %v1021_v55 = vpop.f32.mrf.mxu1 }
 0x131   : > { %8233 = vmatprep.mubr.msk.f32.mxu0 %vm275_vm0, %v13972_v40  ;;  %v10555_v57 = vadd.f32 %v1011_v47, %v722_v12  ;;  %v13975_v47 = vld [vmem:[#allocation58_spill] sm:$0xff]  ;;  %v13976_v12 = vld [vmem:[#allocation61_spill] sm:$0xff] }
 0x132   : > { %v7923_v41 = vpop.f32.mrf.mxu0  ;;  %v7978_v35 = vpop.f32.mrf.mxu1  ;;  %8289 = vmatmul.mubr.msk.f32.gmra.mxu1 %vm275_vm0, %v13957_v29 }
 0x133   : > { %v10561_v10 = vadd.f32 %v7975_v9, %v7923_v41  ;;  %8291 = vmatprep.mubr.msk.f32.mxu1 %vm275_vm0, %v13958_v42 }
 0x134   : > { %8234 = vmatmul.mubr.msk.f32.gmra.mxu0 %vm275_vm0, %v9780_v53  ;;  %v732_v5 = vpop.f32.mrf.mxu0  ;;  %v1031_v60 = vpop.f32.mrf.mxu1 }
 0x135   : > { %8236 = vmatprep.mubr.msk.f32.mxu0 %vm275_vm0, %v13973_v56  ;;  %v10567_v17 = vadd.f32 %v1021_v55, %v732_v5 }
 0x136   : > { %v7981_v53 = vpop.f32.mrf.mxu1  ;;  %8292 = vmatmul.mubr.msk.f32.gmra.mxu1 %vm275_vm0, %v13959_v44 }
 0x137   : > { %8294 = vmatprep.mubr.msk.f32.mxu1 %vm275_vm0, %v13960_v37 }
 0x138   : > { %v7926_v19 = vpop.f32.mrf.mxu0  ;;  %8237 = vmatmul.mubr.msk.f32.gmra.mxu0 %vm275_vm0, %v9826_v38  ;;  %v1041_v1 = vpop.f32.mrf.mxu1 }
 0x139   : > { %v10573_v29 = vadd.f32 %v7978_v35, %v7926_v19  ;;  %8239 = vmatprep.mubr.msk.f32.mxu0 %vm275_vm0, %v13974_v62  ;;  %v13977_v35 = vld [vmem:[#allocation64_spill] sm:$0xff]  ;;  %v10639_v62 = vld [vmem:[#allocation2 + $0x1a0] sm:$0xff] }
 0x13a   : > { %v742_v42 = vpop.f32.mrf.mxu0  ;;  %v7984_v38 = vpop.f32.mrf.mxu1  ;;  %8295 = vmatmul.mubr.msk.f32.gmra.mxu1 %vm275_vm0, %v13961_v48 }
 0x13b   : > { %v10579_v11 = vadd.f32 %v1031_v60, %v742_v42  ;;  %8297 = vmatprep.mubr.msk.f32.mxu1 %vm275_vm0, %v13962_v27  ;;  %v13978_v60 = vld [vmem:[#allocation67_spill] sm:$0xff]  ;;  %v13979_v42 = vld [vmem:[#allocation68_spill] sm:$0xff] }
 0x13c   : > { %v7929_v0 = vpop.f32.mrf.mxu0  ;;  %8240 = vmatmul.mubr.msk.f32.gmra.mxu0 %vm275_vm0, %v9855_v51  ;;  %v10591_v50 = vpop.f32.mrf.mxu1 }
 0x13d   : > { %v10585_v44 = vadd.f32 %v7981_v53, %v7929_v0  ;;  %8242 = vmatprep.mubr.msk.f32.mxu0 %vm275_vm0, %v13975_v47  ;;  %v10637_v53 = vld [vmem:[#allocation2 + $0x198] sm:$0xff]  ;;  %v13980_v0 = vld [vmem:[#allocation71_spill] sm:$0xff] }
 0x13e   : > { %v752_v37 = vpop.f32.mrf.mxu0  ;;  %v7987_v51 = vpop.f32.mrf.mxu1  ;;  %8298 = vmatmul.mubr.msk.f32.gmra.mxu1 %vm275_vm0, %v13963_v8  ;;  %v2607_v47 = vrot.slane %v10637_v53, 1 }
 0x13f   : > { %v10593_v9 = vadd.f32 %v1041_v1, %v752_v37  ;;  %8300 = vmatprep.mubr.msk.f32.mxu1 %vm275_vm0, %v13964_v24  ;;  %v2608_v37 = vrot.slane %v10639_v62, 1 }
 0x140   : > { %v7932_v40 = vpop.f32.mrf.mxu0  ;;  %8243 = vmatmul.mubr.msk.f32.gmra.mxu0 %vm275_vm0, %v9878_v25  ;;  %v10607_v55 = vpop.f32.mrf.mxu1 }
 0x141   : > { %v10599_v48 = vadd.f32 %v7984_v38, %v7932_v40  ;;  %8245 = vmatprep.mubr.msk.f32.mxu0 %vm275_vm0, %v13976_v12  ;;  %v10657_v40 = vld [vmem:[#allocation2 + $0x1a8] sm:$0x3] }
 0x142   : > { %v10605_v27 = vpop.f32.mrf.mxu0  ;;  %v7990_v25 = vpop.f32.mrf.mxu1  ;;  %8301 = vmatmul.mubr.msk.f32.gmra.mxu1 %vm275_vm0, %v13965_v23 }
 0x143   : > { %8303 = vmatprep.mubr.msk.f32.mxu1 %vm275_vm0, %v9985_v32 }
 0x144   : > { %v7935_v41 = vpop.f32.mrf.mxu0  ;;  %8246 = vmatmul.mubr.msk.f32.gmra.mxu0 %vm275_vm0, %v9901_v20  ;;  %v10621_v56 = vpop.f32.mrf.mxu1 }
 0x145   : > { %v10613_v8 = vadd.f32 %v7987_v51, %v7935_v41  ;;  %8248 = vmatprep.mubr.msk.f32.mxu0 %vm275_vm0, %v13977_v35 }
 0x146   : > { %v10619_v24 = vpop.f32.mrf.mxu0  ;;  %v7993_v20 = vpop.f32.mrf.mxu1  ;;  %8304 = vmatmul.mubr.msk.f32.gmra.mxu1 %vm275_vm0, %v10002_v59 }
 0x147   : > { %8306 = vmatprep.mubr.msk.f32.mxu1 %vm275_vm0, %v10008_v21 }
 0x148   : > { %v7938_v5 = vpop.f32.mrf.mxu0  ;;  %8249 = vmatmul.mubr.msk.f32.gmra.mxu0 %vm275_vm0, %v9924_v49  ;;  %v10635_v19 = vpop.f32.mrf.mxu1 }
 0x149   : > { %v10627_v23 = vadd.f32 %v7990_v25, %v7938_v5  ;;  %8251 = vmatprep.mubr.msk.f32.mxu0 %vm275_vm0, %v13978_v60 }
 0x14a   : > { %v10633_v32 = vpop.f32.mrf.mxu0  ;;  %v7996_v59 = vpop.f32.mrf.mxu1  ;;  %8307 = vmatmul.mubr.msk.f32.gmra.mxu1 %vm275_vm0, %v10021_v26 }
 0x14b   : > { %8309 = vmatprep.mubr.msk.f32.mxu1 %vm275_vm0, %v13967_v14  ;;  %v2610_v14 = vrot.slane %v10657_v40, 1 }
 0x14c   : > { %v7941_v49 = vpop.f32.mrf.mxu0  ;;  %8252 = vmatmul.mubr.msk.f32.gmra.mxu0 %vm275_vm0, %v13979_v42  ;;  %v10653_v38 = vpop.f32.mrf.mxu1 }
 0x14d   : > { %v10645_v1 = vadd.f32 %v7993_v20, %v7941_v49  ;;  %8254 = vmatprep.mubr.msk.f32.mxu0 %vm275_vm0, %v13980_v0 }
 0x14e   : > { %v10651_v21 = vpop.f32.mrf.mxu0  ;;  %v7999_v26 = vpop.f32.mrf.mxu1  ;;  %8310 = vmatmul.mubr.msk.f32.gmra.mxu1 %vm275_vm0, %v13968_v28 }
 0x14f   : > { %8312 = vmatprep.mubr.msk.f32.mxu1 %vm275_vm0, %v10472_v22  ;;  %v2611_v22 = vsel %vm468_vm2, %v2608_v37, %v2610_v14 }
 0x150   : > { %v7944_v51 = vpop.f32.mrf.mxu0  ;;  %8255 = vmatmul.mubr.msk.f32.gmra.mxu0 %vm275_vm0, %v9970_v43  ;;  %v10672_v25 = vpop.f32.mrf.mxu1  ;;  %v2609_v43 = vsel %vm468_vm2, %v2607_v47, %v2608_v37 }
 0x151   : > { %v10663_v12 = vadd.f32 %v7996_v59, %v7944_v51  ;;  %8257 = vmatprep.mubr.msk.f32.mxu0 %vm275_vm0, %v9991_v54 }
 0x152   : > { %v10670_v41 = vpop.f32.mrf.mxu0  ;;  %v8002_v28 = vpop.f32.mrf.mxu1  ;;  %8313 = vmatmul.mubr.msk.f32.gmra.mxu1 %vm275_vm0, %v10481_v45 }
 0x153   : > { %8315 = vmatprep.mubr.msk.f32.mxu1 %vm275_vm0, %v2609_v43 }
 0x154   : > { %v7947_v35 = vpop.f32.mrf.mxu0  ;;  %8258 = vmatmul.mubr.msk.f32.gmra.mxu0 %vm275_vm0, %v9993_v36  ;;  %v10687_v20 = vpop.f32.mrf.mxu1 }
 0x155   : > { %v10679_v54 = vadd.f32 %v7999_v26, %v7947_v35  ;;  %8260 = vmatprep.mubr.msk.f32.mxu0 %vm275_vm0, %v10297_v3 }
 0x156   : > { %v10685_v5 = vpop.f32.mrf.mxu0  ;;  %v8005_v36 = vpop.f32.mrf.mxu1  ;;  %8316 = vmatmul.mubr.msk.f32.gmra.mxu1 %vm275_vm0, %v2611_v22 }
 0x158   : > { %v7950_v60 = vpop.f32.mrf.mxu0  ;;  %8261 = vmatmul.mubr.msk.f32.gmra.mxu0 %vm275_vm0, %v10311_v34  ;;  %v10698_v49 = vpop.f32.mrf.mxu1 }
 0x159   : > { %v10692_v45 = vadd.f32 %v8002_v28, %v7950_v60  ;;  %8263 = vmatprep.mubr.msk.f32.mxu0 %vm275_vm0, %v10637_v53 }
 0x15a   : > { %v10696_v3 = vpop.f32.mrf.mxu0  ;;  %v8064_v59 = vpop.f32.mrf.mxu1 }
 0x15c   : > { %v7953_v42 = vpop.f32.mrf.mxu0  ;;  %8264 = vmatmul.mubr.msk.f32.gmra.mxu0 %vm275_vm0, %v10639_v62  ;;  %v10708_v47 = vpop.f32.mrf.mxu1 }
 0x15d   : > { %v10702_v0 = vadd.f32 %v8005_v36, %v7953_v42  ;;  %8322 = vmatprep.mubr.msk.f32.mxu0 %vm275_vm0, %v10075_v18 }
 0x15e   : > { %v10706_v34 = vpop.f32.mrf.mxu0  ;;  %v8067_v51 = vpop.f32.mrf.mxu1 }
 0x160   : > { %v8012_v37 = vpop.f32.mrf.mxu0  ;;  %8323 = vmatmul.mubr.msk.f32.vlgmr.msra.gmra.mxu0 %vm275_vm0, %v10098_v13  ;;  %v10715_v43 = vpop.f32.mrf.mxu1 }
 0x161   : > { %v1504_v26 = vadd.f32 %v8012_v37, %v10485_v63  ;;  %8325 = vmatprep.mubr.msk.f32.mxu0 %vm275_vm0, %v10104_v39 }
 0x162   : > { %v1344_v14 = vpop.f32.mrf.mxu0  ;;  %v8070_v22 = vpop.f32.mrf.mxu1 }
 0x163   : > { %v10718_v35 = vadd.f32 %v1344_v14, %v10493_v15  ;;  %v10720_v18 = vadd.f32 %v8064_v59, %v1504_v26  ;;  %v13982_v14 = vld [vmem:[#allocation76_spill] sm:$0xff] }
 0x164   : > { %v8015_v28 = vpop.f32.mrf.mxu0  ;;  %8326 = vmatmul.mubr.msk.f32.gmra.mxu0 %vm275_vm0, %v10117_v61  ;;  %v10727_v39 = vpop.f32.mrf.mxu1 }
 0x165   : > { %v1506_v13 = vadd.f32 %v8015_v28, %v10513_v4  ;;  %8328 = vmatprep.mubr.msk.f32.mxu0 %vm275_vm0, %v10123_v46 }
 0x166   : > { %v1354_v63 = vpop.f32.mrf.mxu0  ;;  %v8073_v42 = vpop.f32.mrf.mxu1 }
 0x167   : > { %v10730_v60 = vadd.f32 %v1354_v63, %v10519_v58  ;;  %v10732_v15 = vadd.f32 %v8067_v51, %v1506_v13  ;;  %v13981_v51 = vld [vmem:[#allocation75_spill] sm:$0xff]  ;;  %v13983_v13 = vld [vmem:[#allocation77_spill] sm:$0xff] }
 0x168   : > { %v8018_v36 = vpop.f32.mrf.mxu0  ;;  %8329 = vmatmul.mubr.msk.f32.gmra.mxu0 %vm275_vm0, %v10134_v7  ;;  %v10739_v46 = vpop.f32.mrf.mxu1 }
 0x169   : > { %v1508_v61 = vadd.f32 %v8018_v36, %v10525_v30  ;;  %8331 = vmatprep.mubr.msk.f32.mxu0 %vm275_vm0, %v10140_v16 }
 0x16a   : > { %v1364_v4 = vpop.f32.mrf.mxu0  ;;  %v8076_v26 = vpop.f32.mrf.mxu1 }
 0x16b   : > { %v10742_v59 = vadd.f32 %v1364_v4, %v10531_v33  ;;  %v10744_v58 = vadd.f32 %v8070_v22, %v1508_v61  ;;  %v13984_v61 = vld [vmem:[#allocation78_spill] sm:$0xff] }
 0x16c   : > { %v8021_v37 = vpop.f32.mrf.mxu0  ;;  %8332 = vmatmul.mubr.msk.f32.gmra.mxu0 %vm275_vm0, %v13981_v51  ;;  %v10751_v16 = vpop.f32.mrf.mxu1  ;;  %v13986_v51 = vld [vmem:[#allocation79_spill] sm:$0xff] }
 0x16d   : > { %v1510_v7 = vadd.f32 %v8021_v37, %v10537_v52  ;;  %8334 = vmatprep.mubr.msk.f32.mxu0 %vm275_vm0, %v13982_v14 }
 0x16e   : > { %v1374_v30 = vpop.f32.mrf.mxu0  ;;  %v8079_v63 = vpop.f32.mrf.mxu1 }
 0x16f   : > { %v10754_v28 = vadd.f32 %v1374_v30, %v10543_v2  ;;  %v10756_v33 = vadd.f32 %v8073_v42, %v1510_v7  ;;  %v13987_v30 = vld [vmem:[#allocation80_spill] sm:$0xff] }
 0x170   : > { %v8024_v22 = vpop.f32.mrf.mxu0  ;;  %8335 = vmatmul.mubr.msk.f32.gmra.mxu0 %vm275_vm0, %v13983_v13  ;;  %v10763_v4 = vpop.f32.mrf.mxu1 }
 0x171   : > { %v1512_v36 = vadd.f32 %v8024_v22, %v10549_v31  ;;  %8337 = vmatprep.mubr.msk.f32.mxu0 %vm275_vm0, %v13984_v61  ;;  %13985 = vst [vmem:[#allocation36_spill] sm:$0xff] %v10763_v4  ;;  %v14013_v4 = vld [vmem:[#allocation95_spill] sm:$0xff] }
 0x172   : > { %v1384_v52 = vpop.f32.mrf.mxu0  ;;  %v8082_v7 = vpop.f32.mrf.mxu1 }
 0x173   : > { %v10766_v37 = vadd.f32 %v1384_v52, %v10555_v57  ;;  %v10768_v2 = vadd.f32 %v8076_v26, %v1512_v36  ;;  %v13990_v36 = vld [vmem:[#allocation81_spill] sm:$0xff] }
 0x174   : > { %v8027_v42 = vpop.f32.mrf.mxu0  ;;  %8338 = vmatmul.mubr.msk.f32.gmra.mxu0 %vm275_vm0, %v13986_v51  ;;  %v10775_v22 = vpop.f32.mrf.mxu1  ;;  %v13991_v51 = vld [vmem:[#allocation82_spill] sm:$0xff] }
 0x175   : > { %v1514_v14 = vadd.f32 %v8027_v42, %v10561_v10  ;;  %8340 = vmatprep.mubr.msk.f32.mxu0 %vm275_vm0, %v13987_v30  ;;  %13988 = vst [vmem:[#allocation43_spill] sm:$0xff] %v10775_v22  ;;  %v13995_v22 = vld [vmem:[#allocation84_spill] sm:$0xff] }
 0x176   : > { %v1394_v31 = vpop.f32.mrf.mxu0  ;;  %v8085_v61 = vpop.f32.mrf.mxu1 }
 0x177   : > { %v10778_v13 = vadd.f32 %v1394_v31, %v10567_v17  ;;  %v10780_v57 = vadd.f32 %v8079_v63, %v1514_v14  ;;  %v13994_v14 = vld [vmem:[#allocation83_spill] sm:$0xff] }
 0x178   : > { %v8030_v26 = vpop.f32.mrf.mxu0  ;;  %8341 = vmatmul.mubr.msk.f32.gmra.mxu0 %vm275_vm0, %v13990_v36  ;;  %v10787_v42 = vpop.f32.mrf.mxu1 }
 0x179   : > { %13989 = vst [vmem:[#allocation47_spill] sm:$0xff] %v10778_v13  ;;  %v1516_v52 = vadd.f32 %v8030_v26, %v10573_v29  ;;  %8343 = vmatprep.mubr.msk.f32.mxu0 %vm275_vm0, %v13991_v51  ;;  %13992 = vst [vmem:[#allocation50_spill] sm:$0xff] %v10787_v42  ;;  %v13999_v42 = vld [vmem:[#allocation86_spill] sm:$0xff] }
 0x17a   : > { %v1404_v10 = vpop.f32.mrf.mxu0  ;;  %v8088_v31 = vpop.f32.mrf.mxu1 }
 0x17b   : > { %v10790_v30 = vadd.f32 %v1404_v10, %v10579_v11  ;;  %v10792_v17 = vadd.f32 %v8082_v7, %v1516_v52  ;;  %v13998_v52 = vld [vmem:[#allocation85_spill] sm:$0xff] }
 0x17c   : > { %v8033_v63 = vpop.f32.mrf.mxu0  ;;  %8344 = vmatmul.mubr.msk.f32.gmra.mxu0 %vm275_vm0, %v13994_v14  ;;  %v10799_v26 = vpop.f32.mrf.mxu1 }
 0x17d   : > { %13993 = vst [vmem:[#allocation51_spill] sm:$0xff] %v10790_v30  ;;  %v1518_v36 = vadd.f32 %v8033_v63, %v10585_v44  ;;  %8346 = vmatprep.mubr.msk.f32.mxu0 %vm275_vm0, %v13995_v22  ;;  %13996 = vst [vmem:[#allocation53_spill] sm:$0xff] %v10799_v26 }
 0x17e   : > { %v1414_v29 = vpop.f32.mrf.mxu0  ;;  %v8091_v10 = vpop.f32.mrf.mxu1 }
 0x17f   : > { %v10802_v51 = vadd.f32 %v1414_v29, %v10593_v9  ;;  %v10804_v11 = vadd.f32 %v8085_v61, %v1518_v36  ;;  %v14001_v29 = vld [vmem:[#allocation87_spill] sm:$0xff] }
 0x180   : > { %v8036_v7 = vpop.f32.mrf.mxu0  ;;  %8347 = vmatmul.mubr.msk.f32.gmra.mxu0 %vm275_vm0, %v13998_v52  ;;  %v10813_v22 = vpop.f32.mrf.mxu1  ;;  %v14002_v52 = vld [vmem:[#allocation88_spill] sm:$0xff] }
 0x181   : > { %13997 = vst [vmem:[#allocation54_spill] sm:$0xff] %v10802_v51  ;;  %v1520_v14 = vadd.f32 %v8036_v7, %v10599_v48  ;;  %8349 = vmatprep.mubr.msk.f32.mxu0 %vm275_vm0, %v13999_v42  ;;  %14000 = vst [vmem:[#allocation56_spill] sm:$0xff] %v10813_v22  ;;  %v14004_v22 = vld [vmem:[#allocation89_spill] sm:$0xff] }
 0x182   : > { %v10811_v44 = vpop.f32.mrf.mxu0  ;;  %v8094_v61 = vpop.f32.mrf.mxu1 }
 0x183   : > { %v10815_v63 = vadd.f32 %v8088_v31, %v1520_v14 }
 0x184   : > { %v8039_v9 = vpop.f32.mrf.mxu0  ;;  %8350 = vmatmul.mubr.msk.f32.gmra.mxu0 %vm275_vm0, %v14001_v29  ;;  %v10824_v7 = vpop.f32.mrf.mxu1  ;;  %v14005_v29 = vld [vmem:[#allocation90_spill] sm:$0xff] }
 0x185   : > { %v1522_v36 = vadd.f32 %v8039_v9, %v10613_v8  ;;  %8352 = vmatprep.mubr.msk.f32.mxu0 %vm275_vm0, %v14002_v52  ;;  %14003 = vst [vmem:[#allocation57_spill] sm:$0xff] %v10824_v7  ;;  %v14007_v7 = vld [vmem:[#allocation91_spill] sm:$0xff] }
 0x186   : > { %v10822_v48 = vpop.f32.mrf.mxu0  ;;  %v8097_v31 = vpop.f32.mrf.mxu1 }
 0x187   : > { %v10826_v42 = vadd.f32 %v8091_v10, %v1522_v36 }
 0x188   : > { %v8042_v26 = vpop.f32.mrf.mxu0  ;;  %8353 = vmatmul.mubr.msk.f32.gmra.mxu0 %vm275_vm0, %v14004_v22  ;;  %v10835_v9 = vpop.f32.mrf.mxu1  ;;  %v14008_v22 = vld [vmem:[#allocation92_spill] sm:$0xff] }
 0x189   : > { %v1524_v14 = vadd.f32 %v8042_v26, %v10627_v23  ;;  %8355 = vmatprep.mubr.msk.f32.mxu0 %vm275_vm0, %v14005_v29  ;;  %14006 = vst [vmem:[#allocation59_spill] sm:$0xff] %v10835_v9  ;;  %v14010_v9 = vld [vmem:[#allocation93_spill] sm:$0xff] }
 0x18a   : > { %v10833_v8 = vpop.f32.mrf.mxu0  ;;  %v8100_v10 = vpop.f32.mrf.mxu1 }
 0x18b   : > { %v10837_v52 = vadd.f32 %v8094_v61, %v1524_v14 }
 0x18c   : > { %v8045_v51 = vpop.f32.mrf.mxu0  ;;  %8356 = vmatmul.mubr.msk.f32.gmra.mxu0 %vm275_vm0, %v14007_v7  ;;  %v10846_v26 = vpop.f32.mrf.mxu1  ;;  %v14011_v7 = vld [vmem:[#allocation94_spill] sm:$0xff] }
 0x18d   : > { %v1526_v36 = vadd.f32 %v8045_v51, %v10645_v1  ;;  %8358 = vmatprep.mubr.msk.f32.mxu0 %vm275_vm0, %v14008_v22  ;;  %14009 = vst [vmem:[#allocation60_spill] sm:$0xff] %v10846_v26  ;;  %v2876_v1 = vrot.slane %v10637_v53, 2  ;;  %v2877_v26 = vrot.slane %v10639_v62, 2 }
 0x18e   : > { %v10844_v23 = vpop.f32.mrf.mxu0  ;;  %v8103_v61 = vpop.f32.mrf.mxu1 }
 0x18f   : > { %v10848_v29 = vadd.f32 %v8097_v31, %v1526_v36 }
 0x190   : > { %v8048_v30 = vpop.f32.mrf.mxu0  ;;  %8359 = vmatmul.mubr.msk.f32.gmra.mxu0 %vm275_vm0, %v14010_v9  ;;  %v10858_v22 = vpop.f32.mrf.mxu1  ;;  %v6995_v9 = vld [vmem:[%s13670_s3 + $0x8] sm:$0xff] }
 0x191   : > { %v1528_v14 = vadd.f32 %v8048_v30, %v10663_v12  ;;  %8361 = vmatprep.mubr.msk.f32.mxu0 %vm275_vm0, %v14011_v7  ;;  %14012 = vst [vmem:[#allocation62_spill] sm:$0xff] %v10858_v22  ;;  %8370 = vmatprep.subr.mxu1 %v6995_v9  ;;  %v14014_v30 = vld [vmem:[#allocation35_spill] sm:$0xff]  ;;  %v2879_v7 = vrot.slane %v10657_v40, 2 }
 0x192   : > { %v10856_v51 = vpop.f32.mrf.mxu0  ;;  %v8106_v12 = vpop.f32.mrf.mxu1  ;;  %8371 = vmatpush3.msra.mxu1 %v6995_v9 }
 0x193   : > { %v10861_v31 = vadd.f32 %v8100_v10, %v1528_v14  ;;  %v2878_v10 = vsel %vm1130_vm3, %v2876_v1, %v2877_v26  ;;  %v2880_v40 = vsel %vm1130_vm3, %v2877_v26, %v2879_v7 }
 0x194   : > { %v8051_v36 = vpop.f32.mrf.mxu0  ;;  %8362 = vmatmul.mubr.msk.f32.gmra.mxu0 %vm275_vm0, %v14013_v4  ;;  %v10875_v14 = vpop.f32.mrf.mxu1 }
 0x195   : > { %v1530_v53 = vadd.f32 %v8051_v36, %v10679_v54  ;;  %8364 = vmatprep.mubr.msk.f32.mxu0 %vm275_vm0, %v14014_v30 }
 0x196   : > { %v10872_v62 = vpop.f32.mrf.mxu0  ;;  %v8109_v4 = vpop.f32.mrf.mxu1 }
 0x197   : > { %v10877_v22 = vadd.f32 %v8103_v61, %v1530_v53 }
 0x198   : > { %v8054_v13 = vpop.f32.mrf.mxu0  ;;  %8365 = vmatmul.mubr.msk.f32.gmra.mxu0 %vm275_vm0, %v10469_v6  ;;  %v10886_v36 = vpop.f32.mrf.mxu1 }
 0x199   : > { %v1532_v54 = vadd.f32 %v8054_v13, %v10692_v45  ;;  %8367 = vmatprep.mubr.msk.f32.mxu0 %vm275_vm0, %v2878_v10 }
 0x19a   : > { %v10884_v9 = vpop.f32.mrf.mxu0  ;;  %v10891_v61 = vpop.f32.mrf.mxu1 }
 0x19b   : > { %v10888_v1 = vadd.f32 %v8106_v12, %v1532_v54  ;;  %14015 = vst [vmem:[#allocation63_spill] sm:$0xff] %v10891_v61 }
 0x19c   : > { %v8057_v30 = vpop.f32.mrf.mxu0  ;;  %8368 = vmatmul.mubr.msk.f32.gmra.mxu0 %vm275_vm0, %v2880_v40  ;;  %v10896_v45 = vpop.f32.mrf.mxu1 }
 0x19d   : > { %v1534_v6 = vadd.f32 %v8057_v30, %v10702_v0  ;;  %14016 = vst [vmem:[#allocation65_spill] sm:$0xff] %v10896_v45 }
 0x19e   : > { %v10894_v53 = vpop.f32.mrf.mxu0  ;;  %v10900_v7 = vpop.f32.mrf.mxu1 }
 0x19f   : > { %v10898_v13 = vadd.f32 %v8109_v4, %v1534_v6  ;;  %14017 = vst [vmem:[#allocation66_spill] sm:$0xff] %v10900_v7 }
 0x1a0   : > { %v8116_v26 = vpop.f32.mrf.mxu0  ;;  %v10907_v54 = vpop.f32.mrf.mxu1 }
 0x1a1   : > { %v10903_v10 = vadd.f32 %v8116_v26, %v10720_v18  ;;  %14019 = vst [vmem:[#allocation70_spill] sm:$0xff] %v10907_v54 }
 0x1a2   : > { %v10905_v12 = vpop.f32.mrf.mxu0  ;;  %v10909_v61 = vpop.f32.mrf.mxu1 }
 0x1a3   : > { %14018 = vst [vmem:[#allocation69_spill] sm:$0xff] %v10903_v10  ;;  %14020 = vst [vmem:[#allocation72_spill] sm:$0xff] %v10909_v61 }
 0x1a4   : > { %v8119_v40 = vpop.f32.mrf.mxu0  ;;  %v10916_v4 = vpop.f32.mrf.mxu1 }
 0x1a5   : > { %v10912_v0 = vadd.f32 %v8119_v40, %v10732_v15  ;;  %14022 = vst [vmem:[#allocation74_spill] sm:$0xff] %v10916_v4 }
 0x1a6   : > { %v10914_v30 = vpop.f32.mrf.mxu0  ;;  %v10918_v45 = vpop.f32.mrf.mxu1 }
 0x1a7   : > { %14021 = vst [vmem:[#allocation73_spill] sm:$0xff] %v10912_v0  ;;  %14023 = vst [vmem:[#allocation33_spill] sm:$0xff] %v10918_v45 }
 0x1a8   : > { %v8122_v6 = vpop.f32.mrf.mxu0  ;;  %v10925_v7 = vpop.f32.mrf.mxu1 }
 0x1a9   : > { %v10921_v18 = vadd.f32 %v8122_v6, %v10744_v58  ;;  %14025 = vst [vmem:[#allocation37_spill] sm:$0xff] %v10925_v7 }
 0x1aa   : > { %v10923_v26 = vpop.f32.mrf.mxu0  ;;  %v10927_v10 = vpop.f32.mrf.mxu1 }
 0x1ab   : > { %14024 = vst [vmem:[#allocation34_spill] sm:$0xff] %v10921_v18  ;;  %14026 = vst [vmem:[#allocation44_spill] sm:$0xff] %v10927_v10 }
 0x1ac   : > { %v8125_v54 = vpop.f32.mrf.mxu0  ;;  %v10934_v61 = vpop.f32.mrf.mxu1 }
 0x1ad   : > { %v10930_v15 = vadd.f32 %v8125_v54, %v10756_v33  ;;  %14028 = vst [vmem:[#allocation55_spill] sm:$0xff] %v10934_v61 }
 0x1ae   : > { %v10932_v40 = vpop.f32.mrf.mxu0  ;;  %v10936_v0 = vpop.f32.mrf.mxu1 }
 0x1af   : > { %14027 = vst [vmem:[#allocation52_spill] sm:$0xff] %v10930_v15  ;;  %14029 = vst [vmem:[#allocation58_spill] sm:$0xff] %v10936_v0 }
 0x1b0   : > { %v8128_v4 = vpop.f32.mrf.mxu0  ;;  %v10943_v45 = vpop.f32.mrf.mxu1 }
 0x1b1   : > { %v10939_v58 = vadd.f32 %v8128_v4, %v10768_v2  ;;  %14031 = vst [vmem:[#allocation64_spill] sm:$0xff] %v10943_v45 }
 0x1b2   : > { %v10941_v6 = vpop.f32.mrf.mxu0  ;;  %v10945_v18 = vpop.f32.mrf.mxu1 }
 0x1b3   : > { %14030 = vst [vmem:[#allocation61_spill] sm:$0xff] %v10939_v58  ;;  %14032 = vst [vmem:[#allocation67_spill] sm:$0xff] %v10945_v18 }
 0x1b4   : > { %v8131_v7 = vpop.f32.mrf.mxu0  ;;  %v10952_v10 = vpop.f32.mrf.mxu1 }
 0x1b5   : > { %v10948_v33 = vadd.f32 %v8131_v7, %v10780_v57  ;;  %14034 = vst [vmem:[#allocation71_spill] sm:$0xff] %v10952_v10 }
 0x1b6   : > { %v10950_v54 = vpop.f32.mrf.mxu0  ;;  %v10954_v15 = vpop.f32.mrf.mxu1 }
 0x1b7   : > { %14033 = vst [vmem:[#allocation68_spill] sm:$0xff] %v10948_v33  ;;  %14035 = vst [vmem:[#allocation75_spill] sm:$0xff] %v10954_v15 }
 0x1b8   : > { %v8134_v61 = vpop.f32.mrf.mxu0  ;;  %v10961_v0 = vpop.f32.mrf.mxu1 }
 0x1b9   : > { %v10957_v2 = vadd.f32 %v8134_v61, %v10792_v17  ;;  %14037 = vst [vmem:[#allocation77_spill] sm:$0xff] %v10961_v0 }
 0x1ba   : > { %v10959_v4 = vpop.f32.mrf.mxu0  ;;  %v10963_v58 = vpop.f32.mrf.mxu1 }
 0x1bb   : > { %14036 = vst [vmem:[#allocation76_spill] sm:$0xff] %v10957_v2  ;;  %14038 = vst [vmem:[#allocation78_spill] sm:$0xff] %v10963_v58 }
 0x1bc   : > { %v8137_v45 = vpop.f32.mrf.mxu0  ;;  %v10970_v18 = vpop.f32.mrf.mxu1 }
 0x1bd   : > { %v10966_v57 = vadd.f32 %v8137_v45, %v10804_v11  ;;  %14040 = vst [vmem:[#allocation80_spill] sm:$0xff] %v10970_v18  ;;  %v14046_v45 = vmov 0.0  }
 0x1be   : > { %v10968_v7 = vpop.f32.mrf.mxu0  ;;  %v10972_v33 = vpop.f32.mrf.mxu1  ;;  %3414 = vst.msk [vmem:[#allocation3 + $0x20] sm:$0xff] %vm3408_vm4, %v14046_v45  ;;  %3409 = vst.msk [vmem:[#allocation3] sm:$0xff] %vm3408_vm4, %v14046_v45 }
 0x1bf   : > { %14039 = vst [vmem:[#allocation79_spill] sm:$0xff] %v10966_v57  ;;  %14041 = vst [vmem:[#allocation81_spill] sm:$0xff] %v10972_v33 }
 0x1c0   : > { %v8140_v10 = vpop.f32.mrf.mxu0  ;;  %v10979_v15 = vpop.f32.mrf.mxu1  ;;  %3410 = vst.msk [vmem:[#allocation3 + $0x8] sm:$0xff] %vm3408_vm4, %v14046_v45  ;;  %3413 = vst.msk [vmem:[#allocation3 + $0x18] sm:$0xff] %vm3408_vm4, %v14046_v45 }
 0x1c1   : > { %v10975_v17 = vadd.f32 %v8140_v10, %v10815_v63  ;;  %14043 = vst [vmem:[#allocation83_spill] sm:$0xff] %v10979_v15  ;;  %3416 = vst.msk [vmem:[#allocation3 + $0x30] sm:$0xff] %vm3408_vm4, %v14046_v45 }
 0x1c2   : > { %v10977_v61 = vpop.f32.mrf.mxu0  ;;  %v10981_v2 = vpop.f32.mrf.mxu1  ;;  %3417 = vst.msk [vmem:[#allocation3 + $0x38] sm:$0xff] %vm3408_vm4, %v14046_v45  ;;  %3419 = vst.msk [vmem:[#allocation3 + $0x48] sm:$0xff] %vm3408_vm4, %v14046_v45 }
 0x1c3   : > { %14042 = vst [vmem:[#allocation82_spill] sm:$0xff] %v10975_v17  ;;  %14044 = vst [vmem:[#allocation84_spill] sm:$0xff] %v10981_v2 }
 0x1c4   : > { %v8143_v0 = vpop.f32.mrf.mxu0  ;;  %3420 = vst.msk [vmem:[#allocation3 + $0x50] sm:$0xff] %vm3408_vm4, %v14046_v45  ;;  %3422 = vst.msk [vmem:[#allocation3 + $0x60] sm:$0xff] %vm3408_vm4, %v14046_v45 }
 0x1c5   : > { %v10984_v11 = vadd.f32 %v8143_v0, %v10826_v42  ;;  %3423 = vst.msk [vmem:[#allocation3 + $0x68] sm:$0xff] %vm3408_vm4, %v14046_v45  ;;  %3425 = vst.msk [vmem:[#allocation3 + $0x78] sm:$0xff] %vm3408_vm4, %v14046_v45  ;;  %v11060_v42 = vpop.f32.mrf.mxu1 }
 0x1c6   : > { %3426 = vst.msk [vmem:[#allocation3 + $0x80] sm:$0xff] %vm3408_vm4, %v14046_v45  ;;  %3428 = vst.msk [vmem:[#allocation3 + $0x90] sm:$0xff] %vm3408_vm4, %v14046_v45  ;;  %v11058_v63 = vpop.f32.mrf.mxu0 }
 0x1c7   : > { %14045 = vst [vmem:[#allocation85_spill] sm:$0xff] %v10984_v11  ;;  %3429 = vst.msk [vmem:[#allocation3 + $0x98] sm:$0xff] %vm3408_vm4, %v14046_v45  ;;  %v11098_v0 = vpop.f32.mrf.mxu1  ;;  %v3498_v57 = vld [vmem:[#allocation3 + $0x8] sm:$0xff] }
 0x1c8   : > { %3431 = vst.msk [vmem:[#allocation3 + $0xa8] sm:$0xff] %vm3408_vm4, %v14046_v45  ;;  %3432 = vst.msk [vmem:[#allocation3 + $0xb0] sm:$0xff] %vm3408_vm4, %v14046_v45  ;;  %v8146_v10 = vpop.f32.mrf.mxu0 }
 0x1c9   : > { %3434 = vst.msk [vmem:[#allocation3 + $0xc0] sm:$0xff] %vm3408_vm4, %v14046_v45  ;;  %3435 = vst.msk [vmem:[#allocation3 + $0xc8] sm:$0xff] %vm3408_vm4, %v14046_v45  ;;  %v11105_v15 = vpop.f32.mrf.mxu1 }
 0x1ca   : > { %3437 = vst.msk [vmem:[#allocation3 + $0xd8] sm:$0xff] %vm3408_vm4, %v14046_v45  ;;  %3438 = vst.msk [vmem:[#allocation3 + $0xe0] sm:$0xff] %vm3408_vm4, %v14046_v45  ;;  %v11103_v2 = vpop.f32.mrf.mxu0 }
 0x1cb   : > { %3440 = vst.msk [vmem:[#allocation3 + $0xf0] sm:$0xff] %vm3408_vm4, %v14046_v45  ;;  %3441 = vst.msk [vmem:[#allocation3 + $0xf8] sm:$0xff] %vm3408_vm4, %v14046_v45  ;;  %v11107_v11 = vpop.f32.mrf.mxu1 }
 0x1cc   : > { %3443 = vst.msk [vmem:[#allocation3 + $0x108] sm:$0xff] %vm3408_vm4, %v14046_v45  ;;  %3444 = vst.msk [vmem:[#allocation3 + $0x110] sm:$0xff] %vm3408_vm4, %v14046_v45  ;;  %v8149_v33 = vpop.f32.mrf.mxu0 }
 0x1cd   : > { %3446 = vst.msk [vmem:[#allocation3 + $0x120] sm:$0xff] %vm3408_vm4, %v14046_v45  ;;  %3447 = vst.msk [vmem:[#allocation3 + $0x128] sm:$0xff] %vm3408_vm4, %v14046_v45  ;;  %v11110_v18 = vadd.f32 %v8149_v33, %v10848_v29  ;;  %v11114_v17 = vpop.f32.mrf.mxu1 }
 0x1ce   : > { %3449 = vst.msk [vmem:[#allocation3 + $0x138] sm:$0xff] %vm3408_vm4, %v14046_v45  ;;  %3450 = vst.msk [vmem:[#allocation3 + $0x140] sm:$0xff] %vm3408_vm4, %v14046_v45  ;;  %v11112_v58 = vpop.f32.mrf.mxu0 }
 0x1cf   : > { %3452 = vst.msk [vmem:[#allocation3 + $0x150] sm:$0xff] %vm3408_vm4, %v14046_v45  ;;  %3453 = vst.msk [vmem:[#allocation3 + $0x158] sm:$0xff] %vm3408_vm4, %v14046_v45 }
 0x1d0   : > { %3455 = vst.msk [vmem:[#allocation3 + $0x168] sm:$0xff] %vm3408_vm4, %v14046_v45  ;;  %3456 = vst.msk [vmem:[#allocation3 + $0x170] sm:$0xff] %vm3408_vm4, %v14046_v45 }
 0x1d1   : > { %3458 = vst.msk [vmem:[#allocation3 + $0x180] sm:$0xff] %vm3408_vm4, %v14046_v45  ;;  %3459 = vst.msk [vmem:[#allocation3 + $0x188] sm:$0xff] %vm3408_vm4, %v14046_v45 }
 0x1d2   : > { %3461 = vst.msk [vmem:[#allocation3 + $0x198] sm:$0xff] %vm3408_vm4, %v14046_v45  ;;  %3462 = vst.msk [vmem:[#allocation3 + $0x1a0] sm:$0xff] %vm3408_vm4, %v14046_v45 }
 0x1d3   : > { %14047 = vst [vmem:[#allocation86_spill] sm:$0xff] %v11058_v63  ;;  %14048 = vst [vmem:[#allocation87_spill] sm:$0xff] %v11060_v42  ;;  %v11101_v42 = vadd.f32 %v8146_v10, %v10837_v52  ;;  %v11116_v63 = vpop.f32.mrf.mxu1  ;;  %v3551_v52 = vld [vmem:[%s13670_s3] sm:$0xff] }
 0x1d4   : > { %3415 = vst.msk [vmem:[#allocation3 + $0x28] sm:$0x3] %vm3411_vm5, %v14046_v45  ;;  %3412 = vst.msk [vmem:[#allocation3 + $0x10] sm:$0x3] %vm3411_vm5, %v14046_v45  ;;  %8420 = vmatprep.subr.mxu0 %v3551_v52 }
 0x1d5   : > { %3418 = vst.msk [vmem:[#allocation3 + $0x40] sm:$0x3] %vm3411_vm5, %v14046_v45  ;;  %3421 = vst.msk [vmem:[#allocation3 + $0x58] sm:$0x3] %vm3411_vm5, %v14046_v45  ;;  %8421 = vmatpush3.msra.mxu0 %v3551_v52 }
 0x1d6   : > { %3424 = vst.msk [vmem:[#allocation3 + $0x70] sm:$0x3] %vm3411_vm5, %v14046_v45  ;;  %3427 = vst.msk [vmem:[#allocation3 + $0x88] sm:$0x3] %vm3411_vm5, %v14046_v45 }
 0x1d7   : > { %3430 = vst.msk [vmem:[#allocation3 + $0xa0] sm:$0x3] %vm3411_vm5, %v14046_v45  ;;  %3433 = vst.msk [vmem:[#allocation3 + $0xb8] sm:$0x3] %vm3411_vm5, %v14046_v45 }
 0x1d8   : > { %3436 = vst.msk [vmem:[#allocation3 + $0xd0] sm:$0x3] %vm3411_vm5, %v14046_v45  ;;  %3439 = vst.msk [vmem:[#allocation3 + $0xe8] sm:$0x3] %vm3411_vm5, %v14046_v45 }
 0x1d9   : > { %3442 = vst.msk [vmem:[#allocation3 + $0x100] sm:$0x3] %vm3411_vm5, %v14046_v45  ;;  %3445 = vst.msk [vmem:[#allocation3 + $0x118] sm:$0x3] %vm3411_vm5, %v14046_v45 }
 0x1da   : > { %3448 = vst.msk [vmem:[#allocation3 + $0x130] sm:$0x3] %vm3411_vm5, %v14046_v45  ;;  %3451 = vst.msk [vmem:[#allocation3 + $0x148] sm:$0x3] %vm3411_vm5, %v14046_v45 }
 0x1db   : > { %3454 = vst.msk [vmem:[#allocation3 + $0x160] sm:$0x3] %vm3411_vm5, %v14046_v45  ;;  %3457 = vst.msk [vmem:[#allocation3 + $0x178] sm:$0x3] %vm3411_vm5, %v14046_v45 }
 0x1dc   : > { %3460 = vst.msk [vmem:[#allocation3 + $0x190] sm:$0x3] %vm3411_vm5, %v14046_v45  ;;  %3463 = vst.msk [vmem:[#allocation3 + $0x1a8] sm:$0x3] %vm3411_vm5, %v14046_v45  ;;  %v3497_v45 = vld [vmem:[#allocation3] sm:$0xff] }
 0x1dd   : > { %14049 = vst [vmem:[#allocation88_spill] sm:$0xff] %v11098_v0  ;;  %14050 = vst [vmem:[#allocation89_spill] sm:$0xff] %v11101_v42  ;;  %v8152_v0 = vpop.f32.mrf.mxu0  ;;  %v3600_v10 = vrot.slane %v3497_v45, 1  ;;  %8422 = vmatprep.mubr.msk.f32.mxu0 %vm3408_vm4, %v3497_v45 }
 0x1de   : > { %14051 = vst [vmem:[#allocation90_spill] sm:$0xff] %v11105_v15  ;;  %14052 = vst [vmem:[#allocation91_spill] sm:$0xff] %v11107_v11  ;;  %v3601_v11 = vrot.slane %v3498_v57, 1  ;;  %v3499_v15 = vld [vmem:[#allocation3 + $0x10] sm:$0x3]  ;;  %v11123_v29 = vadd.f32 %v8152_v0, %v10861_v31  ;;  %8423 = vmatmul.mubr.msk.f32.vlgmr.msra.gmra.mxu0 %vm3408_vm4, %v3498_v57 }
 0x1df   : > { %14053 = vst [vmem:[#allocation92_spill] sm:$0xff] %v11110_v18  ;;  %14054 = vst [vmem:[#allocation93_spill] sm:$0xff] %v11112_v58  ;;  %v3603_v33 = vrot.slane %v3499_v15, 1  ;;  %v11127_v18 = vpop.f32.mrf.mxu1 }
 0x1e0   : > { %14055 = vst [vmem:[#allocation94_spill] sm:$0xff] %v11114_v17  ;;  %14056 = vst [vmem:[#allocation95_spill] sm:$0xff] %v11116_v63  ;;  %v11125_v17 = vpop.f32.mrf.mxu0  ;;  %v3602_v63 = vsel %vm468_vm2, %v3600_v10, %v3601_v11 }
 0x1e1   : > { %14057 = vst [vmem:[#allocation35_spill] sm:$0xff] %v11123_v29  ;;  %14058 = vst [vmem:[#allocation96_spill] sm:$0xff] %v11127_v18  ;;  %8372 = vmatprep.mubr.msk.f32.mxu1 %vm3408_vm4, %v3602_v63  ;;  %v3604_v45 = vsel %vm468_vm2, %v3601_v11, %v3603_v33  ;;  %v8210_v58 = vpop.f32.mrf.mxu1 }
 0x1e2   : > { %v8155_v42 = vpop.f32.mrf.mxu0  ;;  %8373 = vmatmul.mubr.msk.f32.vlgmr.msra.gmra.mxu1 %vm3408_vm4, %v3604_v45 }
 0x1e3   : > { %v11135_v31 = vadd.f32 %v8155_v42, %v10877_v22  ;;  %v11139_v0 = vpop.f32.mrf.mxu1 }
 0x1e4   : > { %v11137_v15 = vpop.f32.mrf.mxu0  ;;  %14060 = vst [vmem:[#allocation98_spill] sm:$0xff] %v11139_v0 }
 0x1e5   : > { %14059 = vst [vmem:[#allocation97_spill] sm:$0xff] %v11135_v31  ;;  %v8213_v18 = vpop.f32.mrf.mxu1 }
 0x1e6   : > { %v8158_v52 = vpop.f32.mrf.mxu0 }
 0x1e7   : > { %v2068_v10 = vadd.f32 %v8158_v52, %v10888_v1  ;;  %v11144_v57 = vpop.f32.mrf.mxu1 }
 0x1e8   : > { %v11142_v63 = vpop.f32.mrf.mxu0  ;;  %14061 = vst [vmem:[#allocation99_spill] sm:$0xff] %v11144_v57 }
 0x1e9   : > { %v11146_v11 = vadd.f32 %v8210_v58, %v2068_v10  ;;  %v11148_v29 = vpop.f32.mrf.mxu1 }
 0x1ea   : > { %v8161_v33 = vpop.f32.mrf.mxu0  ;;  %14062 = vst [vmem:[#allocation100_spill] sm:$0xff] %v11148_v29 }
 0x1eb   : > { %v2070_v22 = vadd.f32 %v8161_v33, %v10898_v13  ;;  %v11153_v45 = vpop.f32.mrf.mxu1 }
 0x1ec   : > { %v11151_v42 = vpop.f32.mrf.mxu0  ;;  %14063 = vst [vmem:[#allocation101_spill] sm:$0xff] %v11153_v45 }
 0x1ed   : > { %v11155_v0 = vadd.f32 %v8213_v18, %v2070_v22  ;;  %v11159_v1 = vpop.f32.mrf.mxu1 }
 0x1ee   : > { %v11157_v31 = vpop.f32.mrf.mxu0  ;;  %14065 = vst [vmem:[#allocation103_spill] sm:$0xff] %v11159_v1 }
 0x1ef   : > { %14064 = vst [vmem:[#allocation102_spill] sm:$0xff] %v11155_v0  ;;  %v11163_v57 = vpop.f32.mrf.mxu1 }
 0x1f0   : > { %v11161_v52 = vpop.f32.mrf.mxu0  ;;  %14066 = vst [vmem:[#allocation104_spill] sm:$0xff] %v11163_v57 }
 0x1f1   : > { %v11167_v10 = vpop.f32.mrf.mxu1 }
 0x1f2   : > { %v11165_v58 = vpop.f32.mrf.mxu0  ;;  %14068 = vst [vmem:[#allocation106_spill] sm:$0xff] %v11167_v10 }
 0x1f3   : > { %14067 = vst [vmem:[#allocation105_spill] sm:$0xff] %v11165_v58  ;;  %v11171_v13 = vpop.f32.mrf.mxu1 }
 0x1f4   : > { %v11169_v29 = vpop.f32.mrf.mxu0  ;;  %14070 = vst [vmem:[#allocation108_spill] sm:$0xff] %v11171_v13 }
 0x1f5   : > { %14069 = vst [vmem:[#allocation107_spill] sm:$0xff] %v11169_v29  ;;  %v11175_v18 = vpop.f32.mrf.mxu1 }
 0x1f6   : > { %v11173_v33 = vpop.f32.mrf.mxu0  ;;  %14072 = vst [vmem:[#allocation110_spill] sm:$0xff] %v11175_v18 }
 0x1f7   : > { %14071 = vst [vmem:[#allocation109_spill] sm:$0xff] %v11173_v33  ;;  %v11179_v45 = vpop.f32.mrf.mxu1 }
 0x1f8   : > { %v11177_v22 = vpop.f32.mrf.mxu0  ;;  %14074 = vst [vmem:[#allocation112_spill] sm:$0xff] %v11179_v45 }
 0x1f9   : > { %14073 = vst [vmem:[#allocation111_spill] sm:$0xff] %v11177_v22  ;;  %v11183_v0 = vpop.f32.mrf.mxu1 }
 0x1fa   : > { %v11181_v1 = vpop.f32.mrf.mxu0  ;;  %14076 = vst [vmem:[#allocation114_spill] sm:$0xff] %v11183_v0 }
 0x1fb   : > { %14075 = vst [vmem:[#allocation113_spill] sm:$0xff] %v11181_v1  ;;  %v11189_v10 = vpop.f32.mrf.mxu1 }
 0x1fc   : > { %v11185_v57 = vpop.f32.mrf.mxu0  ;;  %14079 = vst [vmem:[#allocation117_spill] sm:$0xff] %v11189_v10  ;;  %v7060_v10 = vld [vmem:[%s13670_s3 + $0x10] sm:$0xff] }
 0x1fd   : > { %14077 = vst [vmem:[#allocation115_spill] sm:$0xff] %v11185_v57  ;;  %v11195_v33 = vpop.f32.mrf.mxu1  ;;  %8470 = vmatprep.subr.mxu1 %v7060_v10 }
 0x1fe   : > { %v11187_v58 = vpop.f32.mrf.mxu0  ;;  %14082 = vst [vmem:[#allocation120_spill] sm:$0xff] %v11195_v33  ;;  %8471 = vmatpush3.msra.mxu1 %v7060_v10  ;;  %v1052_v10 = vadd.f32 %v10591_v50, %v10605_v27  ;;  %v1122_v50 = vadd.f32 %v10698_v49, %v10706_v34 }
 0x1ff   : > { %14078 = vst [vmem:[#allocation116_spill] sm:$0xff] %v11187_v58  ;;  %v11201_v45 = vpop.f32.mrf.mxu1 }
 0x200   : > { %v11191_v29 = vpop.f32.mrf.mxu0  ;;  %14085 = vst [vmem:[#allocation123_spill] sm:$0xff] %v11201_v45 }
 0x201   : > { %14080 = vst [vmem:[#allocation118_spill] sm:$0xff] %v11191_v29  ;;  %v11210_v58 = vpop.f32.mrf.mxu1 }
 0x202   : > { %v11193_v13 = vpop.f32.mrf.mxu0  ;;  %14088 = vst [vmem:[#allocation126_spill] sm:$0xff] %v11210_v58 }
 0x203   : > { %14081 = vst [vmem:[#allocation119_spill] sm:$0xff] %v11193_v13 }
 0x204   : > { %v11197_v18 = vpop.f32.mrf.mxu0 }
 0x205   : > { %14083 = vst [vmem:[#allocation121_spill] sm:$0xff] %v11197_v18  ;;  %v11216_v18 = vpop.f32.mrf.mxu1 }
 0x206   : > { %v11199_v22 = vpop.f32.mrf.mxu0 }
 0x207   : > { %14084 = vst [vmem:[#allocation122_spill] sm:$0xff] %v11199_v22 }
 0x208   : > { %v11203_v1 = vpop.f32.mrf.mxu0 }
 0x209   : > { %14086 = vst [vmem:[#allocation124_spill] sm:$0xff] %v11203_v1  ;;  %v11222_v1 = vpop.f32.mrf.mxu1 }
 0x20a   : > { %v11205_v0 = vpop.f32.mrf.mxu0  ;;  %14091 = vst [vmem:[#allocation129_spill] sm:$0xff] %v11222_v1  ;;  %v1082_v1 = vadd.f32 %v10635_v19, %v10651_v21  ;;  %v1773_v21 = vadd.f32 %v10727_v39, %v10742_v59  ;;  %v14097_v39 = vld [vmem:[#allocation51_spill] sm:$0xff] }
 0x20b   : > { %14087 = vst [vmem:[#allocation125_spill] sm:$0xff] %v11205_v0  ;;  %v11228_v57 = vpop.f32.mrf.mxu1 }
 0x20c   : > { %v11212_v13 = vpop.f32.mrf.mxu0 }
 0x20d   : > { %v11256_v19 = vpop.f32.mrf.mxu1 }
 0x20e   : > { %v11214_v33 = vpop.f32.mrf.mxu0 }
 0x20f   : > { %14089 = vst [vmem:[#allocation127_spill] sm:$0xff] %v11214_v33  ;;  %v1062_v33 = vadd.f32 %v10607_v55, %v10619_v24  ;;  %v1769_v55 = vadd.f32 %v10708_v47, %v10718_v35  ;;  %v1771_v24 = vadd.f32 %v10715_v43, %v10730_v60  ;;  %v14095_v47 = vld [vmem:[#allocation47_spill] sm:$0xff]  ;;  %v14096_v43 = vld [vmem:[#allocation36_spill] sm:$0xff] }
 0x210   : > { %v11218_v22 = vpop.f32.mrf.mxu0  ;;  %v1779_v35 = vadd.f32 %v14096_v43, %v14095_v47  ;;  %v14098_v60 = vld [vmem:[#allocation43_spill] sm:$0xff]  ;;  %v14107_v47 = vld [vmem:[#allocation69_spill] sm:$0xff] }
 0x211   : > { %14090 = vst [vmem:[#allocation128_spill] sm:$0xff] %v11218_v22  ;;  %v1072_v22 = vadd.f32 %v10621_v56, %v10633_v32  ;;  %v1519_v56 = vadd.f32 %v10811_v44, %v1052_v10  ;;  %v1521_v32 = vadd.f32 %v10822_v48, %v1062_v33  ;;  %v1781_v59 = vadd.f32 %v14098_v60, %v14097_v39  ;;  %v14111_v60 = vld [vmem:[#allocation66_spill] sm:$0xff] }
 0x212   : > { %v11220_v45 = vpop.f32.mrf.mxu0  ;;  %v1533_v44 = vadd.f32 %v10894_v53, %v1122_v50  ;;  %v2039_v48 = vadd.f32 %v10905_v12, %v1769_v55  ;;  %v14105_v53 = vld [vmem:[#allocation60_spill] sm:$0xff]  ;;  %v2043_v12 = vadd.f32 %v10923_v26, %v1773_v21  ;;  %v14106_v50 = vld [vmem:[#allocation62_spill] sm:$0xff]  ;;  %v14110_v21 = vld [vmem:[#allocation73_spill] sm:$0xff] }
 0x214   : > { %v11224_v0 = vpop.f32.mrf.mxu0 }
 0x215   : > { %14092 = vst [vmem:[#allocation130_spill] sm:$0xff] %v11224_v0  ;;  %v1092_v0 = vadd.f32 %v10653_v38, %v10670_v41  ;;  %v1523_v38 = vadd.f32 %v10833_v8, %v1072_v22  ;;  %v1525_v41 = vadd.f32 %v10844_v23, %v1082_v1 }
 0x216   : > { %v11226_v29 = vpop.f32.mrf.mxu0 }
 0x217   : > { %14093 = vst [vmem:[#allocation131_spill] sm:$0xff] %v11226_v29  ;;  %v1102_v29 = vadd.f32 %v10672_v25, %v10685_v5  ;;  %v1527_v25 = vadd.f32 %v10856_v51, %v1092_v0  ;;  %v14102_v51 = vld [vmem:[#allocation56_spill] sm:$0xff]  ;;  %v14103_v0 = vld [vmem:[#allocation57_spill] sm:$0xff] }
 0x218   : > { %v11230_v58 = vpop.f32.mrf.mxu0  ;;  %v1789_v1 = vadd.f32 %v14103_v0, %v1523_v38  ;;  %v14108_v38 = vld [vmem:[#allocation63_spill] sm:$0xff]  ;;  %v14119_v0 = vld [vmem:[#allocation37_spill] sm:$0xff] }
 0x219   : > { %14094 = vst [vmem:[#allocation132_spill] sm:$0xff] %v11230_v58  ;;  %v1112_v58 = vadd.f32 %v10687_v20, %v10696_v3  ;;  %v1775_v20 = vadd.f32 %v10739_v46, %v10754_v28  ;;  %v1777_v3 = vadd.f32 %v10751_v16, %v10766_v37  ;;  %v1529_v49 = vadd.f32 %v10872_v62, %v1102_v29  ;;  %v14099_v46 = vld [vmem:[#allocation54_spill] sm:$0xff]  ;;  %v14101_v16 = vld [vmem:[#allocation53_spill] sm:$0xff]  ;;  %v11284_v29 = vpop.f32.mrf.mxu1 }
 0x21a   : > { %v11248_v27 = vpop.f32.mrf.mxu0  ;;  %v14100_v28 = vld [vmem:[#allocation50_spill] sm:$0xff]  ;;  %v1785_v37 = vadd.f32 %v14101_v16, %v1519_v56  ;;  %v1787_v62 = vadd.f32 %v14102_v51, %v1521_v32  ;;  %v1793_v22 = vadd.f32 %v14105_v53, %v1527_v25  ;;  %v2309_v43 = vadd.f32 %v14108_v38, %v14107_v47  ;;  %v14124_v47 = vld [vmem:[#allocation68_spill] sm:$0xff] }
 0x21b   : > { %v1531_v34 = vadd.f32 %v10884_v9, %v1112_v58  ;;  %v1783_v23 = vadd.f32 %v14100_v28, %v14099_v46  ;;  %v2041_v9 = vadd.f32 %v10914_v30, %v1771_v24  ;;  %v14104_v58 = vld [vmem:[#allocation59_spill] sm:$0xff]  ;;  %v1795_v55 = vadd.f32 %v14106_v50, %v1529_v49  ;;  %v14112_v46 = vld [vmem:[#allocation70_spill] sm:$0xff]  ;;  %v14116_v28 = vld [vmem:[#allocation52_spill] sm:$0xff] }
 0x21c   : > { %v11263_v5 = vpop.f32.mrf.mxu0  ;;  %v1791_v33 = vadd.f32 %v14104_v58, %v1525_v41  ;;  %v2045_v32 = vadd.f32 %v10932_v40, %v1775_v20  ;;  %v2047_v30 = vadd.f32 %v10941_v6, %v1777_v3  ;;  %v1799_v24 = vadd.f32 %v10886_v36, %v1533_v44  ;;  %v14109_v41 = vld [vmem:[#allocation65_spill] sm:$0xff]  ;;  %v11308_v20 = vpop.f32.mrf.mxu1  ;;  %v14113_v36 = vld [vmem:[#allocation34_spill] sm:$0xff]  ;;  %v14114_v3 = vld [vmem:[#allocation72_spill] sm:$0xff] }
 0x21d   : > { %v1797_v56 = vadd.f32 %v10875_v14, %v1531_v34  ;;  %v2308_v39 = vadd.f32 %v14109_v41, %v2039_v48  ;;  %v2049_v25 = vadd.f32 %v10950_v54, %v1779_v35  ;;  %v2311_v49 = vadd.f32 %v14111_v60, %v14110_v21  ;;  %v14115_v44 = vld [vmem:[#allocation74_spill] sm:$0xff]  ;;  %v14117_v54 = vld [vmem:[#allocation33_spill] sm:$0xff]  ;;  %v14127_v60 = vld [vmem:[#allocation76_spill] sm:$0xff] }
 0x21e   : > { %v11277_v8 = vpop.f32.mrf.mxu0  ;;  %v2310_v14 = vadd.f32 %v14112_v46, %v2041_v9  ;;  %v2051_v40 = vadd.f32 %v10959_v4, %v1781_v59  ;;  %v2053_v6 = vadd.f32 %v10968_v7, %v1783_v23  ;;  %v2313_v34 = vadd.f32 %v14114_v3, %v14113_v36  ;;  %v14120_v58 = vld [vmem:[#allocation61_spill] sm:$0xff]  ;;  %v14121_v4 = vld [vmem:[#allocation44_spill] sm:$0xff]  ;;  %v14122_v7 = vld [vmem:[#allocation55_spill] sm:$0xff] }
 0x21f   : > { %v2312_v48 = vadd.f32 %v14115_v44, %v2043_v12  ;;  %v2315_v35 = vadd.f32 %v14117_v54, %v14116_v28  ;;  %v2055_v16 = vadd.f32 %v10977_v61, %v1785_v37  ;;  %v2314_v9 = vadd.f32 %v14119_v0, %v2045_v32  ;;  %v14123_v53 = vld [vmem:[#allocation86_spill] sm:$0xff]  ;;  %v14126_v12 = vld [vmem:[#allocation64_spill] sm:$0xff]  ;;  %v14128_v46 = vld [vmem:[#allocation67_spill] sm:$0xff] }
 0x220   : > { %v11290_v10 = vpop.f32.mrf.mxu0  ;;  %v2317_v59 = vadd.f32 %v14121_v4, %v14120_v58  ;;  %v2316_v23 = vadd.f32 %v14122_v7, %v2047_v30  ;;  %v2057_v50 = vadd.f32 %v14123_v53, %v1787_v62  ;;  %v14125_v38 = vld [vmem:[#allocation58_spill] sm:$0xff]  ;;  %v2318_v21 = vadd.f32 %v14126_v12, %v2049_v25  ;;  %v7093_v32 = vld [vmem:[%s13670_s3 + $0x18] sm:$0xff]  ;;  %v14129_v3 = vld [vmem:[#allocation71_spill] sm:$0xff]  ;;  %v11342_v25 = vpop.f32.mrf.mxu1 }
 0x221   : > { %v2319_v41 = vadd.f32 %v14125_v38, %v14124_v47  ;;  %v11328_v36 = vadd.f32 %v14128_v46, %v14127_v60  ;;  %v2059_v61 = vadd.f32 %v11103_v2, %v1789_v1  ;;  %v2320_v30 = vadd.f32 %v14129_v3, %v2051_v40  ;;  %v14130_v44 = vld [vmem:[#allocation79_spill] sm:$0xff]  ;;  %v14132_v54 = vld [vmem:[#allocation77_spill] sm:$0xff]  ;;  %8520 = vmatprep.subr.mxu0 %v7093_v32  ;;  %v14134_v2 = vld [vmem:[#allocation82_spill] sm:$0xff] }
 0x222   : > { %v11301_v26 = vpop.f32.mrf.mxu0  ;;  %v14131_v62 = vld [vmem:[#allocation75_spill] sm:$0xff]  ;;  %v11340_v0 = vadd.f32 %v14132_v54, %v2053_v6  ;;  %v14135_v1 = vld [vmem:[#allocation78_spill] sm:$0xff]  ;;  %v14136_v7 = vld [vmem:[#allocation80_spill] sm:$0xff]  ;;  %v2063_v38 = vadd.f32 %v11125_v17, %v1793_v22  ;;  %8521 = vmatpush3.msra.mxu0 %v7093_v32  ;;  %v2065_v3 = vadd.f32 %v11137_v15, %v1795_v55  ;;  %v2067_v22 = vadd.f32 %v11142_v63, %v1797_v56 }
 0x223   : > { %v11337_v28 = vadd.f32 %v14131_v62, %v14130_v44  ;;  %v11349_v4 = vadd.f32 %v14135_v1, %v14134_v2  ;;  %v11352_v53 = vadd.f32 %v14136_v7, %v2055_v16  ;;  %v14137_v40 = vld [vmem:[#allocation93_spill] sm:$0xff]  ;;  %v2575_v44 = vadd.f32 %v11157_v31, %v2309_v43  ;;  %v14143_v62 = vld [vmem:[#allocation84_spill] sm:$0xff]  ;;  %v14150_v63 = vld [vmem:[#allocation90_spill] sm:$0xff] }
 0x224   : > { %v11316_v51 = vpop.f32.mrf.mxu0  ;;  %v2061_v47 = vadd.f32 %v14137_v40, %v1791_v33  ;;  %v14139_v6 = vld [vmem:[#allocation85_spill] sm:$0xff]  ;;  %v14144_v33 = vld [vmem:[#allocation87_spill] sm:$0xff]  ;;  %v2069_v32 = vadd.f32 %v11151_v42, %v1799_v24  ;;  %v14145_v1 = vld [vmem:[#allocation92_spill] sm:$0xff]  ;;  %v2574_v31 = vadd.f32 %v11161_v52, %v2308_v39  ;;  %v11385_v40 = vpop.f32.mrf.mxu1 }
 0x225   : > { %14118 = vst [vmem:[#allocation47_spill] sm:$0xff] %v11316_v51  ;;  %v14140_v60 = vld [vmem:[#allocation81_spill] sm:$0xff]  ;;  %v11372_v17 = vadd.f32 %v14144_v33, %v2059_v61  ;;  %v14146_v15 = vld [vmem:[#allocation88_spill] sm:$0xff]  ;;  %v14148_v61 = vld [vmem:[#allocation102_spill] sm:$0xff] }
 0x226   : > { %v8262_v37 = vpop.f32.mrf.mxu0  ;;  %v11360_v46 = vadd.f32 %v14140_v60, %v14139_v6  ;;  %v14142_v16 = vld [vmem:[#allocation89_spill] sm:$0xff]  ;;  %v11381_v55 = vadd.f32 %v14146_v15, %v14145_v1  ;;  %v11391_v42 = vadd.f32 %v14150_v63, %v2061_v47  ;;  %v14151_v56 = vld [vmem:[#allocation35_spill] sm:$0xff]  ;;  %v14157_v33 = vld [vmem:[#allocation96_spill] sm:$0xff] }
 0x227   : > { %v11345_v58 = vadd.f32 %v8262_v37, %v11146_v11  ;;  %v14141_v11 = vld [vmem:[#allocation83_spill] sm:$0xff]  ;;  %v11369_v54 = vadd.f32 %v14143_v62, %v14142_v16  ;;  %v14147_v43 = vld [vmem:[#allocation105_spill] sm:$0xff]  ;;  %v14161_v63 = vld [vmem:[#allocation98_spill] sm:$0xff] }
 0x228   : > { %v11356_v12 = vpop.f32.mrf.mxu0  ;;  %v11363_v37 = vadd.f32 %v14141_v11, %v2057_v50  ;;  %v7126_v50 = vld [vmem:[%s13670_s3 + $0x20] sm:$0xff]  ;;  %v2577_v7 = vadd.f32 %v14147_v43, %v2311_v49  ;;  %v14152_v24 = vld [vmem:[#allocation91_spill] sm:$0xff]  ;;  %v14154_v62 = vld [vmem:[#allocation97_spill] sm:$0xff] }
 0x229   : > { %14133 = vst [vmem:[#allocation36_spill] sm:$0xff] %v11345_v58  ;;  %14138 = vst [vmem:[#allocation51_spill] sm:$0xff] %v11356_v12  ;;  %8570 = vmatprep.subr.mxu1 %v7126_v50  ;;  %v11395_v60 = vadd.f32 %v14152_v24, %v14151_v56  ;;  %v14153_v11 = vld [vmem:[#allocation94_spill] sm:$0xff]  ;;  %v14155_v52 = vld [vmem:[#allocation95_spill] sm:$0xff]  ;;  %v11413_v56 = vadd.f32 %v14161_v63, %v2067_v22 }
 0x22a   : > { %v8265_v2 = vpop.f32.mrf.mxu0  ;;  %v11398_v16 = vadd.f32 %v14153_v11, %v2063_v38  ;;  %v11402_v39 = vadd.f32 %v14155_v52, %v14154_v62  ;;  %v14158_v50 = vld [vmem:[#allocation100_spill] sm:$0xff]  ;;  %v14159_v47 = vld [vmem:[#allocation107_spill] sm:$0xff]  ;;  %v14160_v43 = vld [vmem:[#allocation109_spill] sm:$0xff] }
 0x22b   : > { %v11388_v6 = vadd.f32 %v8265_v2, %v14148_v61  ;;  %v11407_v2 = vadd.f32 %v14157_v33, %v2065_v3  ;;  %v2845_v1 = vadd.f32 %v14158_v50, %v2575_v44  ;;  %v2576_v15 = vadd.f32 %v14159_v47, %v2310_v14  ;;  %14162 = vst [vmem:[#allocation50_spill] sm:$0xff] %v11413_v56  ;;  %v14163_v38 = vld [vmem:[#allocation99_spill] sm:$0xff]  ;;  %v14166_v52 = vld [vmem:[#allocation113_spill] sm:$0xff]  ;;  %v11423_v3 = vld [vmem:[%s13669_s2] ss:$0 sm:$0xff]  ;;  %v11428_v47 = vpop.f32.mrf.mxu1 }
 0x22c   : > { %v11404_v49 = vpop.f32.mrf.mxu0  ;;  %v2579_v61 = vadd.f32 %v14160_v43, %v2313_v34  ;;  %v11416_v24 = vadd.f32 %v14163_v38, %v2069_v32  ;;  %v14165_v11 = vld [vmem:[#allocation111_spill] sm:$0xff]  ;;  %v14167_v44 = vld [vmem:[#allocation101_spill] sm:$0xff]  ;;  %v14170_v43 = vld [vmem:[#allocation116_spill] sm:$0xff] }
 0x22d   : > { %14149 = vst [vmem:[#allocation43_spill] sm:$0xff] %v11388_v6  ;;  %14156 = vst [vmem:[#allocation54_spill] sm:$0xff] %v11404_v49  ;;  %v2578_v62 = vadd.f32 %v14165_v11, %v2312_v48  ;;  %v2581_v6 = vadd.f32 %v14166_v52, %v2315_v35  ;;  %v2844_v14 = vadd.f32 %v14167_v44, %v2574_v31  ;;  %v14168_v33 = vld [vmem:[#allocation103_spill] sm:$0xff]  ;;  %v14171_v48 = vld [vmem:[#allocation118_spill] sm:$0xff] }
 0x22e   : > { %14164 = vst [vmem:[#allocation53_spill] sm:$0xff] %v11416_v24  ;;  %v8324_v49 = vpop.f32.mrf.mxu0  ;;  %v2847_v34 = vadd.f32 %v14168_v33, %v2577_v7  ;;  %v14169_v50 = vld [vmem:[#allocation115_spill] sm:$0xff]  ;;  %v2583_v63 = vadd.f32 %v14170_v43, %v2317_v59  ;;  %v2582_v38 = vadd.f32 %v14171_v48, %v2316_v23  ;;  %v14173_v52 = vld [vmem:[#allocation121_spill] sm:$0xff]  ;;  %v14174_v12 = vld [vmem:[#allocation104_spill] sm:$0xff] }
 0x22f   : > { %v2580_v22 = vadd.f32 %v14169_v50, %v2314_v9  ;;  %v3114_v32 = vadd.f32 %v8324_v49, %v2845_v1  ;;  %v14172_v35 = vld [vmem:[#allocation119_spill] sm:$0xff]  ;;  %v2584_v24 = vadd.f32 %v14173_v52, %v2318_v21  ;;  %v2846_v56 = vadd.f32 %v14174_v12, %v2576_v15  ;;  %v14175_v51 = vld [vmem:[#allocation106_spill] sm:$0xff]  ;;  %v14176_v44 = vld [vmem:[#allocation108_spill] sm:$0xff] }
 0x230   : > { %v2585_v11 = vadd.f32 %v14172_v35, %v2319_v41  ;;  %v2954_v58 = vpop.f32.mrf.mxu0  ;;  %v2849_v31 = vadd.f32 %v14175_v51, %v2579_v61  ;;  %v2848_v33 = vadd.f32 %v14176_v44, %v2578_v62  ;;  %v14177_v49 = vld [vmem:[#allocation110_spill] sm:$0xff]  ;;  %v14179_v50 = vld [vmem:[#allocation124_spill] sm:$0xff]  ;;  %v11445_v35 = vpop.f32.mrf.mxu1  ;;  %v14182_v62 = vld [vmem:[#allocation117_spill] sm:$0xff] }
 0x231   : > { %v11437_v7 = vadd.f32 %v11423_v3, %v3114_v32  ;;  %v3113_v9 = vadd.f32 %v2954_v58, %v2844_v14  ;;  %v2851_v1 = vadd.f32 %v14177_v49, %v2581_v6  ;;  %v14178_v59 = vld [vmem:[#allocation122_spill] sm:$0xff]  ;;  %v2586_v41 = vadd.f32 %v14179_v50, %v2320_v30  ;;  %v14180_v21 = vld [vmem:[#allocation112_spill] sm:$0xff]  ;;  %v14184_v30 = vld [vmem:[#allocation123_spill] sm:$0xff] }
 0x232   : > { %v2587_v23 = vadd.f32 %v14178_v59, %v11328_v36  ;;  %v8327_v43 = vpop.f32.mrf.mxu0  ;;  %v2850_v48 = vadd.f32 %v14180_v21, %v2580_v22  ;;  %v14181_v15 = vld [vmem:[#allocation114_spill] sm:$0xff]  ;;  %v11453_v6 = vadd.f32 %v14182_v62, %v2582_v38  ;;  %v14183_v14 = vld [vmem:[#allocation120_spill] sm:$0xff]  ;;  %v11459_v32 = vadd.f32 %v14184_v30, %v2584_v24  ;;  %v14189_v30 = vld [vmem:[#allocation129_spill] sm:$0xff] }
 0x233   : > { %v3185_v51 = vsub.f32 0.0, %v11437_v7  ;;  %v11449_v12 = vadd.f32 %v11423_v3, %v3113_v9  ;;  %v3116_v58 = vadd.f32 %v8327_v43, %v2847_v34  ;;  %v2853_v61 = vadd.f32 %v14181_v15, %v2583_v63  ;;  %v14185_v34 = vld [vmem:[#allocation126_spill] sm:$0xff]  ;;  %v14186_v63 = vld [vmem:[#allocation125_spill] sm:$0xff]  ;;  %v11475_v43 = vpop.f32.mrf.mxu1 }
 0x234   : > { %v11456_v36 = vadd.f32 %v14183_v14, %v2585_v11  ;;  %v2964_v22 = vpop.f32.mrf.mxu0  ;;  %v11466_v59 = vadd.f32 %v14185_v34, %v2587_v23  ;;  %v2589_v38 = vadd.f32 %v14186_v63, %v11337_v28  ;;  %v11471_v11 = vadd.f32 %v11216_v18, %v2586_v41  ;;  %v14187_v23 = vld [vmem:[#allocation127_spill] sm:$0xff]  ;;  %v14188_v28 = vld [vmem:[#allocation128_spill] sm:$0xff] }
 0x235   : > { %v3218_v52 = vmul.f32 1.442695, %v3185_v51  ;;  %v3184_v44 = vsub.f32 0.0, %v11449_v12  ;;  %v11463_v49 = vadd.f32 %v11423_v3, %v3116_v58  ;;  %v3115_v9 = vadd.f32 %v2964_v22, %v2846_v56 }
 0x236   : > { %v2588_v24 = vadd.f32 %v11212_v13, %v11340_v0  ;;  %v8330_v50 = vpop.f32.mrf.mxu0  ;;  %v2591_v58 = vadd.f32 %v14187_v23, %v11349_v4  ;;  %v2590_v18 = vadd.f32 %v14188_v28, %v11352_v53  ;;  %v2593_v41 = vadd.f32 %v11220_v45, %v11360_v46  ;;  %v14190_v4 = vld [vmem:[#allocation130_spill] sm:$0xff]  ;;  %v8308_v46 = vpop.f32.mrf.mxu1 }
 0x237   : > { %8871 = vpow2.f32 %v3218_v52  ;;  %v3216_v21 = vmul.f32 1.442695, %v3184_v44  ;;  %v3187_v51 = vsub.f32 0.0, %v11463_v49  ;;  %v11479_v56 = vadd.f32 %v11423_v3, %v3115_v9 }
 0x238   : > { %v3118_v13 = vadd.f32 %v8330_v50, %v2849_v31  ;;  %v2974_v0 = vpop.f32.mrf.mxu0  ;;  %v11489_v22 = vadd.f32 %v14189_v30, %v2589_v38  ;;  %v11492_v52 = vadd.f32 %v11228_v57, %v2588_v24  ;;  %v2592_v44 = vadd.f32 %v14190_v4, %v11363_v37  ;;  %v2805_v28 = vpop.f32.mrf.mxu1 }
 0x239   : > { %8873 = vpow2.f32 %v3216_v21  ;;  %v3222_v15 = vmul.f32 1.442695, %v3187_v51  ;;  %v3186_v62 = vsub.f32 0.0, %v11479_v56  ;;  %v3117_v14 = vadd.f32 %v2974_v0, %v2848_v33 }
 0x23a   : > { %v11497_v53 = vadd.f32 %v11423_v3, %v3118_v13  ;;  %v8333_v45 = vpop.f32.mrf.mxu0  ;;  %v11503_v34 = vadd.f32 %v11256_v19, %v2591_v58  ;;  %v11506_v57 = vadd.f32 %v11284_v29, %v2590_v18  ;;  %v11509_v63 = vadd.f32 %v11308_v20, %v2593_v41  ;;  %v14192_v29 = vld [vmem:[#allocation132_spill] sm:$0xff] }
 0x23b   : > { %8875 = vpow2.f32 %v3222_v15  ;;  %v3220_v31 = vmul.f32 1.442695, %v3186_v62  ;;  %v11500_v9 = vadd.f32 %v11423_v3, %v3117_v14  ;;  %v3120_v33 = vadd.f32 %v8333_v45, %v2851_v1  ;;  %v14191_v1 = vld [vmem:[#allocation131_spill] sm:$0xff] }
 0x23c   : > { %v3189_v37 = vsub.f32 0.0, %v11497_v53  ;;  %v2984_v38 = vpop.f32.mrf.mxu0  ;;  %v2595_v19 = vadd.f32 %v14191_v1, %v11369_v54  ;;  %v11519_v51 = vadd.f32 %v11342_v25, %v2592_v44  ;;  %v2594_v20 = vadd.f32 %v14192_v29, %v11372_v17 }
 0x23d   : > { %8877 = vpow2.f32 %v3220_v31  ;;  %v3188_v24 = vsub.f32 0.0, %v11500_v9  ;;  %v11514_v50 = vadd.f32 %v11423_v3, %v3120_v33  ;;  %v3119_v21 = vadd.f32 %v2984_v38, %v2850_v48 }
 0x23e   : > { %v3226_v23 = vmul.f32 1.442695, %v3189_v37  ;;  %v8336_v58 = vpop.f32.mrf.mxu0  ;;  %v2597_v48 = vadd.f32 %v11248_v27, %v11381_v55  ;;  %v2596_v25 = vadd.f32 %v11263_v5, %v11391_v42  ;;  %v2599_v54 = vadd.f32 %v11277_v8, %v11395_v60  ;;  %v8311_v42 = vpop.f32.mrf.mxu1 }
 0x23f   : > { %v3224_v18 = vmul.f32 1.442695, %v3188_v24  ;;  %v3191_v41 = vsub.f32 0.0, %v11514_v50  ;;  %v11525_v13 = vadd.f32 %v11423_v3, %v3119_v21  ;;  %v3122_v0 = vadd.f32 %v8336_v58, %v2853_v61 }
 0x240   : > { %8879 = vpow2.f32 %v3226_v23  ;;  %v2994_v17 = vpop.f32.mrf.mxu0  ;;  %v11538_v61 = vadd.f32 %v11385_v40, %v2595_v19  ;;  %v11541_v27 = vadd.f32 %v11428_v47, %v2594_v20  ;;  %v2598_v5 = vadd.f32 %v11290_v10, %v11398_v16  ;;  %v2815_v24 = vpop.f32.mrf.mxu1  ;;  %v14193_v20 = vld [vmem:[#allocation47_spill] sm:$0xff] }
 0x241   : > { %8881 = vpow2.f32 %v3224_v18  ;;  %v3230_v15 = vmul.f32 1.442695, %v3191_v41  ;;  %v3190_v62 = vsub.f32 0.0, %v11525_v13  ;;  %v11535_v14 = vadd.f32 %v11423_v3, %v3122_v0 }
 0x242   : > { %v3121_v8 = vadd.f32 %v2994_v17, %v11453_v6  ;;  %v8339_v55 = vpop.f32.mrf.mxu0  ;;  %v11549_v40 = vadd.f32 %v11445_v35, %v2597_v48  ;;  %v11552_v47 = vadd.f32 %v11475_v43, %v2596_v25  ;;  %v11554_v45 = vadd.f32 %v8308_v46, %v2599_v54  ;;  %v8314_v25 = vpop.f32.mrf.mxu1 }
 0x243   : > { %8883 = vpow2.f32 %v3230_v15  ;;  %v3228_v60 = vmul.f32 1.442695, %v3190_v62  ;;  %v3193_v30 = vsub.f32 0.0, %v11535_v14  ;;  %v3124_v4 = vadd.f32 %v8339_v55, %v11456_v36 }
 0x244   : > { %v8872_v44 = vpop.eup %8871  ;;  %v11557_v10 = vadd.f32 %v11423_v3, %v3121_v8  ;;  %v3004_v16 = vpop.f32.mrf.mxu0  ;;  %v2601_v35 = vadd.f32 %v11301_v26, %v11402_v39  ;;  %v11564_v37 = vadd.f32 %v2805_v28, %v2598_v5  ;;  %v2600_v23 = vadd.f32 %v14193_v20, %v11407_v2 }
 0x245   : > { %v3281_v6 = vadd.f32 1.0, %v8872_v44  ;;  %8885 = vpow2.f32 %v3228_v60  ;;  %v3234_v31 = vmul.f32 1.442695, %v3193_v30  ;;  %v11560_v33 = vadd.f32 %v11423_v3, %v3124_v4  ;;  %v14194_v44 = vld [vmem:[#allocation50_spill] sm:$0xff] }
 0x246   : > { %v8874_v36 = vpop.eup %8873  ;;  %v3192_v43 = vsub.f32 0.0, %v11557_v10  ;;  %v3123_v46 = vadd.f32 %v3004_v16, %v11459_v32  ;;  %v8342_v38 = vpop.f32.mrf.mxu0  ;;  %v11578_v0 = vadd.f32 %v8311_v42, %v2601_v35  ;;  %v11584_v62 = vadd.f32 %v2815_v24, %v2600_v23  ;;  %v14195_v16 = vld [vmem:[#allocation51_spill] sm:$0xff] }
 0x247   : > { %8887 = vrcp.f32 %v3281_v6  ;;  %v3280_v21 = vadd.f32 1.0, %v8874_v36  ;;  %v3195_v1 = vsub.f32 0.0, %v11560_v33  ;;  %v3126_v19 = vadd.f32 %v8342_v38, %v11466_v59  ;;  %v2825_v35 = vpop.f32.mrf.mxu1 }
 0x248   : > { %v8876_v29 = vpop.eup %8875  ;;  %8889 = vpow2.f32 %v3234_v31  ;;  %v3232_v26 = vmul.f32 1.442695, %v3192_v43  ;;  %v11573_v39 = vadd.f32 %v11423_v3, %v3123_v46  ;;  %v3014_v58 = vpop.f32.mrf.mxu0 }
 0x249   : > { %8891 = vrcp.f32 %v3280_v21  ;;  %v3283_v32 = vadd.f32 1.0, %v8876_v29  ;;  %v3238_v28 = vmul.f32 1.442695, %v3195_v1  ;;  %v11576_v18 = vadd.f32 %v11423_v3, %v3126_v19  ;;  %v14196_v21 = vld [vmem:[#allocation36_spill] sm:$0xff] }
 0x24a   : > { %v8878_v41 = vpop.eup %8877  ;;  %8893 = vpow2.f32 %v3232_v26  ;;  %v3194_v59 = vsub.f32 0.0, %v11573_v39  ;;  %v3125_v2 = vadd.f32 %v3014_v58, %v11471_v11  ;;  %v8345_v48 = vpop.f32.mrf.mxu0 }
 0x24b   : > { %8895 = vrcp.f32 %v3283_v32  ;;  %v3282_v54 = vadd.f32 1.0, %v8878_v41  ;;  %v3197_v17 = vsub.f32 0.0, %v11576_v18  ;;  %v3128_v15 = vadd.f32 %v8345_v48, %v11489_v22 }
 0x24c   : > { %8897 = vpow2.f32 %v3238_v28  ;;  %v3236_v5 = vmul.f32 1.442695, %v3194_v59  ;;  %v11587_v8 = vadd.f32 %v11423_v3, %v3125_v2  ;;  %v3024_v55 = vpop.f32.mrf.mxu0  ;;  %v2602_v22 = vadd.f32 %v14195_v16, %v14194_v44 }
 0x24d   : > { %v8880_v42 = vpop.eup %8879  ;;  %8899 = vrcp.f32 %v3282_v54  ;;  %v3242_v60 = vmul.f32 1.442695, %v3197_v17  ;;  %v11590_v11 = vadd.f32 %v11423_v3, %v3128_v15  ;;  %v3127_v30 = vadd.f32 %v3024_v55, %v11492_v52  ;;  %v14197_v54 = vld [vmem:[#allocation53_spill] sm:$0xff]  ;;  %v14198_v17 = vld [vmem:[#allocation54_spill] sm:$0xff] }
 0x24e   : > { %v8882_v4 = vpop.eup %8881  ;;  %v3285_v6 = vadd.f32 1.0, %v8880_v42  ;;  %8901 = vpow2.f32 %v3236_v5  ;;  %v3196_v31 = vsub.f32 0.0, %v11587_v8  ;;  %v8348_v36 = vpop.f32.mrf.mxu0  ;;  %v11601_v52 = vadd.f32 %v8314_v25, %v14196_v21 }
 0x24f   : > { %v3284_v43 = vadd.f32 1.0, %v8882_v4  ;;  %8903 = vpow2.f32 %v3242_v60  ;;  %v3199_v46 = vsub.f32 0.0, %v11590_v11  ;;  %v11598_v38 = vadd.f32 %v11423_v3, %v3127_v30 }
 0x250   : > { %v8884_v24 = vpop.eup %8883  ;;  %8905 = vrcp.f32 %v3285_v6  ;;  %v3240_v1 = vmul.f32 1.442695, %v3196_v31  ;;  %v3130_v19 = vadd.f32 %v8348_v36, %v11503_v34  ;;  %v3034_v29 = vpop.f32.mrf.mxu0  ;;  %v11605_v32 = vadd.f32 %v2825_v35, %v2602_v22 }
 0x251   : > { %8907 = vrcp.f32 %v3284_v43  ;;  %v3287_v20 = vadd.f32 1.0, %v8884_v24  ;;  %v3246_v23 = vmul.f32 1.442695, %v3199_v46  ;;  %v3198_v26 = vsub.f32 0.0, %v11598_v38  ;;  %v14199_v24 = vld [vmem:[#allocation43_spill] sm:$0xff] }
 0x252   : > { %v8886_v58 = vpop.eup %8885  ;;  %8909 = vpow2.f32 %v3240_v1  ;;  %v11608_v28 = vadd.f32 %v11423_v3, %v3130_v19  ;;  %v3129_v41 = vadd.f32 %v3034_v29, %v11506_v57  ;;  %v8351_v59 = vpop.f32.mrf.mxu0  ;;  %v11614_v15 = vadd.f32 %v14198_v17, %v14197_v54 }
 0x253   : > { %8911 = vrcp.f32 %v3287_v20  ;;  %v3286_v2 = vadd.f32 1.0, %v8886_v58  ;;  %v3244_v48 = vmul.f32 1.442695, %v3198_v26  ;;  %v3132_v34 = vadd.f32 %v8351_v59, %v11509_v63  ;;  %v8317_v57 = vpop.f32.mrf.mxu1 }
 0x254   : > { %v8888_v25 = vpop.eup %8887  ;;  %8913 = vpow2.f32 %v3246_v23  ;;  %v3201_v5 = vsub.f32 0.0, %v11608_v28  ;;  %v11618_v55 = vadd.f32 %v11423_v3, %v3129_v41  ;;  %v3044_v42 = vpop.f32.mrf.mxu0  ;;  %v11634_v21 = vadd.f32 %v8317_v57, %v14199_v24 }
 0x255   : > { %v8890_v60 = vpop.eup %8889  ;;  %v3377_v30 = vmul.f32 %v8888_v25, %v11437_v7  ;;  %8915 = vrcp.f32 %v3286_v2  ;;  %v11622_v4 = vadd.f32 %v11423_v3, %v3132_v34  ;;  %v3131_v63 = vadd.f32 %v3044_v42, %v11519_v51 }
 0x256   : > { %v8892_v44 = vpop.eup %8891  ;;  %v3289_v16 = vadd.f32 1.0, %v8890_v60  ;;  %8917 = vpow2.f32 %v3244_v48  ;;  %v3250_v22 = vmul.f32 1.442695, %v3201_v5  ;;  %v3200_v6 = vsub.f32 0.0, %v11618_v55  ;;  %v8354_v31 = vpop.f32.mrf.mxu0 }
 0x257   : > { %v8894_v36 = vpop.eup %8893  ;;  %3466 = vst.msk [vmem:[#allocation3 + $0x21] sm:$0xff] %vm3408_vm4, %v3377_v30  ;;  %v3376_v35 = vmul.f32 %v8892_v44, %v11449_v12  ;;  %v3203_v7 = vsub.f32 0.0, %v11622_v4  ;;  %v11630_v43 = vadd.f32 %v11423_v3, %v3131_v63  ;;  %v3134_v46 = vadd.f32 %v8354_v31, %v11538_v61 }
 0x258   : > { %v8896_v51 = vpop.eup %8895  ;;  %8919 = vrcp.f32 %v3289_v16  ;;  %v3288_v1 = vadd.f32 1.0, %v8894_v36  ;;  %v3248_v19 = vmul.f32 1.442695, %v3200_v6  ;;  %v3054_v29 = vpop.f32.mrf.mxu0 }
 0x259   : > { %v8898_v20 = vpop.eup %8897  ;;  %3465 = vst.msk [vmem:[#allocation3 + $0x19] sm:$0xff] %vm3408_vm4, %v3376_v35  ;;  %v3379_v12 = vmul.f32 %v8896_v51, %v11463_v49  ;;  %8921 = vpow2.f32 %v3250_v22  ;;  %v3254_v23 = vmul.f32 1.442695, %v3203_v7  ;;  %v3202_v26 = vsub.f32 0.0, %v11630_v43 }
 0x25a   : > { %v8900_v58 = vpop.eup %8899  ;;  %8923 = vrcp.f32 %v3288_v1  ;;  %v3291_v61 = vadd.f32 1.0, %v8898_v20  ;;  %v11640_v41 = vadd.f32 %v11423_v3, %v3134_v46  ;;  %v3133_v59 = vadd.f32 %v3054_v29, %v11541_v27  ;;  %v8357_v2 = vpop.f32.mrf.mxu0 }
 0x25b   : > { %v8902_v48 = vpop.eup %8901  ;;  %3468 = vst.msk [vmem:[#allocation3 + $0x39] sm:$0xff] %vm3408_vm4, %v3379_v12  ;;  %v3378_v34 = vmul.f32 %v8900_v58, %v11479_v56  ;;  %8925 = vpow2.f32 %v3248_v19  ;;  %v3252_v49 = vmul.f32 1.442695, %v3202_v26  ;;  %v3136_v25 = vadd.f32 %v8357_v2, %v11549_v40  ;;  %v2835_v46 = vpop.f32.mrf.mxu1 }
 0x25c   : > { %v8904_v54 = vpop.eup %8903  ;;  %8927 = vrcp.f32 %v3291_v61  ;;  %v3290_v17 = vadd.f32 1.0, %v8902_v48  ;;  %v3205_v5 = vsub.f32 0.0, %v11640_v41  ;;  %v11648_v42 = vadd.f32 %v11423_v3, %v3133_v59  ;;  %v3064_v60 = vpop.f32.mrf.mxu0 }
 0x25d   : > { %v8906_v27 = vpop.eup %8905  ;;  %3467 = vst.msk [vmem:[#allocation3 + $0x31] sm:$0xff] %vm3408_vm4, %v3378_v34  ;;  %v3293_v57 = vadd.f32 1.0, %v8904_v54  ;;  %8929 = vpow2.f32 %v3254_v23  ;;  %v11652_v56 = vadd.f32 %v11423_v3, %v3136_v25  ;;  %v3135_v30 = vadd.f32 %v3064_v60, %v11552_v47 }
 0x25e   : > { %v8908_v40 = vpop.eup %8907  ;;  %v3381_v63 = vmul.f32 %v8906_v27, %v11497_v53  ;;  %8931 = vrcp.f32 %v3290_v17  ;;  %v3258_v44 = vmul.f32 1.442695, %v3205_v5  ;;  %v3204_v16 = vsub.f32 0.0, %v11648_v42  ;;  %v8360_v22 = vpop.f32.mrf.mxu0 }
 0x25f   : > { %v8910_v6 = vpop.eup %8909  ;;  %v3380_v31 = vmul.f32 %v8908_v40, %v11500_v9  ;;  %8933 = vrcp.f32 %v3293_v57  ;;  %v3207_v36 = vsub.f32 0.0, %v11652_v56  ;;  %v11660_v35 = vadd.f32 %v11423_v3, %v3135_v30 }
 0x260   : > { %v8912_v7 = vpop.eup %8911  ;;  %3470 = vst.msk [vmem:[#allocation3 + $0x51] sm:$0xff] %vm3408_vm4, %v3381_v63  ;;  %v3292_v47 = vadd.f32 1.0, %v8910_v6  ;;  %8935 = vpow2.f32 %v3252_v49  ;;  %v3256_v53 = vmul.f32 1.442695, %v3204_v16  ;;  %v3138_v51 = vadd.f32 %v8360_v22, %v11554_v45  ;;  %v3074_v24 = vpop.f32.mrf.mxu0  ;;  %v11664_v1 = vld [vmem:[#allocation3 + $0x18] sm:$0xff]  ;;  %v11666_v19 = vld [vmem:[#allocation3 + $0x20] sm:$0xff] }
 0x261   : > { %v8914_v9 = vpop.eup %8913  ;;  %3469 = vst.msk [vmem:[#allocation3 + $0x49] sm:$0xff] %vm3408_vm4, %v3380_v31  ;;  %v3383_v29 = vmul.f32 %v8912_v7, %v11514_v50  ;;  %8937 = vpow2.f32 %v3258_v44  ;;  %v3262_v20 = vmul.f32 1.442695, %v3207_v36  ;;  %v3206_v12 = vsub.f32 0.0, %v11660_v35  ;;  %8425 = vmatprep.mubr.msk.f32.mxu0 %vm3408_vm4, %v11664_v1  ;;  %v11713_v22 = vld [vmem:[#allocation3 + $0x28] sm:$0x3] }
 0x262   : > { %v8916_v23 = vpop.eup %8915  ;;  %8939 = vrcp.f32 %v3292_v47  ;;  %v3295_v45 = vadd.f32 1.0, %v8914_v9  ;;  %v11674_v26 = vadd.f32 %v11423_v3, %v3138_v51  ;;  %v3137_v58 = vadd.f32 %v3074_v24, %v11564_v37  ;;  %v8363_v61 = vpop.f32.mrf.mxu0  ;;  %8426 = vmatmul.mubr.msk.f32.gmra.mxu0 %vm3408_vm4, %v11666_v19 }
 0x263   : > { %v8918_v50 = vpop.eup %8917  ;;  %v11680_v59 = vadd.f32 %v2835_v46, %v11614_v15  ;;  %3472 = vst.msk [vmem:[#allocation3 + $0x69] sm:$0xff] %vm3408_vm4, %v3383_v29  ;;  %v3382_v2 = vmul.f32 %v8916_v23, %v11525_v13  ;;  %8941 = vpow2.f32 %v3256_v53  ;;  %v3260_v48 = vmul.f32 1.442695, %v3206_v12 }
 0x264   : > { %8943 = vrcp.f32 %v3295_v45  ;;  %v3294_v34 = vadd.f32 1.0, %v8918_v50  ;;  %v3209_v49 = vsub.f32 0.0, %v11674_v26  ;;  %v11686_v37 = vadd.f32 %v11423_v3, %v3137_v58  ;;  %v3084_v25 = vpop.f32.mrf.mxu0  ;;  %v11688_v54 = vld [vmem:[#allocation3 + $0x30] sm:$0xff]  ;;  %v11690_v17 = vld [vmem:[#allocation3 + $0x38] sm:$0xff] }
 0x265   : > { %v8920_v15 = vpop.eup %8919  ;;  %3471 = vst.msk [vmem:[#allocation3 + $0x61] sm:$0xff] %vm3408_vm4, %v3382_v2  ;;  %8945 = vpow2.f32 %v3262_v20  ;;  %v3605_v13 = vrot.slane %v11664_v1, 1  ;;  %v3140_v5 = vadd.f32 %v8363_v61, %v11578_v0  ;;  %v3139_v60 = vadd.f32 %v3084_v25, %v11584_v62  ;;  %8428 = vmatprep.mubr.msk.f32.mxu0 %vm3408_vm4, %v11688_v54  ;;  %v11705_v0 = vld [vmem:[%s13670_s3 + $0x28] sm:$0xff] }
 0x266   : > { %v8922_v27 = vpop.eup %8921  ;;  %v3385_v57 = vmul.f32 %v8920_v15, %v11535_v14  ;;  %8947 = vrcp.f32 %v3294_v34  ;;  %v3266_v30 = vmul.f32 1.442695, %v3209_v49  ;;  %v3208_v40 = vsub.f32 0.0, %v11686_v37  ;;  %v8366_v63 = vpop.f32.mrf.mxu0  ;;  %8429 = vmatmul.mubr.msk.f32.gmra.mxu0 %vm3408_vm4, %v11690_v17  ;;  %8620 = vmatprep.subr.mxu0 %v11705_v0  ;;  %v11744_v15 = vld [vmem:[#allocation3 + $0x40] sm:$0x3] }
 0x267   : > { %v8924_v62 = vpop.eup %8923  ;;  %v3297_v44 = vadd.f32 1.0, %v8922_v27  ;;  %8949 = vpow2.f32 %v3260_v48  ;;  %v11708_v16 = vadd.f32 %v11423_v3, %v3140_v5  ;;  %v11711_v14 = vadd.f32 %v11423_v3, %v3139_v60 }
 0x268   : > { %v8926_v6 = vpop.eup %8925  ;;  %3474 = vst.msk [vmem:[#allocation3 + $0x81] sm:$0xff] %vm3408_vm4, %v3385_v57  ;;  %v3384_v31 = vmul.f32 %v8924_v62, %v11557_v10  ;;  %8951 = vpow2.f32 %v3266_v30  ;;  %v3264_v36 = vmul.f32 1.442695, %v3208_v40  ;;  %v3606_v7 = vrot.slane %v11666_v19, 1  ;;  %v3094_v46 = vpop.f32.mrf.mxu0  ;;  %v11719_v47 = vld [vmem:[#allocation3 + $0x48] sm:$0xff]  ;;  %v11721_v53 = vld [vmem:[#allocation3 + $0x50] sm:$0xff] }
 0x269   : > { %v8928_v51 = vpop.eup %8927  ;;  %8953 = vrcp.f32 %v3297_v44  ;;  %v3296_v24 = vadd.f32 1.0, %v8926_v6  ;;  %v3211_v9 = vsub.f32 0.0, %v11708_v16  ;;  %v3210_v29 = vsub.f32 0.0, %v11711_v14  ;;  %8431 = vmatprep.mubr.msk.f32.mxu0 %vm3408_vm4, %v11719_v47 }
 0x26a   : > { %v8930_v10 = vpop.eup %8929  ;;  %3473 = vst.msk [vmem:[#allocation3 + $0x79] sm:$0xff] %vm3408_vm4, %v3384_v31  ;;  %v3387_v20 = vmul.f32 %v8928_v51, %v11560_v33  ;;  %8955 = vpow2.f32 %v3264_v36  ;;  %v11730_v12 = vsel %vm468_vm2, %v3605_v13, %v3606_v7  ;;  %v3608_v23 = vrot.slane %v11713_v22, 1  ;;  %8432 = vmatmul.mubr.msk.f32.gmra.mxu0 %vm3408_vm4, %v11721_v53  ;;  %v8369_v2 = vpop.f32.mrf.mxu0 }
 0x26b   : > { %v8932_v45 = vpop.eup %8931  ;;  %8957 = vrcp.f32 %v3296_v24  ;;  %v3299_v58 = vadd.f32 1.0, %v8930_v10  ;;  %v3270_v61 = vmul.f32 1.442695, %v3211_v9  ;;  %v3268_v50 = vmul.f32 1.442695, %v3210_v29  ;;  %8375 = vmatprep.mubr.msk.f32.mxu1 %vm3408_vm4, %v11730_v12 }
 0x26c   : > { %v8934_v48 = vpop.eup %8933  ;;  %3476 = vst.msk [vmem:[#allocation3 + $0x99] sm:$0xff] %vm3408_vm4, %v3387_v20  ;;  %v3386_v33 = vmul.f32 %v8932_v45, %v11573_v39  ;;  %v11740_v34 = vsel %vm468_vm2, %v3606_v7, %v3608_v23  ;;  %v3142_v49 = vadd.f32 %v8366_v63, %v11601_v52  ;;  %v3141_v25 = vadd.f32 %v3094_v46, %v11605_v32  ;;  %v11746_v13 = vld [vmem:[#allocation3 + $0x60] sm:$0xff]  ;;  %v11748_v5 = vld [vmem:[#allocation3 + $0x68] sm:$0xff]  ;;  %v3104_v6 = vpop.f32.mrf.mxu0 }
 0x26d   : > { %v8936_v60 = vpop.eup %8935  ;;  %v3389_v27 = vmul.f32 %v8934_v48, %v11576_v18  ;;  %8959 = vrcp.f32 %v3299_v58  ;;  %8376 = vmatmul.mubr.msk.f32.gmra.mxu1 %vm3408_vm4, %v11740_v34  ;;  %v3610_v39 = vrot.slane %v11688_v54, 1  ;;  %v3611_v57 = vrot.slane %v11690_v17, 1  ;;  %8434 = vmatprep.mubr.msk.f32.mxu0 %vm3408_vm4, %v11746_v13 }
 0x26e   : > { %v8938_v52 = vpop.eup %8937  ;;  %3475 = vst.msk [vmem:[#allocation3 + $0x91] sm:$0xff] %vm3408_vm4, %v3386_v33  ;;  %v3298_v32 = vadd.f32 1.0, %v8936_v60  ;;  %8961 = vpow2.f32 %v3270_v61  ;;  %v11759_v30 = vadd.f32 %v11423_v3, %v3142_v49  ;;  %v11762_v18 = vadd.f32 %v11423_v3, %v3141_v25  ;;  %8435 = vmatmul.mubr.msk.f32.gmra.mxu0 %vm3408_vm4, %v11748_v5 }
 0x26f   : > { %v8940_v40 = vpop.eup %8939  ;;  %3478 = vst.msk [vmem:[#allocation3 + $0xb1] sm:$0xff] %vm3408_vm4, %v3389_v27  ;;  %v3301_v63 = vadd.f32 1.0, %v8938_v52  ;;  %8963 = vpow2.f32 %v3268_v50  ;;  %v11768_v62 = vsel %vm468_vm2, %v3610_v39, %v3611_v57  ;;  %v3613_v44 = vrot.slane %v11744_v15, 1  ;;  %v11789_v50 = vld [vmem:[#allocation3 + $0x58] sm:$0x3] }
 0x270   : > { %v8942_v31 = vpop.eup %8941  ;;  %v3388_v36 = vmul.f32 %v8940_v40, %v11587_v8  ;;  %8965 = vrcp.f32 %v3298_v32  ;;  %v3213_v7 = vsub.f32 0.0, %v11759_v30  ;;  %v3212_v46 = vsub.f32 0.0, %v11762_v18  ;;  %8378 = vmatprep.mubr.msk.f32.mxu1 %vm3408_vm4, %v11768_v62 }
 0x271   : > { %v8944_v51 = vpop.eup %8943  ;;  %8967 = vrcp.f32 %v3301_v63  ;;  %v3300_v24 = vadd.f32 1.0, %v8942_v31  ;;  %v11777_v9 = vsel %vm468_vm2, %v3611_v57, %v3613_v44  ;;  %v3144_v29 = vadd.f32 %v8369_v2, %v11634_v21  ;;  %v11780_v10 = vld [vmem:[#allocation3 + $0x78] sm:$0xff]  ;;  %v11782_v20 = vld [vmem:[#allocation3 + $0x80] sm:$0xff]  ;;  %v11816_v44 = vld [vmem:[#allocation3 + $0x70] sm:$0x3] }
 0x272   : > { %v8946_v8 = vpop.eup %8945  ;;  %3477 = vst.msk [vmem:[#allocation3 + $0xa9] sm:$0xff] %vm3408_vm4, %v3388_v36  ;;  %v3391_v23 = vmul.f32 %v8944_v51, %v11590_v11  ;;  %v3274_v45 = vmul.f32 1.442695, %v3213_v7  ;;  %v3272_v58 = vmul.f32 1.442695, %v3212_v46  ;;  %8379 = vmatmul.mubr.msk.f32.gmra.mxu1 %vm3408_vm4, %v11777_v9  ;;  %v3143_v61 = vadd.f32 %v3104_v6, %v11680_v59  ;;  %8437 = vmatprep.mubr.msk.f32.mxu0 %vm3408_vm4, %v11780_v10 }
 0x273   : > { %v8948_v21 = vpop.eup %8947  ;;  %8969 = vrcp.f32 %v3300_v24  ;;  %v3303_v2 = vadd.f32 1.0, %v8946_v8  ;;  %v11794_v48 = vadd.f32 %v11423_v3, %v3144_v29  ;;  %v3615_v11 = vrot.slane %v11719_v47, 1  ;;  %8438 = vmatmul.mubr.msk.f32.gmra.mxu0 %vm3408_vm4, %v11782_v20 }
 0x274   : > { %v8950_v33 = vpop.eup %8949  ;;  %3480 = vst.msk [vmem:[#allocation3 + $0xc9] sm:$0xff] %vm3408_vm4, %v3391_v23  ;;  %v3390_v59 = vmul.f32 %v8948_v21, %v11598_v38  ;;  %8971 = vpow2.f32 %v3274_v45  ;;  %v11802_v49 = vadd.f32 %v11423_v3, %v3143_v61  ;;  %v3616_v25 = vrot.slane %v11721_v53, 1  ;;  %v11835_v45 = vld [vmem:[#allocation3 + $0x88] sm:$0x3] }
 0x275   : > { %v8952_v60 = vpop.eup %8951  ;;  %8973 = vrcp.f32 %v3303_v2  ;;  %v3302_v27 = vadd.f32 1.0, %v8950_v33  ;;  %v3215_v39 = vsub.f32 0.0, %v11794_v48  ;;  %v3618_v57 = vrot.slane %v11789_v50, 1  ;;  %v11807_v52 = vld [vmem:[#allocation3 + $0x90] sm:$0xff]  ;;  %v11809_v32 = vld [vmem:[#allocation3 + $0x98] sm:$0xff] }
 0x276   : > { %v8954_v40 = vpop.eup %8953  ;;  %3479 = vst.msk [vmem:[#allocation3 + $0xc1] sm:$0xff] %vm3408_vm4, %v3390_v59  ;;  %v3305_v38 = vadd.f32 1.0, %v8952_v60  ;;  %8975 = vpow2.f32 %v3272_v58  ;;  %v3214_v3 = vsub.f32 0.0, %v11802_v49  ;;  %v11814_v63 = vsel %vm468_vm2, %v3615_v11, %v3616_v25  ;;  %8440 = vmatprep.mubr.msk.f32.mxu0 %vm3408_vm4, %v11807_v52 }
 0x277   : > { %v8956_v6 = vpop.eup %8955  ;;  %v3393_v31 = vmul.f32 %v8954_v40, %v11608_v28  ;;  %8977 = vrcp.f32 %v3302_v27  ;;  %v3278_v36 = vmul.f32 1.442695, %v3215_v39  ;;  %8381 = vmatprep.mubr.msk.f32.mxu1 %vm3408_vm4, %v11814_v63  ;;  %v11824_v7 = vsel %vm468_vm2, %v3616_v25, %v3618_v57  ;;  %8441 = vmatmul.mubr.msk.f32.gmra.mxu0 %vm3408_vm4, %v11809_v32 }
 0x278   : > { %v8958_v46 = vpop.eup %8957  ;;  %8979 = vrcp.f32 %v3305_v38  ;;  %v3304_v51 = vadd.f32 1.0, %v8956_v6  ;;  %v3276_v24 = vmul.f32 1.442695, %v3214_v3  ;;  %8382 = vmatmul.mubr.msk.f32.gmra.mxu1 %vm3408_vm4, %v11824_v7  ;;  %v3620_v28 = vrot.slane %v11746_v13, 1  ;;  %v11866_v6 = vld [vmem:[#allocation3 + $0xa0] sm:$0x3] }
 0x279   : > { %3482 = vst.msk [vmem:[#allocation3 + $0xe1] sm:$0xff] %vm3408_vm4, %v3393_v31  ;;  %v3392_v29 = vmul.f32 %v8958_v46, %v11618_v55  ;;  %8981 = vpow2.f32 %v3278_v36  ;;  %v3621_v8 = vrot.slane %v11748_v5, 1  ;;  %v3623_v23 = vrot.slane %v11816_v44, 1  ;;  %v11837_v58 = vld [vmem:[#allocation3 + $0xa8] sm:$0xff]  ;;  %v11839_v61 = vld [vmem:[#allocation3 + $0xb0] sm:$0xff] }
 0x27a   : > { %v8960_v21 = vpop.eup %8959  ;;  %8983 = vrcp.f32 %v3304_v51  ;;  %v3625_v2 = vrot.slane %v11780_v10, 1  ;;  %v3626_v11 = vrot.slane %v11782_v20, 1  ;;  %8443 = vmatprep.mubr.msk.f32.mxu0 %vm3408_vm4, %v11837_v58  ;;  %v3630_v57 = vrot.slane %v11807_v52, 1 }
 0x27b   : > { %v8962_v55 = vpop.eup %8961  ;;  %3481 = vst.msk [vmem:[#allocation3 + $0xd9] sm:$0xff] %vm3408_vm4, %v3392_v29  ;;  %v3395_v33 = vmul.f32 %v8960_v21, %v11622_v4  ;;  %8985 = vpow2.f32 %v3276_v24  ;;  %v11848_v59 = vsel %vm468_vm2, %v3620_v28, %v3621_v8  ;;  %v11851_v25 = vsel %vm468_vm2, %v3621_v8, %v3623_v23  ;;  %8444 = vmatmul.mubr.msk.f32.gmra.mxu0 %vm3408_vm4, %v11839_v61 }
 0x27c   : > { %14200 = vst [vmem:[#allocation56_spill] sm:$0xff] %v11848_v59  ;;  %14201 = vst [vmem:[#allocation57_spill] sm:$0xff] %v11851_v25  ;;  %v8964_v60 = vpop.eup %8963  ;;  %v3307_v27 = vadd.f32 1.0, %v8962_v55  ;;  %8384 = vmatprep.mubr.msk.f32.mxu1 %vm3408_vm4, %v11848_v59  ;;  %v11858_v39 = vsel %vm468_vm2, %v3625_v2, %v3626_v11  ;;  %v3628_v4 = vrot.slane %v11835_v45, 1  ;;  %v3631_v3 = vrot.slane %v11809_v32, 1 }
 0x27d   : > { %14202 = vst [vmem:[#allocation59_spill] sm:$0xff] %v11858_v39  ;;  %v8966_v40 = vpop.eup %8965  ;;  %3484 = vst.msk [vmem:[#allocation3 + $0xf9] sm:$0xff] %vm3408_vm4, %v3395_v33  ;;  %v3306_v38 = vadd.f32 1.0, %v8964_v60  ;;  %8385 = vmatmul.mubr.msk.f32.gmra.mxu1 %vm3408_vm4, %v11851_v25  ;;  %v11868_v31 = vld [vmem:[#allocation3 + $0xc0] sm:$0xff]  ;;  %v11870_v36 = vld [vmem:[#allocation3 + $0xc8] sm:$0xff]  ;;  %v3635_v28 = vrot.slane %v11837_v58, 1 }
 0x27e   : > { %v8968_v46 = vpop.eup %8967  ;;  %v3394_v51 = vmul.f32 %v8966_v40, %v11630_v43  ;;  %8987 = vrcp.f32 %v3307_v27  ;;  %8387 = vmatprep.mubr.msk.f32.mxu1 %vm3408_vm4, %v11858_v39  ;;  %v11876_v24 = vsel %vm468_vm2, %v3626_v11, %v3628_v4  ;;  %8446 = vmatprep.mubr.msk.f32.mxu0 %vm3408_vm4, %v11868_v31  ;;  %v11883_v8 = vsel %vm468_vm2, %v3630_v57, %v3631_v3  ;;  %v9128_v25 = vld [vmem:[#allocation3 + $0x8] sm:$0xff] }
 0x27f   : > { %14203 = vst [vmem:[#allocation60_spill] sm:$0xff] %v11876_v24  ;;  %v3397_v29 = vmul.f32 %v8968_v46, %v11640_v41  ;;  %8989 = vrcp.f32 %v3306_v38  ;;  %14204 = vst [vmem:[#allocation62_spill] sm:$0xff] %v11883_v8  ;;  %v3636_v43 = vrot.slane %v11839_v61, 1  ;;  %8447 = vmatmul.mubr.msk.f32.gmra.mxu0 %vm3408_vm4, %v11870_v36  ;;  %v3633_v21 = vrot.slane %v11866_v6, 1  ;;  %v11894_v41 = vld [vmem:[#allocation3 + $0xb8] sm:$0x3] }
 0x280   : > { %v8970_v23 = vpop.eup %8969  ;;  %3483 = vst.msk [vmem:[#allocation3 + $0xf1] sm:$0xff] %vm3408_vm4, %v3394_v51  ;;  %v3640_v38 = vrot.slane %v11868_v31, 1  ;;  %v3641_v46 = vrot.slane %v11870_v36, 1  ;;  %v4261_v59 = vrot.slane %v9128_v25, 2  ;;  %v12119_v25 = vld [vmem:[%s13670_s3 + $0x38] sm:$0xff] }
 0x281   : > { %v8972_v2 = vpop.eup %8971  ;;  %3486 = vst.msk [vmem:[#allocation3 + $0x111] sm:$0xff] %vm3408_vm4, %v3397_v29  ;;  %v3396_v11 = vmul.f32 %v8970_v23, %v11648_v42  ;;  %8388 = vmatmul.mubr.msk.f32.gmra.mxu1 %vm3408_vm4, %v11876_v24  ;;  %v11899_v60 = vsel %vm468_vm2, %v3631_v3, %v3633_v21  ;;  %v11908_v40 = vsel %vm468_vm2, %v3635_v28, %v3636_v43  ;;  %v3638_v29 = vrot.slane %v11894_v41, 1  ;;  %v11921_v28 = vld [vmem:[#allocation3 + $0xd0] sm:$0x3] }
 0x282   : > { %v8974_v55 = vpop.eup %8973  ;;  %v3309_v33 = vadd.f32 1.0, %v8972_v2  ;;  %8390 = vmatprep.mubr.msk.f32.mxu1 %vm3408_vm4, %v11883_v8  ;;  %14205 = vst [vmem:[#allocation69_spill] sm:$0xff] %v11899_v60  ;;  %v11901_v27 = vld [vmem:[#allocation3 + $0xd8] sm:$0xff]  ;;  %v11903_v4 = vld [vmem:[#allocation3 + $0xe0] sm:$0xff]  ;;  %14206 = vst [vmem:[#allocation63_spill] sm:$0xff] %v11908_v40 }
 0x283   : > { %v8976_v57 = vpop.eup %8975  ;;  %3485 = vst.msk [vmem:[#allocation3 + $0x109] sm:$0xff] %vm3408_vm4, %v3396_v11  ;;  %v3399_v42 = vmul.f32 %v8974_v55, %v11652_v56  ;;  %8449 = vmatprep.mubr.msk.f32.mxu0 %vm3408_vm4, %v11901_v27  ;;  %v11927_v11 = vsel %vm468_vm2, %v3636_v43, %v3638_v29  ;;  %v3643_v29 = vrot.slane %v11921_v28, 1 }
 0x284   : > { %v8978_v3 = vpop.eup %8977  ;;  %8991 = vrcp.f32 %v3309_v33  ;;  %v3308_v51 = vadd.f32 1.0, %v8976_v57  ;;  %8450 = vmatmul.mubr.msk.f32.gmra.mxu0 %vm3408_vm4, %v11903_v4  ;;  %14207 = vst [vmem:[#allocation65_spill] sm:$0xff] %v11927_v11  ;;  %v3645_v57 = vrot.slane %v11901_v27, 1 }
 0x285   : > { %v8980_v23 = vpop.eup %8979  ;;  %3488 = vst.msk [vmem:[#allocation3 + $0x129] sm:$0xff] %vm3408_vm4, %v3399_v42  ;;  %v3398_v56 = vmul.f32 %v8978_v3, %v11660_v35  ;;  %8391 = vmatmul.mubr.msk.f32.gmra.mxu1 %vm3408_vm4, %v11899_v60  ;;  %v11931_v35 = vsel %vm468_vm2, %v3640_v38, %v3641_v46  ;;  %v3646_v42 = vrot.slane %v11903_v4, 1 }
 0x286   : > { %v8982_v21 = vpop.eup %8981  ;;  %v3401_v2 = vmul.f32 %v8980_v23, %v11674_v26  ;;  %8993 = vrcp.f32 %v3308_v51  ;;  %8393 = vmatprep.mubr.msk.f32.mxu1 %vm3408_vm4, %v11908_v40  ;;  %14208 = vst [vmem:[#allocation73_spill] sm:$0xff] %v11931_v35  ;;  %v11946_v23 = vld [vmem:[#allocation3 + $0xe8] sm:$0x3] }
 0x287   : > { %v8984_v55 = vpop.eup %8983  ;;  %3487 = vst.msk [vmem:[#allocation3 + $0x121] sm:$0xff] %vm3408_vm4, %v3398_v56  ;;  %v3311_v33 = vadd.f32 1.0, %v8982_v21  ;;  %v11935_v3 = vld [vmem:[#allocation3 + $0xf0] sm:$0xff]  ;;  %v11937_v26 = vld [vmem:[#allocation3 + $0xf8] sm:$0xff] }
 0x288   : > { %v8986_v51 = vpop.eup %8985  ;;  %3490 = vst.msk [vmem:[#allocation3 + $0x141] sm:$0xff] %vm3408_vm4, %v3401_v2  ;;  %v3400_v43 = vmul.f32 %v8984_v55, %v11686_v37  ;;  %8452 = vmatprep.mubr.msk.f32.mxu0 %vm3408_vm4, %v11935_v3  ;;  %v11954_v37 = vsel %vm468_vm2, %v3641_v46, %v3643_v29  ;;  %v11961_v55 = vsel %vm468_vm2, %v3645_v57, %v3646_v42  ;;  %v3648_v29 = vrot.slane %v11946_v23, 1 }
 0x289   : > { %8995 = vrcp.f32 %v3311_v33  ;;  %v3310_v38 = vadd.f32 1.0, %v8986_v51  ;;  %8394 = vmatmul.mubr.msk.f32.gmra.mxu1 %vm3408_vm4, %v11927_v11  ;;  %8453 = vmatmul.mubr.msk.f32.gmra.mxu0 %vm3408_vm4, %v11937_v26  ;;  %14209 = vst [vmem:[#allocation66_spill] sm:$0xff] %v11954_v37  ;;  %14210 = vst [vmem:[#allocation70_spill] sm:$0xff] %v11961_v55  ;;  %v3650_v33 = vrot.slane %v11935_v3, 1  ;;  %v3651_v51 = vrot.slane %v11937_v26, 1 }
 0x28a   : > { %3489 = vst.msk [vmem:[#allocation3 + $0x139] sm:$0xff] %vm3408_vm4, %v3400_v43  ;;  %8396 = vmatprep.mubr.msk.f32.mxu1 %vm3408_vm4, %v11931_v35  ;;  %v11956_v56 = vld [vmem:[#allocation3 + $0x108] sm:$0xff]  ;;  %v11958_v21 = vld [vmem:[#allocation3 + $0x110] sm:$0xff]  ;;  %v11980_v57 = vsel %vm468_vm2, %v3646_v42, %v3648_v29  ;;  %v11997_v29 = vld [vmem:[#allocation3 + $0x118] sm:$0x3] }
 0x28b   : > { %v8988_v2 = vpop.eup %8987  ;;  %8997 = vrcp.f32 %v3310_v38  ;;  %8455 = vmatprep.mubr.msk.f32.mxu0 %vm3408_vm4, %v11956_v56  ;;  %v11972_v38 = vld [vmem:[#allocation3 + $0x100] sm:$0x3]  ;;  %14211 = vst [vmem:[#allocation34_spill] sm:$0xff] %v11980_v57 }
 0x28c   : > { %v8990_v43 = vpop.eup %8989  ;;  %v3403_v46 = vmul.f32 %v8988_v2, %v11708_v16 }
 0x28d   : > { %v3402_v35 = vmul.f32 %v8990_v43, %v11711_v14  ;;  %8397 = vmatmul.mubr.msk.f32.gmra.mxu1 %vm3408_vm4, %v11954_v37  ;;  %8456 = vmatmul.mubr.msk.f32.gmra.mxu0 %vm3408_vm4, %v11958_v21  ;;  %v11988_v14 = vsel %vm468_vm2, %v3650_v33, %v3651_v51  ;;  %v3655_v43 = vrot.slane %v11956_v56, 1  ;;  %v3656_v37 = vrot.slane %v11958_v21, 1 }
 0x28e   : > { %3492 = vst.msk [vmem:[#allocation3 + $0x159] sm:$0xff] %vm3408_vm4, %v3403_v46  ;;  %8399 = vmatprep.mubr.msk.f32.mxu1 %vm3408_vm4, %v11961_v55  ;;  %v11982_v16 = vld [vmem:[#allocation3 + $0x120] sm:$0xff]  ;;  %v11984_v2 = vld [vmem:[#allocation3 + $0x128] sm:$0xff]  ;;  %14213 = vst [vmem:[#allocation74_spill] sm:$0xff] %v11988_v14  ;;  %v3653_v46 = vrot.slane %v11972_v38, 1 }
 0x28f   : > { %14212 = vst [vmem:[#allocation72_spill] sm:$0xff] %v11984_v2  ;;  %3491 = vst.msk [vmem:[#allocation3 + $0x151] sm:$0xff] %vm3408_vm4, %v3402_v35  ;;  %8458 = vmatprep.mubr.msk.f32.mxu0 %vm3408_vm4, %v11982_v16  ;;  %v12014_v40 = vsel %vm468_vm2, %v3655_v43, %v3656_v37  ;;  %v3660_v60 = vrot.slane %v11982_v16, 1  ;;  %v3661_v8 = vrot.slane %v11984_v2, 1 }
 0x290   : > { %v12007_v55 = vsel %vm468_vm2, %v3651_v51, %v3653_v46  ;;  %14217 = vst [vmem:[#allocation61_spill] sm:$0xff] %v12014_v40  ;;  %v3658_v51 = vrot.slane %v11997_v29, 1  ;;  %v12023_v46 = vld [vmem:[#allocation3 + $0x130] sm:$0x3] }
 0x291   : > { %v8992_v42 = vpop.eup %8991  ;;  %8400 = vmatmul.mubr.msk.f32.gmra.mxu1 %vm3408_vm4, %v11980_v57  ;;  %8459 = vmatmul.mubr.msk.f32.gmra.mxu0 %vm3408_vm4, %v11984_v2  ;;  %v12001_v35 = vld [vmem:[#allocation3 + $0x138] sm:$0xff]  ;;  %14215 = vst [vmem:[#allocation33_spill] sm:$0xff] %v12007_v55  ;;  %v12011_v11 = vld [vmem:[#allocation3 + $0x140] sm:$0xff] }
 0x292   : > { %14214 = vst [vmem:[#allocation52_spill] sm:$0xff] %v12001_v35  ;;  %v3405_v33 = vmul.f32 %v8992_v42, %v11759_v30  ;;  %8402 = vmatprep.mubr.msk.f32.mxu1 %vm3408_vm4, %v11988_v14  ;;  %8461 = vmatprep.mubr.msk.f32.mxu0 %vm3408_vm4, %v12001_v35  ;;  %14216 = vst [vmem:[#allocation37_spill] sm:$0xff] %v12011_v11  ;;  %v12031_v42 = vsel %vm468_vm2, %v3656_v37, %v3658_v51  ;;  %v3665_v14 = vrot.slane %v12001_v35, 1 }
 0x293   : > { %v8994_v57 = vpop.eup %8993  ;;  %14218 = vst [vmem:[#allocation44_spill] sm:$0xff] %v12031_v42  ;;  %v3666_v24 = vrot.slane %v12011_v11, 1  ;;  %v3663_v37 = vrot.slane %v12023_v46, 1 }
 0x294   : > { %3494 = vst.msk [vmem:[#allocation3 + $0x171] sm:$0xff] %vm3408_vm4, %v3405_v33  ;;  %v3404_v30 = vmul.f32 %v8994_v57, %v11762_v18 }
 0x295   : > { %8403 = vmatmul.mubr.msk.f32.gmra.mxu1 %vm3408_vm4, %v12007_v55  ;;  %8462 = vmatmul.mubr.msk.f32.gmra.mxu0 %vm3408_vm4, %v12011_v11  ;;  %v12039_v55 = vsel %vm468_vm2, %v3660_v60, %v3661_v8  ;;  %v12057_v60 = vsel %vm468_vm2, %v3661_v8, %v3663_v37 }
 0x296   : > { %v8996_v43 = vpop.eup %8995  ;;  %3493 = vst.msk [vmem:[#allocation3 + $0x169] sm:$0xff] %vm3408_vm4, %v3404_v30  ;;  %8405 = vmatprep.mubr.msk.f32.mxu1 %vm3408_vm4, %v12014_v40  ;;  %v12033_v18 = vld [vmem:[#allocation3 + $0x150] sm:$0xff]  ;;  %v12035_v57 = vld [vmem:[#allocation3 + $0x158] sm:$0xff]  ;;  %14221 = vst [vmem:[#allocation68_spill] sm:$0xff] %v12039_v55 }
 0x297   : > { %14219 = vst [vmem:[#allocation55_spill] sm:$0xff] %v12033_v18  ;;  %14220 = vst [vmem:[#allocation86_spill] sm:$0xff] %v12035_v57  ;;  %v3407_v33 = vmul.f32 %v8996_v43, %v11794_v48  ;;  %8464 = vmatprep.mubr.msk.f32.mxu0 %vm3408_vm4, %v12033_v18  ;;  %v12050_v48 = vld [vmem:[#allocation3 + $0x148] sm:$0x3]  ;;  %v12061_v43 = vsel %vm468_vm2, %v3665_v14, %v3666_v24 }
 0x298   : > { %v8998_v30 = vpop.eup %8997  ;;  %14222 = vst [vmem:[#allocation58_spill] sm:$0xff] %v12057_v60  ;;  %14223 = vst [vmem:[#allocation64_spill] sm:$0xff] %v12061_v43 }
 0x299   : > { %3496 = vst.msk [vmem:[#allocation3 + $0x189] sm:$0xff] %vm3408_vm4, %v3407_v33  ;;  %v3406_v51 = vmul.f32 %v8998_v30, %v11802_v49  ;;  %8406 = vmatmul.mubr.msk.f32.gmra.mxu1 %vm3408_vm4, %v12031_v42  ;;  %8465 = vmatmul.mubr.msk.f32.gmra.mxu0 %vm3408_vm4, %v12035_v57  ;;  %v3670_v49 = vrot.slane %v12033_v18, 1  ;;  %v3671_v33 = vrot.slane %v12035_v57, 1  ;;  %v3668_v30 = vrot.slane %v12050_v48, 1  ;;  %v12068_v42 = vld [vmem:[#allocation3 + $0x160] sm:$0x3] }
 0x29a   : > { %8408 = vmatprep.mubr.msk.f32.mxu1 %vm3408_vm4, %v12039_v55  ;;  %v3673_v40 = vrot.slane %v12068_v42, 1 }
 0x29b   : > { %3495 = vst.msk [vmem:[#allocation3 + $0x181] sm:$0xff] %vm3408_vm4, %v3406_v51  ;;  %v12077_v14 = vsel %vm468_vm2, %v3666_v24, %v3668_v30  ;;  %v12082_v37 = vsel %vm468_vm2, %v3670_v49, %v3671_v33  ;;  %v12093_v24 = vld [vmem:[#allocation3 + $0x178] sm:$0x3]  ;;  %v9127_v30 = vld [vmem:[#allocation3] sm:$0xff] }
 0x29c   : > { %14224 = vst [vmem:[#allocation76_spill] sm:$0xff] %v12077_v14  ;;  %v12098_v49 = vsel %vm468_vm2, %v3671_v33, %v3673_v40  ;;  %v9129_v33 = vld [vmem:[#allocation3 + $0x10] sm:$0x3] }
 0x29d   : > { %8409 = vmatmul.mubr.msk.f32.gmra.mxu1 %vm3408_vm4, %v12057_v60  ;;  %v12070_v55 = vld [vmem:[#allocation3 + $0x168] sm:$0xff]  ;;  %v12072_v8 = vld [vmem:[#allocation3 + $0x170] sm:$0xff] }
 0x29e   : > { %8411 = vmatprep.mubr.msk.f32.mxu1 %vm3408_vm4, %v12061_v43  ;;  %8467 = vmatprep.mubr.msk.f32.mxu0 %vm3408_vm4, %v12070_v55  ;;  %v3675_v51 = vrot.slane %v12070_v55, 1  ;;  %v3676_v60 = vrot.slane %v12072_v8, 1  ;;  %v4260_v43 = vrot.slane %v9127_v30, 2 }
 0x29f   : > { %8468 = vmatmul.mubr.msk.f32.gmra.mxu0 %vm3408_vm4, %v12072_v8 }
 0x2a0   : > { %8522 = vmatprep.mubr.msk.f32.mxu0 %vm3408_vm4, %v11664_v1  ;;  %v12101_v39 = vsel %vm468_vm2, %v3675_v51, %v3676_v60  ;;  %v4263_v51 = vrot.slane %v9129_v33, 2  ;;  %v4262_v30 = vsel %vm1130_vm3, %v4260_v43, %v4261_v59  ;;  %v8424_v43 = vpop.f32.mrf.mxu0 }
 0x2a1   : > { %8412 = vmatmul.mubr.msk.f32.gmra.mxu1 %vm3408_vm4, %v12077_v14  ;;  %14225 = vst [vmem:[#allocation67_spill] sm:$0xff] %v12101_v39  ;;  %v3678_v14 = vrot.slane %v12093_v24, 1 }
 0x2a2   : > { %8414 = vmatprep.mubr.msk.f32.mxu1 %vm3408_vm4, %v12082_v37  ;;  %v8374_v33 = vpop.f32.mrf.mxu1 }
 0x2a3   : > { %8523 = vmatmul.mubr.msk.f32.vlgmr.msra.gmra.mxu0 %vm3408_vm4, %v11666_v19  ;;  %v12114_v40 = vsel %vm468_vm2, %v3676_v60, %v3678_v14  ;;  %v4266_v60 = vrot.slane %v11666_v19, 2  ;;  %v4264_v14 = vsel %vm1130_vm3, %v4261_v59, %v4263_v51  ;;  %v4270_v59 = vrot.slane %v11688_v54, 2 }
 0x2a4   : > { %8525 = vmatprep.mubr.msk.f32.mxu0 %vm3408_vm4, %v11688_v54  ;;  %8621 = vmatpush3.msra.mxu0 %v11705_v0  ;;  %v4265_v0 = vrot.slane %v11664_v1, 2  ;;  %v12142_v1 = vld [vmem:[%s13670_s3 + $0x30] sm:$0xff]  ;;  %v4271_v51 = vrot.slane %v11690_v17, 2 }
 0x2a5   : > { %8415 = vmatmul.mubr.msk.f32.gmra.mxu1 %vm3408_vm4, %v12098_v49  ;;  %8720 = vmatprep.subr.mxu0 %v12119_v25 }
 0x2a6   : > { %8417 = vmatprep.mubr.msk.f32.mxu1 %vm3408_vm4, %v12101_v39  ;;  %v12135_v39 = vadd.f32 %v8424_v43, %v8374_v33  ;;  %v12146_v19 = vsel %vm1130_vm3, %v4265_v0, %v4266_v60  ;;  %v4268_v43 = vrot.slane %v11713_v22, 2  ;;  %v12167_v54 = vsel %vm1130_vm3, %v4270_v59, %v4271_v51 }
 0x2a7   : > { %8526 = vmatmul.mubr.msk.f32.gmra.mxu0 %vm3408_vm4, %v11690_v17  ;;  %v4275_v17 = vrot.slane %v11719_v47, 2  ;;  %v4276_v22 = vrot.slane %v11721_v53, 2  ;;  %v4281_v33 = vrot.slane %v11748_v5, 2 }
 0x2a8   : > { %8528 = vmatprep.mubr.msk.f32.mxu0 %vm3408_vm4, %v11719_v47  ;;  %14226 = vst [vmem:[#allocation71_spill] sm:$0xff] %v12135_v39  ;;  %v12160_v0 = vsel %vm1130_vm3, %v4266_v60, %v4268_v43  ;;  %v4291_v43 = vrot.slane %v11809_v32, 2  ;;  %v4321_v39 = vrot.slane %v11984_v2, 2 }
 0x2a9   : > { %8418 = vmatmul.mubr.msk.f32.gmra.mxu1 %vm3408_vm4, %v12114_v40  ;;  %v12184_v47 = vsel %vm1130_vm3, %v4275_v17, %v4276_v22 }
 0x2aa   : > { %8472 = vmatprep.mubr.msk.f32.mxu1 %vm3408_vm4, %v4262_v30  ;;  %v9130_v30 = vld [vmem:[%s13670_s3 + $0x20] sm:$0xff] }
 0x2ab   : > { %8529 = vmatmul.mubr.msk.f32.gmra.mxu0 %vm3408_vm4, %v11721_v53  ;;  %v4280_v53 = vrot.slane %v11746_v13, 2 }
 0x2ac   : > { %8531 = vmatprep.mubr.msk.f32.mxu0 %vm3408_vm4, %v11746_v13 }
 0x2ad   : > { %8473 = vmatmul.mubr.msk.f32.vlgmr.msra.gmra.mxu1 %vm3408_vm4, %v4264_v14  ;;  %v4273_v14 = vrot.slane %v11744_v15, 2  ;;  %v4278_v15 = vrot.slane %v11789_v50, 2  ;;  %v12201_v13 = vsel %vm1130_vm3, %v4280_v53, %v4281_v33  ;;  %v4283_v50 = vrot.slane %v11816_v44, 2 }
 0x2ae   : > { %8571 = vmatpush3.msra.mxu1 %v9130_v30  ;;  %8475 = vmatprep.mubr.msk.f32.mxu1 %vm3408_vm4, %v12146_v19  ;;  %v4288_v44 = vrot.slane %v11835_v45, 2  ;;  %v4296_v53 = vrot.slane %v11839_v61, 2  ;;  %v4293_v45 = vrot.slane %v11866_v6, 2  ;;  %v4298_v6 = vrot.slane %v11894_v41, 2 }
 0x2af   : > { %8532 = vmatmul.mubr.msk.f32.gmra.mxu0 %vm3408_vm4, %v11748_v5  ;;  %8670 = vmatprep.subr.mxu1 %v12142_v1  ;;  %v12177_v60 = vsel %vm1130_vm3, %v4271_v51, %v4273_v14  ;;  %v12194_v59 = vsel %vm1130_vm3, %v4276_v22, %v4278_v15  ;;  %v4285_v5 = vrot.slane %v11780_v10, 2  ;;  %v4286_v51 = vrot.slane %v11782_v20, 2 }
 0x2b0   : > { %8534 = vmatprep.mubr.msk.f32.mxu0 %vm3408_vm4, %v11780_v10  ;;  %v12211_v30 = vsel %vm1130_vm3, %v4281_v33, %v4283_v50  ;;  %v4295_v14 = vrot.slane %v11837_v58, 2  ;;  %v12245_v33 = vsel %vm1130_vm3, %v4291_v43, %v4293_v45  ;;  %v12262_v50 = vsel %vm1130_vm3, %v4296_v53, %v4298_v6 }
 0x2b1   : > { %8476 = vmatmul.mubr.msk.f32.gmra.mxu1 %vm3408_vm4, %v12160_v0  ;;  %v12218_v10 = vsel %vm1130_vm3, %v4285_v5, %v4286_v51  ;;  %v12228_v17 = vsel %vm1130_vm3, %v4286_v51, %v4288_v44  ;;  %14229 = vst [vmem:[#allocation77_spill] sm:$0xff] %v12245_v33  ;;  %v4300_v5 = vrot.slane %v11868_v31, 2  ;;  %v4301_v51 = vrot.slane %v11870_v36, 2  ;;  %14231 = vst [vmem:[#allocation78_spill] sm:$0xff] %v12262_v50 }
 0x2b2   : > { %8478 = vmatprep.mubr.msk.f32.mxu1 %vm3408_vm4, %v12167_v54  ;;  %14227 = vst [vmem:[#allocation79_spill] sm:$0xff] %v12228_v17  ;;  %v12252_v15 = vsel %vm1130_vm3, %v4295_v14, %v4296_v53  ;;  %v4306_v44 = vrot.slane %v11903_v4, 2  ;;  %v4303_v41 = vrot.slane %v11921_v28, 2  ;;  %v4310_v45 = vrot.slane %v11935_v3, 2 }
 0x2b3   : > { %8535 = vmatmul.mubr.msk.f32.gmra.mxu0 %vm3408_vm4, %v11782_v20  ;;  %v4290_v20 = vrot.slane %v11807_v52, 2  ;;  %14230 = vst [vmem:[#allocation82_spill] sm:$0xff] %v12252_v15  ;;  %v4308_v28 = vrot.slane %v11946_v23, 2  ;;  %v4313_v23 = vrot.slane %v11972_v38, 2  ;;  %v4318_v38 = vrot.slane %v11997_v29, 2 }
 0x2b4   : > { %8537 = vmatprep.mubr.msk.f32.mxu0 %vm3408_vm4, %v11807_v52  ;;  %v12279_v14 = vsel %vm1130_vm3, %v4301_v51, %v4303_v41  ;;  %v4316_v41 = vrot.slane %v11958_v21, 2  ;;  %v4323_v29 = vrot.slane %v12023_v46, 2  ;;  %v4331_v46 = vrot.slane %v12035_v57, 2 }
 0x2b5   : > { %8479 = vmatmul.mubr.msk.f32.gmra.mxu1 %vm3408_vm4, %v12177_v60  ;;  %v12235_v22 = vsel %vm1130_vm3, %v4290_v20, %v4291_v43  ;;  %v12269_v20 = vsel %vm1130_vm3, %v4300_v5, %v4301_v51  ;;  %v4305_v43 = vrot.slane %v11901_v27, 2  ;;  %14233 = vst [vmem:[#allocation93_spill] sm:$0xff] %v12279_v14  ;;  %v4311_v5 = vrot.slane %v11937_v26, 2 }
 0x2b6   : > { %8481 = vmatprep.mubr.msk.f32.mxu1 %vm3408_vm4, %v12184_v47  ;;  %14228 = vst [vmem:[#allocation75_spill] sm:$0xff] %v12235_v22  ;;  %14232 = vst [vmem:[#allocation80_spill] sm:$0xff] %v12269_v20  ;;  %v12296_v51 = vsel %vm1130_vm3, %v4306_v44, %v4308_v28  ;;  %v4320_v28 = vrot.slane %v11982_v16, 2 }
 0x2b7   : > { %8538 = vmatmul.mubr.msk.f32.gmra.mxu0 %vm3408_vm4, %v11809_v32  ;;  %v12286_v53 = vsel %vm1130_vm3, %v4305_v43, %v4306_v44  ;;  %14235 = vst [vmem:[#allocation81_spill] sm:$0xff] %v12296_v51  ;;  %v12303_v6 = vsel %vm1130_vm3, %v4310_v45, %v4311_v5  ;;  %v4315_v43 = vrot.slane %v11956_v56, 2  ;;  %v12313_v44 = vsel %vm1130_vm3, %v4311_v5, %v4313_v23 }
 0x2b8   : > { %8540 = vmatprep.mubr.msk.f32.mxu0 %vm3408_vm4, %v11837_v58  ;;  %14234 = vst [vmem:[#allocation85_spill] sm:$0xff] %v12286_v53  ;;  %14236 = vst [vmem:[#allocation83_spill] sm:$0xff] %v12303_v6  ;;  %v12330_v5 = vsel %vm1130_vm3, %v4316_v41, %v4318_v38  ;;  %v4325_v23 = vrot.slane %v12001_v35, 2  ;;  %v12349_v38 = vsel %vm1130_vm3, %v4321_v39, %v4323_v29 }
 0x2b9   : > { %8482 = vmatmul.mubr.msk.f32.gmra.mxu1 %vm3408_vm4, %v12194_v59  ;;  %14237 = vst [vmem:[#allocation89_spill] sm:$0xff] %v12313_v44  ;;  %v12320_v45 = vsel %vm1130_vm3, %v4315_v43, %v4316_v41  ;;  %14239 = vst [vmem:[#allocation87_spill] sm:$0xff] %v12330_v5  ;;  %v12337_v43 = vsel %vm1130_vm3, %v4320_v28, %v4321_v39  ;;  %v12346_v41 = vld [vmem:[#allocation3 + $0x180] sm:$0xff]  ;;  %v12363_v39 = vld [vmem:[#allocation3 + $0x188] sm:$0xff] }
 0x2ba   : > { %8484 = vmatprep.mubr.msk.f32.mxu1 %vm3408_vm4, %v12201_v13  ;;  %14238 = vst [vmem:[#allocation84_spill] sm:$0xff] %v12320_v45  ;;  %14240 = vst [vmem:[#allocation92_spill] sm:$0xff] %v12337_v43 }
 0x2bb   : > { %8541 = vmatmul.mubr.msk.f32.gmra.mxu0 %vm3408_vm4, %v11839_v61  ;;  %14241 = vst [vmem:[#allocation88_spill] sm:$0xff] %v12349_v38 }
 0x2bc   : > { %8543 = vmatprep.mubr.msk.f32.mxu0 %vm3408_vm4, %v11868_v31 }
 0x2bd   : > { %8485 = vmatmul.mubr.msk.f32.gmra.mxu1 %vm3408_vm4, %v12211_v30 }
 0x2be   : > { %8487 = vmatprep.mubr.msk.f32.mxu1 %vm3408_vm4, %v12218_v10 }
 0x2bf   : > { %8544 = vmatmul.mubr.msk.f32.gmra.mxu0 %vm3408_vm4, %v11870_v36 }
 0x2c0   : > { %8546 = vmatprep.mubr.msk.f32.mxu0 %vm3408_vm4, %v11901_v27 }
 0x2c1   : > { %8488 = vmatmul.mubr.msk.f32.gmra.mxu1 %vm3408_vm4, %v12228_v17 }
 0x2c2   : > { %8490 = vmatprep.mubr.msk.f32.mxu1 %vm3408_vm4, %v12235_v22 }
 0x2c3   : > { %8547 = vmatmul.mubr.msk.f32.gmra.mxu0 %vm3408_vm4, %v11903_v4 }
 0x2c4   : > { %8549 = vmatprep.mubr.msk.f32.mxu0 %vm3408_vm4, %v11935_v3 }
 0x2c5   : > { %8491 = vmatmul.mubr.msk.f32.gmra.mxu1 %vm3408_vm4, %v12245_v33 }
 0x2c6   : > { %8493 = vmatprep.mubr.msk.f32.mxu1 %vm3408_vm4, %v12252_v15 }
 0x2c7   : > { %8550 = vmatmul.mubr.msk.f32.gmra.mxu0 %vm3408_vm4, %v11937_v26 }
 0x2c8   : > { %8552 = vmatprep.mubr.msk.f32.mxu0 %vm3408_vm4, %v11956_v56 }
 0x2c9   : > { %8494 = vmatmul.mubr.msk.f32.gmra.mxu1 %vm3408_vm4, %v12262_v50 }
 0x2ca   : > { %8496 = vmatprep.mubr.msk.f32.mxu1 %vm3408_vm4, %v12269_v20 }
 0x2cb   : > { %8553 = vmatmul.mubr.msk.f32.gmra.mxu0 %vm3408_vm4, %v11958_v21 }
 0x2cc   : > { %8555 = vmatprep.mubr.msk.f32.mxu0 %vm3408_vm4, %v11982_v16 }
 0x2cd   : > { %8497 = vmatmul.mubr.msk.f32.gmra.mxu1 %vm3408_vm4, %v12279_v14 }
 0x2ce   : > { %8499 = vmatprep.mubr.msk.f32.mxu1 %vm3408_vm4, %v12286_v53 }
 0x2cf   : > { %8556 = vmatmul.mubr.msk.f32.gmra.mxu0 %vm3408_vm4, %v11984_v2  ;;  %v4326_v2 = vrot.slane %v12011_v11, 2 }
 0x2d0   : > { %8558 = vmatprep.mubr.msk.f32.mxu0 %vm3408_vm4, %v12001_v35  ;;  %v4328_v35 = vrot.slane %v12050_v48, 2  ;;  %v4336_v48 = vrot.slane %v12072_v8, 2 }
 0x2d1   : > { %8500 = vmatmul.mubr.msk.f32.gmra.mxu1 %vm3408_vm4, %v12296_v51  ;;  %v12356_v28 = vsel %vm1130_vm3, %v4325_v23, %v4326_v2 }
 0x2d2   : > { %8502 = vmatprep.mubr.msk.f32.mxu1 %vm3408_vm4, %v12303_v6  ;;  %14242 = vst [vmem:[#allocation105_spill] sm:$0xff] %v12356_v28  ;;  %v12368_v29 = vsel %vm1130_vm3, %v4326_v2, %v4328_v35  ;;  %v4338_v35 = vrot.slane %v12093_v24, 2  ;;  %v14251_v24 = vld [vmem:[#allocation60_spill] sm:$0xff] }
 0x2d3   : > { %8559 = vmatmul.mubr.msk.f32.gmra.mxu0 %vm3408_vm4, %v12011_v11  ;;  %v4330_v11 = vrot.slane %v12033_v18, 2  ;;  %14243 = vst [vmem:[#allocation102_spill] sm:$0xff] %v12368_v29 }
 0x2d4   : > { %8561 = vmatprep.mubr.msk.f32.mxu0 %vm3408_vm4, %v12033_v18  ;;  %v4333_v18 = vrot.slane %v12068_v42, 2  ;;  %v12401_v42 = vsel %vm1130_vm3, %v4336_v48, %v4338_v35  ;;  %v14258_v35 = vld [vmem:[#allocation70_spill] sm:$0xff] }
 0x2d5   : > { %8503 = vmatmul.mubr.msk.f32.gmra.mxu1 %vm3408_vm4, %v12313_v44  ;;  %v12375_v23 = vsel %vm1130_vm3, %v4330_v11, %v4331_v46  ;;  %14247 = vst [vmem:[#allocation94_spill] sm:$0xff] %v12401_v42 }
 0x2d6   : > { %8505 = vmatprep.mubr.msk.f32.mxu1 %vm3408_vm4, %v12320_v45  ;;  %14244 = vst [vmem:[#allocation90_spill] sm:$0xff] %v12375_v23  ;;  %v12385_v2 = vsel %vm1130_vm3, %v4331_v46, %v4333_v18  ;;  %v12416_v18 = vld [vmem:[%s13670_s3 + $0x40] sm:$0xff]  ;;  %v14256_v46 = vld [vmem:[#allocation73_spill] sm:$0xff] }
 0x2d7   : > { %8562 = vmatmul.mubr.msk.f32.gmra.mxu0 %vm3408_vm4, %v12035_v57  ;;  %v4335_v57 = vrot.slane %v12070_v55, 2  ;;  %14245 = vst [vmem:[#allocation35_spill] sm:$0xff] %v12385_v2 }
 0x2d8   : > { %8564 = vmatprep.mubr.msk.f32.mxu0 %vm3408_vm4, %v12070_v55 }
 0x2d9   : > { %8506 = vmatmul.mubr.msk.f32.gmra.mxu1 %vm3408_vm4, %v12330_v5  ;;  %v12393_v11 = vsel %vm1130_vm3, %v4335_v57, %v4336_v48  ;;  %v14250_v57 = vld [vmem:[#allocation59_spill] sm:$0xff]  ;;  %v14257_v48 = vld [vmem:[#allocation66_spill] sm:$0xff] }
 0x2da   : > { %8508 = vmatprep.mubr.msk.f32.mxu1 %vm3408_vm4, %v12337_v43  ;;  %14246 = vst [vmem:[#allocation91_spill] sm:$0xff] %v12393_v11 }
 0x2db   : > { %8565 = vmatmul.mubr.msk.f32.gmra.mxu0 %vm3408_vm4, %v12072_v8 }
 0x2dc   : > { %8567 = vmatprep.mubr.msk.f32.mxu0 %vm3408_vm4, %v12346_v41 }
 0x2dd   : > { %8509 = vmatmul.mubr.msk.f32.gmra.mxu1 %vm3408_vm4, %v12349_v38 }
 0x2de   : > { %8511 = vmatprep.mubr.msk.f32.mxu1 %vm3408_vm4, %v12356_v28 }
 0x2df   : > { %8568 = vmatmul.mubr.msk.f32.gmra.mxu0 %vm3408_vm4, %v12363_v39 }
 0x2e0   : > { %8622 = vmatprep.mubr.msk.f32.mxu0 %vm3408_vm4, %v12146_v19  ;;  %v14254_v19 = vld [vmem:[#allocation63_spill] sm:$0xff] }
 0x2e1   : > { %8512 = vmatmul.mubr.msk.f32.gmra.mxu1 %vm3408_vm4, %v12368_v29 }
 0x2e2   : > { %8514 = vmatprep.mubr.msk.f32.mxu1 %vm3408_vm4, %v12375_v23 }
 0x2e3   : > { %8623 = vmatmul.mubr.msk.f32.vlgmr.msra.gmra.mxu0 %vm3408_vm4, %v12160_v0  ;;  %v14255_v0 = vld [vmem:[#allocation65_spill] sm:$0xff] }
 0x2e4   : > { %8625 = vmatprep.mubr.msk.f32.mxu0 %vm3408_vm4, %v12167_v54  ;;  %8721 = vmatpush3.msra.mxu0 %v12119_v25  ;;  %v14252_v25 = vld [vmem:[#allocation62_spill] sm:$0xff] }
 0x2e5   : > { %8515 = vmatmul.mubr.msk.f32.gmra.mxu1 %vm3408_vm4, %v12385_v2 }
 0x2e6   : > { %8517 = vmatprep.mubr.msk.f32.mxu1 %vm3408_vm4, %v12393_v11 }
 0x2e7   : > { %8626 = vmatmul.mubr.msk.f32.gmra.mxu0 %vm3408_vm4, %v12177_v60 }
 0x2e8   : > { %8628 = vmatprep.mubr.msk.f32.mxu0 %vm3408_vm4, %v12184_v47 }
 0x2e9   : > { %8518 = vmatmul.mubr.msk.f32.gmra.mxu1 %vm3408_vm4, %v12401_v42 }
 0x2ea   : > { %8572 = vmatprep.mubr.msk.f32.mxu1 %vm3408_vm4, %v11730_v12  ;;  %v14248_v12 = vld [vmem:[#allocation56_spill] sm:$0xff] }
 0x2eb   : > { %8629 = vmatmul.mubr.msk.f32.gmra.mxu0 %vm3408_vm4, %v12194_v59 }
 0x2ec   : > { %8631 = vmatprep.mubr.msk.f32.mxu0 %vm3408_vm4, %v12201_v13 }
 0x2ed   : > { %8573 = vmatmul.mubr.msk.f32.vlgmr.msra.gmra.mxu1 %vm3408_vm4, %v11740_v34  ;;  %v14249_v34 = vld [vmem:[#allocation57_spill] sm:$0xff] }
 0x2ee   : > { %8671 = vmatpush3.msra.mxu1 %v12142_v1  ;;  %8575 = vmatprep.mubr.msk.f32.mxu1 %vm3408_vm4, %v11768_v62  ;;  %v14253_v1 = vld [vmem:[#allocation69_spill] sm:$0xff] }
 0x2ef   : > { %8632 = vmatmul.mubr.msk.f32.gmra.mxu0 %vm3408_vm4, %v12211_v30  ;;  %8770 = vmatprep.subr.mxu1 %v12416_v18 }
 0x2f0   : > { %8634 = vmatprep.mubr.msk.f32.mxu0 %vm3408_vm4, %v12218_v10 }
 0x2f1   : > { %8576 = vmatmul.mubr.msk.f32.gmra.mxu1 %vm3408_vm4, %v11777_v9 }
 0x2f2   : > { %8578 = vmatprep.mubr.msk.f32.mxu1 %vm3408_vm4, %v11814_v63 }
 0x2f3   : > { %8635 = vmatmul.mubr.msk.f32.gmra.mxu0 %vm3408_vm4, %v12228_v17 }
 0x2f4   : > { %8637 = vmatprep.mubr.msk.f32.mxu0 %vm3408_vm4, %v12235_v22  ;;  %v12561_v22 = vpop.f32.mrf.mxu1 }
 0x2f5   : > { %8579 = vmatmul.mubr.msk.f32.gmra.mxu1 %vm3408_vm4, %v11824_v7 }
 0x2f6   : > { %8581 = vmatprep.mubr.msk.f32.mxu1 %vm3408_vm4, %v14248_v12 }
 0x2f7   : > { %8638 = vmatmul.mubr.msk.f32.gmra.mxu0 %vm3408_vm4, %v12245_v33 }
 0x2f8   : > { %8640 = vmatprep.mubr.msk.f32.mxu0 %vm3408_vm4, %v12252_v15 }
 0x2f9   : > { %8582 = vmatmul.mubr.msk.f32.gmra.mxu1 %vm3408_vm4, %v14249_v34 }
 0x2fa   : > { %8584 = vmatprep.mubr.msk.f32.mxu1 %vm3408_vm4, %v14250_v57 }
 0x2fb   : > { %8641 = vmatmul.mubr.msk.f32.gmra.mxu0 %vm3408_vm4, %v12262_v50  ;;  %v12528_v50 = vpop.f32.mrf.mxu0 }
 0x2fc   : > { %8643 = vmatprep.mubr.msk.f32.mxu0 %vm3408_vm4, %v12269_v20  ;;  %v14268_v20 = vld [vmem:[#allocation76_spill] sm:$0xff] }
 0x2fd   : > { %8585 = vmatmul.mubr.msk.f32.gmra.mxu1 %vm3408_vm4, %v14251_v24 }
 0x2fe   : > { %8587 = vmatprep.mubr.msk.f32.mxu1 %vm3408_vm4, %v14252_v25 }
 0x2ff   : > { %8644 = vmatmul.mubr.msk.f32.gmra.mxu0 %vm3408_vm4, %v12279_v14 }
 0x300   : > { %8646 = vmatprep.mubr.msk.f32.mxu0 %vm3408_vm4, %v12286_v53  ;;  %v14266_v53 = vld [vmem:[#allocation64_spill] sm:$0xff] }
 0x301   : > { %8588 = vmatmul.mubr.msk.f32.gmra.mxu1 %vm3408_vm4, %v14253_v1 }
 0x302   : > { %8590 = vmatprep.mubr.msk.f32.mxu1 %vm3408_vm4, %v14254_v19 }
 0x303   : > { %8647 = vmatmul.mubr.msk.f32.gmra.mxu0 %vm3408_vm4, %v12296_v51  ;;  %v14260_v51 = vld [vmem:[#allocation74_spill] sm:$0xff] }
 0x304   : > { %8649 = vmatprep.mubr.msk.f32.mxu0 %vm3408_vm4, %v12303_v6  ;;  %v14259_v6 = vld [vmem:[#allocation34_spill] sm:$0xff] }
 0x305   : > { %8591 = vmatmul.mubr.msk.f32.gmra.mxu1 %vm3408_vm4, %v14255_v0 }
 0x306   : > { %8593 = vmatprep.mubr.msk.f32.mxu1 %vm3408_vm4, %v14256_v46 }
 0x307   : > { %8650 = vmatmul.mubr.msk.f32.gmra.mxu0 %vm3408_vm4, %v12313_v44  ;;  %v14262_v44 = vld [vmem:[#allocation61_spill] sm:$0xff] }
 0x308   : > { %8652 = vmatprep.mubr.msk.f32.mxu0 %vm3408_vm4, %v12320_v45  ;;  %v14261_v45 = vld [vmem:[#allocation33_spill] sm:$0xff] }
 0x309   : > { %8594 = vmatmul.mubr.msk.f32.gmra.mxu1 %vm3408_vm4, %v14257_v48 }
 0x30a   : > { %8596 = vmatprep.mubr.msk.f32.mxu1 %vm3408_vm4, %v14258_v35 }
 0x30b   : > { %8653 = vmatmul.mubr.msk.f32.gmra.mxu0 %vm3408_vm4, %v12330_v5  ;;  %v14264_v5 = vld [vmem:[#allocation68_spill] sm:$0xff] }
 0x30c   : > { %8655 = vmatprep.mubr.msk.f32.mxu0 %vm3408_vm4, %v12337_v43  ;;  %v14263_v43 = vld [vmem:[#allocation44_spill] sm:$0xff] }
 0x30d   : > { %8597 = vmatmul.mubr.msk.f32.gmra.mxu1 %vm3408_vm4, %v14259_v6 }
 0x30e   : > { %8599 = vmatprep.mubr.msk.f32.mxu1 %vm3408_vm4, %v14260_v51 }
 0x30f   : > { %8656 = vmatmul.mubr.msk.f32.gmra.mxu0 %vm3408_vm4, %v12349_v38  ;;  %v5198_v38 = vrot.slane %v12363_v39, 2 }
 0x310   : > { %8658 = vmatprep.mubr.msk.f32.mxu0 %vm3408_vm4, %v12356_v28  ;;  %v5197_v28 = vrot.slane %v12346_v41, 2 }
 0x311   : > { %8600 = vmatmul.mubr.msk.f32.gmra.mxu1 %vm3408_vm4, %v14261_v45 }
 0x312   : > { %8602 = vmatprep.mubr.msk.f32.mxu1 %vm3408_vm4, %v14262_v44  ;;  %v12517_v14 = vsel %vm1130_vm3, %v5197_v28, %v5198_v38  ;;  %v4929_v28 = vrot.slane %v12346_v41, 1 }
 0x313   : > { %8659 = vmatmul.mubr.msk.f32.gmra.mxu0 %vm3408_vm4, %v12368_v29  ;;  %v14265_v29 = vld [vmem:[#allocation58_spill] sm:$0xff]  ;;  %14267 = vst [vmem:[#allocation97_spill] sm:$0xff] %v12517_v14 }
 0x314   : > { %8661 = vmatprep.mubr.msk.f32.mxu0 %vm3408_vm4, %v12375_v23  ;;  %v3547_v23 = vld [vmem:[#allocation3 + $0x190] sm:$0x3] }
 0x315   : > { %8603 = vmatmul.mubr.msk.f32.gmra.mxu1 %vm3408_vm4, %v14263_v43 }
 0x316   : > { %8605 = vmatprep.mubr.msk.f32.mxu1 %vm3408_vm4, %v14264_v5 }
 0x317   : > { %8662 = vmatmul.mubr.msk.f32.gmra.mxu0 %vm3408_vm4, %v12385_v2  ;;  %v5200_v2 = vrot.slane %v3547_v23, 2 }
 0x318   : > { %8664 = vmatprep.mubr.msk.f32.mxu0 %vm3408_vm4, %v12393_v11 }
 0x319   : > { %8606 = vmatmul.mubr.msk.f32.gmra.mxu1 %vm3408_vm4, %v14265_v29  ;;  %v12526_v11 = vsel %vm1130_vm3, %v5198_v38, %v5200_v2 }
 0x31a   : > { %8608 = vmatprep.mubr.msk.f32.mxu1 %vm3408_vm4, %v14266_v53  ;;  %14269 = vst [vmem:[#allocation95_spill] sm:$0xff] %v12526_v11 }
 0x31b   : > { %8665 = vmatmul.mubr.msk.f32.gmra.mxu0 %vm3408_vm4, %v12401_v42  ;;  %v14270_v42 = vld [vmem:[#allocation67_spill] sm:$0xff] }
 0x31c   : > { %8667 = vmatprep.mubr.msk.f32.mxu0 %vm3408_vm4, %v12517_v14  ;;  %v4930_v14 = vrot.slane %v12363_v39, 1 }
 0x31d   : > { %8609 = vmatmul.mubr.msk.f32.gmra.mxu1 %vm3408_vm4, %v14268_v20 }
 0x31e   : > { %8611 = vmatprep.mubr.msk.f32.mxu1 %vm3408_vm4, %v12082_v37 }
 0x31f   : > { %8668 = vmatmul.mubr.msk.f32.gmra.mxu0 %vm3408_vm4, %v12526_v11  ;;  %v4932_v11 = vrot.slane %v3547_v23, 1 }
 0x320   : > { %8722 = vmatprep.mubr.msk.f32.mxu0 %vm3408_vm4, %v11768_v62  ;;  %v12547_v62 = vsel %vm468_vm2, %v4929_v28, %v4930_v14  ;;  %v9131_v28 = vld [vmem:[#allocation3 + $0x30] sm:$0xff] }
 0x321   : > { %8612 = vmatmul.mubr.msk.f32.gmra.mxu1 %vm3408_vm4, %v12098_v49 }
 0x322   : > { %8614 = vmatprep.mubr.msk.f32.mxu1 %vm3408_vm4, %v14270_v42  ;;  %v8427_v38 = vpop.f32.mrf.mxu0 }
 0x323   : > { %8723 = vmatmul.mubr.msk.f32.vlgmr.msra.gmra.mxu0 %vm3408_vm4, %v11777_v9  ;;  %v12554_v9 = vsel %vm468_vm2, %v4930_v14, %v4932_v11  ;;  %v9132_v14 = vld [vmem:[#allocation3 + $0x38] sm:$0xff]  ;;  %v9133_v11 = vld [vmem:[#allocation3 + $0x48] sm:$0xff] }
 0x324   : > { %8725 = vmatprep.mubr.msk.f32.mxu0 %vm3408_vm4, %v11814_v63  ;;  %v4111_v2 = vpop.f32.mrf.mxu0 }
 0x325   : > { %8615 = vmatmul.mubr.msk.f32.gmra.mxu1 %vm3408_vm4, %v12114_v40 }
 0x326   : > { %8617 = vmatprep.mubr.msk.f32.mxu1 %vm3408_vm4, %v12547_v62  ;;  %v8430_v15 = vpop.f32.mrf.mxu0 }
 0x327   : > { %8726 = vmatmul.mubr.msk.f32.gmra.mxu0 %vm3408_vm4, %v11824_v7 }
 0x328   : > { %8728 = vmatprep.mubr.msk.f32.mxu0 %vm3408_vm4, %v14248_v12  ;;  %v4121_v63 = vpop.f32.mrf.mxu0 }
 0x329   : > { %8618 = vmatmul.mubr.msk.f32.gmra.mxu1 %vm3408_vm4, %v12554_v9 }
 0x32a   : > { %8672 = vmatprep.mubr.msk.f32.mxu1 %vm3408_vm4, %v9131_v28  ;;  %v8433_v33 = vpop.f32.mrf.mxu0 }
 0x32b   : > { %8729 = vmatmul.mubr.msk.f32.gmra.mxu0 %vm3408_vm4, %v14249_v34 }
 0x32c   : > { %8731 = vmatprep.mubr.msk.f32.mxu0 %vm3408_vm4, %v14250_v57  ;;  %v4131_v7 = vpop.f32.mrf.mxu0 }
 0x32d   : > { %8673 = vmatmul.mubr.msk.f32.vlgmr.msra.gmra.mxu1 %vm3408_vm4, %v9132_v14  ;;  %v8377_v23 = vpop.f32.mrf.mxu1  ;;  %v9134_v14 = vld [vmem:[#allocation3 + $0x50] sm:$0xff] }
 0x32e   : > { %8771 = vmatpush3.msra.mxu1 %v12416_v18  ;;  %8675 = vmatprep.mubr.msk.f32.mxu1 %vm3408_vm4, %v9133_v11  ;;  %v12570_v12 = vadd.f32 %v8427_v38, %v8377_v23  ;;  %v8436_v28 = vpop.f32.mrf.mxu0  ;;  %v9135_v18 = vld [vmem:[#allocation3 + $0x60] sm:$0xff] }
 0x32f   : > { %v3822_v17 = vpop.f32.mrf.mxu1  ;;  %8732 = vmatmul.mubr.msk.f32.gmra.mxu0 %vm3408_vm4, %v14251_v24 }
 0x330   : > { %v12574_v34 = vadd.f32 %v4111_v2, %v3822_v17  ;;  %8734 = vmatprep.mubr.msk.f32.mxu0 %vm3408_vm4, %v14252_v25  ;;  %v4141_v57 = vpop.f32.mrf.mxu0  ;;  %v9136_v17 = vld [vmem:[#allocation3 + $0x68] sm:$0xff] }
 0x331   : > { %8676 = vmatmul.mubr.msk.f32.gmra.mxu1 %vm3408_vm4, %v9134_v14  ;;  %v9137_v14 = vld [vmem:[#allocation3 + $0x78] sm:$0xff] }
 0x332   : > { %8678 = vmatprep.mubr.msk.f32.mxu1 %vm3408_vm4, %v9135_v18  ;;  %v8380_v11 = vpop.f32.mrf.mxu1 }
 0x333   : > { %v12580_v38 = vadd.f32 %v8430_v15, %v8380_v11  ;;  %8735 = vmatmul.mubr.msk.f32.gmra.mxu0 %vm3408_vm4, %v14253_v1  ;;  %v8439_v23 = vpop.f32.mrf.mxu0 }
 0x334   : > { %v3832_v24 = vpop.f32.mrf.mxu1  ;;  %8737 = vmatprep.mubr.msk.f32.mxu0 %vm3408_vm4, %v14254_v19  ;;  %v9138_v19 = vld [vmem:[#allocation3 + $0x80] sm:$0xff] }
 0x335   : > { %8679 = vmatmul.mubr.msk.f32.gmra.mxu1 %vm3408_vm4, %v9136_v17  ;;  %v12587_v25 = vadd.f32 %v4121_v63, %v3832_v24  ;;  %v4151_v2 = vpop.f32.mrf.mxu0 }
 0x336   : > { %8681 = vmatprep.mubr.msk.f32.mxu1 %vm3408_vm4, %v9137_v14 }
 0x337   : > { %8738 = vmatmul.mubr.msk.f32.gmra.mxu0 %vm3408_vm4, %v14255_v0  ;;  %v8442_v15 = vpop.f32.mrf.mxu0 }
 0x338   : > { %v8383_v18 = vpop.f32.mrf.mxu1  ;;  %8740 = vmatprep.mubr.msk.f32.mxu0 %vm3408_vm4, %v14256_v46 }
 0x339   : > { %v12594_v1 = vadd.f32 %v8433_v33, %v8383_v18  ;;  %8682 = vmatmul.mubr.msk.f32.gmra.mxu1 %vm3408_vm4, %v9138_v19  ;;  %v4161_v11 = vpop.f32.mrf.mxu0 }
 0x33a   : > { %8684 = vmatprep.mubr.msk.f32.mxu1 %vm3408_vm4, %v11807_v52  ;;  %v3842_v63 = vpop.f32.mrf.mxu1 }
 0x33b   : > { %v12599_v24 = vadd.f32 %v4131_v7, %v3842_v63  ;;  %8741 = vmatmul.mubr.msk.f32.gmra.mxu0 %vm3408_vm4, %v14257_v48  ;;  %v8445_v0 = vpop.f32.mrf.mxu0 }
 0x33c   : > { %8743 = vmatprep.mubr.msk.f32.mxu0 %vm3408_vm4, %v14258_v35 }
 0x33d   : > { %v8386_v46 = vpop.f32.mrf.mxu1  ;;  %8685 = vmatmul.mubr.msk.f32.gmra.mxu1 %vm3408_vm4, %v11809_v32  ;;  %v4171_v33 = vpop.f32.mrf.mxu0 }
 0x33e   : > { %v12607_v17 = vadd.f32 %v8436_v28, %v8386_v46  ;;  %8687 = vmatprep.mubr.msk.f32.mxu1 %vm3408_vm4, %v11837_v58 }
 0x33f   : > { %v3852_v52 = vpop.f32.mrf.mxu1  ;;  %8744 = vmatmul.mubr.msk.f32.gmra.mxu0 %vm3408_vm4, %v14259_v6  ;;  %v8448_v7 = vpop.f32.mrf.mxu0 }
 0x340   : > { %v12613_v48 = vadd.f32 %v4141_v57, %v3852_v52  ;;  %8746 = vmatprep.mubr.msk.f32.mxu0 %vm3408_vm4, %v14260_v51  ;;  %v12685_v52 = vld [vmem:[#allocation3 + $0x1a8] sm:$0x3] }
 0x341   : > { %v8389_v35 = vpop.f32.mrf.mxu1  ;;  %8688 = vmatmul.mubr.msk.f32.gmra.mxu1 %vm3408_vm4, %v11839_v61  ;;  %v4181_v32 = vpop.f32.mrf.mxu0 }
 0x342   : > { %v12619_v28 = vadd.f32 %v8439_v23, %v8389_v35  ;;  %8690 = vmatprep.mubr.msk.f32.mxu1 %vm3408_vm4, %v11868_v31 }
 0x343   : > { %v3862_v58 = vpop.f32.mrf.mxu1  ;;  %8747 = vmatmul.mubr.msk.f32.gmra.mxu0 %vm3408_vm4, %v14261_v45 }
 0x344   : > { %v12625_v6 = vadd.f32 %v4151_v2, %v3862_v58  ;;  %8749 = vmatprep.mubr.msk.f32.mxu0 %vm3408_vm4, %v14262_v44  ;;  %v8451_v51 = vpop.f32.mrf.mxu0  ;;  %v5734_v58 = vrot.slane %v12685_v52, 1 }
 0x345   : > { %v8392_v57 = vpop.f32.mrf.mxu1  ;;  %8691 = vmatmul.mubr.msk.f32.gmra.mxu1 %vm3408_vm4, %v11870_v36 }
 0x346   : > { %v12631_v61 = vadd.f32 %v8442_v15, %v8392_v57  ;;  %8693 = vmatprep.mubr.msk.f32.mxu1 %vm3408_vm4, %v11901_v27  ;;  %v4191_v31 = vpop.f32.mrf.mxu0  ;;  %v14273_v57 = vld [vmem:[#allocation37_spill] sm:$0xff] }
 0x347   : > { %v3872_v23 = vpop.f32.mrf.mxu1  ;;  %8750 = vmatmul.mubr.msk.f32.gmra.mxu0 %vm3408_vm4, %v14263_v43 }
 0x348   : > { %v12637_v45 = vadd.f32 %v4161_v11, %v3872_v23  ;;  %8752 = vmatprep.mubr.msk.f32.mxu0 %vm3408_vm4, %v14264_v5  ;;  %v12673_v11 = vld [vmem:[#allocation3 + $0x1a0] sm:$0xff] }
 0x349   : > { %v8395_v44 = vpop.f32.mrf.mxu1  ;;  %8694 = vmatmul.mubr.msk.f32.gmra.mxu1 %vm3408_vm4, %v11903_v4  ;;  %v8454_v36 = vpop.f32.mrf.mxu0 }
 0x34a   : > { %v12643_v2 = vadd.f32 %v8445_v0, %v8395_v44  ;;  %8696 = vmatprep.mubr.msk.f32.mxu1 %vm3408_vm4, %v11935_v3  ;;  %v14271_v0 = vld [vmem:[#allocation72_spill] sm:$0xff] }
 0x34b   : > { %v3882_v27 = vpop.f32.mrf.mxu1  ;;  %8753 = vmatmul.mubr.msk.f32.gmra.mxu0 %vm3408_vm4, %v14265_v29  ;;  %v4201_v43 = vpop.f32.mrf.mxu0 }
 0x34c   : > { %v12649_v14 = vadd.f32 %v4171_v33, %v3882_v27  ;;  %8755 = vmatprep.mubr.msk.f32.mxu0 %vm3408_vm4, %v14266_v53  ;;  %v5732_v33 = vrot.slane %v12673_v11, 1 }
 0x34d   : > { %v8398_v5 = vpop.f32.mrf.mxu1  ;;  %8697 = vmatmul.mubr.msk.f32.gmra.mxu1 %vm3408_vm4, %v11937_v26  ;;  %v8457_v4 = vpop.f32.mrf.mxu0 }
 0x34e   : > { %v12655_v15 = vadd.f32 %v8448_v7, %v8398_v5  ;;  %8699 = vmatprep.mubr.msk.f32.mxu1 %vm3408_vm4, %v11956_v56  ;;  %v12671_v56 = vld [vmem:[#allocation3 + $0x198] sm:$0xff] }
 0x34f   : > { %v3892_v3 = vpop.f32.mrf.mxu1  ;;  %8756 = vmatmul.mubr.msk.f32.gmra.mxu0 %vm3408_vm4, %v14268_v20  ;;  %v4211_v29 = vpop.f32.mrf.mxu0 }
 0x350   : > { %v12661_v18 = vadd.f32 %v4181_v32, %v3892_v3  ;;  %8758 = vmatprep.mubr.msk.f32.mxu0 %vm3408_vm4, %v12082_v37  ;;  %v14275_v3 = vld [vmem:[#allocation86_spill] sm:$0xff] }
 0x351   : > { %v8401_v53 = vpop.f32.mrf.mxu1  ;;  %8700 = vmatmul.mubr.msk.f32.gmra.mxu1 %vm3408_vm4, %v11958_v21  ;;  %v8460_v26 = vpop.f32.mrf.mxu0 }
 0x352   : > { %v12667_v19 = vadd.f32 %v8451_v51, %v8401_v53  ;;  %8702 = vmatprep.mubr.msk.f32.mxu1 %vm3408_vm4, %v11982_v16  ;;  %v5731_v16 = vrot.slane %v12671_v56, 1 }
 0x353   : > { %v3902_v20 = vpop.f32.mrf.mxu1  ;;  %8759 = vmatmul.mubr.msk.f32.gmra.mxu0 %vm3408_vm4, %v12098_v49  ;;  %v4221_v63 = vpop.f32.mrf.mxu0  ;;  %v14272_v49 = vld [vmem:[#allocation52_spill] sm:$0xff] }
 0x354   : > { %v12677_v37 = vadd.f32 %v4191_v31, %v3902_v20  ;;  %8761 = vmatprep.mubr.msk.f32.mxu0 %vm3408_vm4, %v14270_v42  ;;  %v5733_v23 = vsel %vm468_vm2, %v5731_v16, %v5732_v33 }
 0x355   : > { %v8404_v21 = vpop.f32.mrf.mxu1  ;;  %8703 = vmatmul.mubr.msk.f32.gmra.mxu1 %vm3408_vm4, %v14271_v0  ;;  %v8463_v46 = vpop.f32.mrf.mxu0 }
 0x356   : > { %v12687_v7 = vadd.f32 %v8454_v36, %v8404_v21  ;;  %8705 = vmatprep.mubr.msk.f32.mxu1 %vm3408_vm4, %v14272_v49  ;;  %v14274_v36 = vld [vmem:[#allocation55_spill] sm:$0xff] }
 0x357   : > { %v3912_v35 = vpop.f32.mrf.mxu1  ;;  %8762 = vmatmul.mubr.msk.f32.gmra.mxu0 %vm3408_vm4, %v12114_v40  ;;  %v4231_v42 = vpop.f32.mrf.mxu0 }
 0x358   : > { %v12693_v32 = vadd.f32 %v4201_v43, %v3912_v35  ;;  %8764 = vmatprep.mubr.msk.f32.mxu0 %vm3408_vm4, %v12547_v62  ;;  %v5735_v43 = vsel %vm468_vm2, %v5732_v33, %v5734_v58 }
 0x359   : > { %v8407_v51 = vpop.f32.mrf.mxu1  ;;  %8706 = vmatmul.mubr.msk.f32.gmra.mxu1 %vm3408_vm4, %v14273_v57  ;;  %v8466_v31 = vpop.f32.mrf.mxu0 }
 0x35a   : > { %v12701_v44 = vadd.f32 %v8457_v4, %v8407_v51  ;;  %8708 = vmatprep.mubr.msk.f32.mxu1 %vm3408_vm4, %v14274_v36  ;;  %v4102_v36 = vadd.f32 %v12528_v50, %v12561_v22 }
 0x35b   : > { %v3922_v40 = vpop.f32.mrf.mxu1  ;;  %8765 = vmatmul.mubr.msk.f32.gmra.mxu0 %vm3408_vm4, %v12554_v9  ;;  %v4241_v27 = vpop.f32.mrf.mxu0 }
 0x35c   : > { %v12707_v62 = vadd.f32 %v4211_v29, %v3922_v40  ;;  %8767 = vmatprep.mubr.msk.f32.mxu0 %vm3408_vm4, %v5733_v23  ;;  %v14276_v40 = vld [vmem:[#allocation71_spill] sm:$0xff] }
 0x35d   : > { %v8410_v5 = vpop.f32.mrf.mxu1  ;;  %8709 = vmatmul.mubr.msk.f32.gmra.mxu1 %vm3408_vm4, %v14275_v3 }
 0x35e   : > { %v12713_v4 = vadd.f32 %v8460_v26, %v8410_v5  ;;  %8711 = vmatprep.mubr.msk.f32.mxu1 %vm3408_vm4, %v12070_v55 }
 0x35f   : > { %v3932_v53 = vpop.f32.mrf.mxu1  ;;  %v8469_v20 = vpop.f32.mrf.mxu0  ;;  %8768 = vmatmul.mubr.msk.f32.gmra.mxu0 %vm3408_vm4, %v5735_v43 }
 0x360   : > { %v12718_v9 = vadd.f32 %v4221_v63, %v3932_v53 }
 0x361   : > { %v8413_v29 = vpop.f32.mrf.mxu1  ;;  %8712 = vmatmul.mubr.msk.f32.gmra.mxu1 %vm3408_vm4, %v12072_v8  ;;  %v4251_v21 = vpop.f32.mrf.mxu0 }
 0x362   : > { %v12722_v0 = vadd.f32 %v8463_v46, %v8413_v29  ;;  %8714 = vmatprep.mubr.msk.f32.mxu1 %vm3408_vm4, %v12346_v41 }
 0x363   : > { %v3942_v26 = vpop.f32.mrf.mxu1  ;;  %v8524_v16 = vpop.f32.mrf.mxu0 }
 0x364   : > { %v12726_v33 = vadd.f32 %v4231_v42, %v3942_v26 }
 0x365   : > { %v8416_v55 = vpop.f32.mrf.mxu1  ;;  %8715 = vmatmul.mubr.msk.f32.gmra.mxu1 %vm3408_vm4, %v12363_v39  ;;  %v4737_v63 = vpop.f32.mrf.mxu0 }
 0x366   : > { %v12730_v49 = vadd.f32 %v8466_v31, %v8416_v55  ;;  %8717 = vmatprep.mubr.msk.f32.mxu1 %vm3408_vm4, %v12671_v56 }
 0x367   : > { %v3952_v8 = vpop.f32.mrf.mxu1  ;;  %v8527_v46 = vpop.f32.mrf.mxu0 }
 0x368   : > { %v12734_v35 = vadd.f32 %v4241_v27, %v3952_v8 }
 0x369   : > { %v8419_v58 = vpop.f32.mrf.mxu1  ;;  %8718 = vmatmul.mubr.msk.f32.gmra.mxu1 %vm3408_vm4, %v12673_v11  ;;  %v4747_v41 = vpop.f32.mrf.mxu0 }
 0x36a   : > { %v12738_v42 = vadd.f32 %v8469_v20, %v8419_v58  ;;  %8772 = vmatprep.mubr.msk.f32.mxu1 %vm3408_vm4, %v12167_v54 }
 0x36b   : > { %v3962_v39 = vpop.f32.mrf.mxu1  ;;  %v8530_v51 = vpop.f32.mrf.mxu0 }
 0x36c   : > { %v12742_v57 = vadd.f32 %v4251_v21, %v3962_v39  ;;  %v14278_v39 = vld [vmem:[#allocation75_spill] sm:$0xff] }
 0x36d   : > { %v8474_v31 = vpop.f32.mrf.mxu1  ;;  %8773 = vmatmul.mubr.msk.f32.vlgmr.msra.gmra.mxu1 %vm3408_vm4, %v12177_v60  ;;  %v4757_v23 = vpop.f32.mrf.mxu0 }
 0x36e   : > { %v4632_v27 = vadd.f32 %v8474_v31, %v14276_v40  ;;  %8775 = vmatprep.mubr.msk.f32.mxu1 %vm3408_vm4, %v12184_v47 }
 0x36f   : > { %v4472_v43 = vpop.f32.mrf.mxu1  ;;  %v8533_v5 = vpop.f32.mrf.mxu0 }
 0x370   : > { %v4631_v54 = vadd.f32 %v4472_v43, %v4102_v36  ;;  %v12751_v3 = vadd.f32 %v8524_v16, %v4632_v27  ;;  %v14280_v43 = vld [vmem:[#allocation82_spill] sm:$0xff] }
 0x371   : > { %v8477_v53 = vpop.f32.mrf.mxu1  ;;  %8776 = vmatmul.mubr.msk.f32.gmra.mxu1 %vm3408_vm4, %v12194_v59  ;;  %v4767_v20 = vpop.f32.mrf.mxu0 }
 0x372   : > { %v4634_v60 = vadd.f32 %v8477_v53, %v12570_v12  ;;  %8778 = vmatprep.mubr.msk.f32.mxu1 %vm3408_vm4, %v12201_v13  ;;  %v12758_v22 = vadd.f32 %v4737_v63, %v4631_v54 }
 0x373   : > { %v4482_v50 = vpop.f32.mrf.mxu1  ;;  %v8536_v29 = vpop.f32.mrf.mxu0 }
 0x374   : > { %v4633_v47 = vadd.f32 %v4482_v50, %v12574_v34  ;;  %v12761_v21 = vadd.f32 %v8527_v46, %v4634_v60  ;;  %v14277_v46 = vld [vmem:[#allocation79_spill] sm:$0xff] }
 0x375   : > { %v8480_v26 = vpop.f32.mrf.mxu1  ;;  %8779 = vmatmul.mubr.msk.f32.gmra.mxu1 %vm3408_vm4, %v12211_v30  ;;  %v4777_v16 = vpop.f32.mrf.mxu0 }
 0x376   : > { %v4636_v59 = vadd.f32 %v8480_v26, %v12580_v38  ;;  %8781 = vmatprep.mubr.msk.f32.mxu1 %vm3408_vm4, %v12218_v10  ;;  %v12768_v12 = vadd.f32 %v4747_v41, %v4633_v47  ;;  %v14282_v26 = vld [vmem:[#allocation80_spill] sm:$0xff] }
 0x377   : > { %v4492_v13 = vpop.f32.mrf.mxu1  ;;  %v8539_v55 = vpop.f32.mrf.mxu0 }
 0x378   : > { %v4635_v63 = vadd.f32 %v4492_v13, %v12587_v25  ;;  %v12771_v8 = vadd.f32 %v8530_v51, %v4636_v59  ;;  %v14279_v51 = vld [vmem:[#allocation77_spill] sm:$0xff] }
 0x379   : > { %v8483_v34 = vpop.f32.mrf.mxu1  ;;  %8782 = vmatmul.mubr.msk.f32.gmra.mxu1 %vm3408_vm4, %v14277_v46  ;;  %v4787_v58 = vpop.f32.mrf.mxu0 }
 0x37a   : > { %v4638_v30 = vadd.f32 %v8483_v34, %v12594_v1  ;;  %8784 = vmatprep.mubr.msk.f32.mxu1 %vm3408_vm4, %v14278_v39  ;;  %v12778_v38 = vadd.f32 %v4757_v23, %v4635_v63 }
 0x37b   : > { %v4502_v10 = vpop.f32.mrf.mxu1  ;;  %v8542_v41 = vpop.f32.mrf.mxu0 }
 0x37c   : > { %v4637_v31 = vadd.f32 %v4502_v10, %v12599_v24  ;;  %v12781_v36 = vadd.f32 %v8533_v5, %v4638_v30  ;;  %v14281_v5 = vld [vmem:[#allocation78_spill] sm:$0xff]  ;;  %v14284_v30 = vld [vmem:[#allocation85_spill] sm:$0xff] }
 0x37d   : > { %v8486_v25 = vpop.f32.mrf.mxu1  ;;  %8785 = vmatmul.mubr.msk.f32.gmra.mxu1 %vm3408_vm4, %v14279_v51  ;;  %v4797_v40 = vpop.f32.mrf.mxu0 }
 0x37e   : > { %v4640_v27 = vadd.f32 %v8486_v25, %v12607_v17  ;;  %8787 = vmatprep.mubr.msk.f32.mxu1 %vm3408_vm4, %v14280_v43  ;;  %v12788_v1 = vadd.f32 %v4767_v20, %v4637_v31 }
 0x37f   : > { %v4512_v23 = vpop.f32.mrf.mxu1  ;;  %v8545_v54 = vpop.f32.mrf.mxu0 }
 0x380   : > { %v4639_v53 = vadd.f32 %v4512_v23, %v12613_v48  ;;  %v12791_v60 = vadd.f32 %v8536_v29, %v4640_v27  ;;  %v14283_v29 = vld [vmem:[#allocation93_spill] sm:$0xff]  ;;  %v14286_v27 = vld [vmem:[#allocation83_spill] sm:$0xff] }
 0x381   : > { %v8489_v24 = vpop.f32.mrf.mxu1  ;;  %8788 = vmatmul.mubr.msk.f32.gmra.mxu1 %vm3408_vm4, %v14281_v5  ;;  %v4807_v50 = vpop.f32.mrf.mxu0 }
 0x382   : > { %v4642_v47 = vadd.f32 %v8489_v24, %v12619_v28  ;;  %8790 = vmatprep.mubr.msk.f32.mxu1 %vm3408_vm4, %v14282_v26  ;;  %v12798_v17 = vadd.f32 %v4777_v16, %v4639_v53 }
 0x383   : > { %v4522_v20 = vpop.f32.mrf.mxu1  ;;  %v8548_v59 = vpop.f32.mrf.mxu0 }
 0x384   : > { %v4641_v13 = vadd.f32 %v4522_v20, %v12625_v6  ;;  %v12801_v63 = vadd.f32 %v8539_v55, %v4642_v47  ;;  %v14285_v55 = vld [vmem:[#allocation81_spill] sm:$0xff]  ;;  %v14288_v47 = vld [vmem:[#allocation84_spill] sm:$0xff] }
 0x385   : > { %v8492_v48 = vpop.f32.mrf.mxu1  ;;  %8791 = vmatmul.mubr.msk.f32.gmra.mxu1 %vm3408_vm4, %v14283_v29  ;;  %v4817_v34 = vpop.f32.mrf.mxu0 }
 0x386   : > { %v4644_v46 = vadd.f32 %v8492_v48, %v12631_v61  ;;  %8793 = vmatprep.mubr.msk.f32.mxu1 %vm3408_vm4, %v14284_v30  ;;  %v12808_v28 = vadd.f32 %v4787_v58, %v4641_v13 }
 0x387   : > { %v4532_v16 = vpop.f32.mrf.mxu1  ;;  %v8551_v39 = vpop.f32.mrf.mxu0 }
 0x388   : > { %v4643_v10 = vadd.f32 %v4532_v16, %v12637_v45  ;;  %v12811_v31 = vadd.f32 %v8542_v41, %v4644_v46  ;;  %v14287_v41 = vld [vmem:[#allocation89_spill] sm:$0xff]  ;;  %v14290_v46 = vld [vmem:[#allocation92_spill] sm:$0xff] }
 0x389   : > { %v8495_v6 = vpop.f32.mrf.mxu1  ;;  %8794 = vmatmul.mubr.msk.f32.gmra.mxu1 %vm3408_vm4, %v14285_v55  ;;  %v4827_v25 = vpop.f32.mrf.mxu0 }
 0x38a   : > { %v4646_v51 = vadd.f32 %v8495_v6, %v12643_v2  ;;  %8796 = vmatprep.mubr.msk.f32.mxu1 %vm3408_vm4, %v14286_v27  ;;  %v12818_v61 = vadd.f32 %v4797_v40, %v4643_v10 }
 0x38b   : > { %v4542_v58 = vpop.f32.mrf.mxu1  ;;  %v8554_v43 = vpop.f32.mrf.mxu0 }
 0x38c   : > { %v4645_v23 = vadd.f32 %v4542_v58, %v12649_v14  ;;  %v12821_v53 = vadd.f32 %v8545_v54, %v4646_v51  ;;  %v14289_v54 = vld [vmem:[#allocation87_spill] sm:$0xff]  ;;  %v14292_v51 = vld [vmem:[#allocation105_spill] sm:$0xff] }
 0x38d   : > { %v8498_v45 = vpop.f32.mrf.mxu1  ;;  %8797 = vmatmul.mubr.msk.f32.gmra.mxu1 %vm3408_vm4, %v14287_v41  ;;  %v4837_v24 = vpop.f32.mrf.mxu0 }
 0x38e   : > { %v4648_v5 = vadd.f32 %v8498_v45, %v12655_v15  ;;  %8799 = vmatprep.mubr.msk.f32.mxu1 %vm3408_vm4, %v14288_v47  ;;  %v12828_v2 = vadd.f32 %v4807_v50, %v4645_v23 }
 0x38f   : > { %v4552_v40 = vpop.f32.mrf.mxu1  ;;  %v8557_v26 = vpop.f32.mrf.mxu0 }
 0x390   : > { %v4647_v20 = vadd.f32 %v4552_v40, %v12661_v18  ;;  %v12831_v13 = vadd.f32 %v8548_v59, %v4648_v5  ;;  %v14291_v59 = vld [vmem:[#allocation88_spill] sm:$0xff]  ;;  %v14294_v5 = vld [vmem:[#allocation90_spill] sm:$0xff] }
 0x391   : > { %v8501_v14 = vpop.f32.mrf.mxu1  ;;  %8800 = vmatmul.mubr.msk.f32.gmra.mxu1 %vm3408_vm4, %v14289_v54  ;;  %v4847_v48 = vpop.f32.mrf.mxu0 }
 0x392   : > { %v4650_v29 = vadd.f32 %v8501_v14, %v12667_v19  ;;  %8802 = vmatprep.mubr.msk.f32.mxu1 %vm3408_vm4, %v14290_v46  ;;  %v12838_v15 = vadd.f32 %v4817_v34, %v4647_v20 }
 0x393   : > { %v4562_v50 = vpop.f32.mrf.mxu1  ;;  %v8560_v30 = vpop.f32.mrf.mxu0 }
 0x394   : > { %v4649_v16 = vadd.f32 %v4562_v50, %v12677_v37  ;;  %v12841_v10 = vadd.f32 %v8551_v39, %v4650_v29  ;;  %v14293_v39 = vld [vmem:[#allocation102_spill] sm:$0xff]  ;;  %v14296_v29 = vld [vmem:[#allocation91_spill] sm:$0xff] }
 0x395   : > { %v8504_v18 = vpop.f32.mrf.mxu1  ;;  %8803 = vmatmul.mubr.msk.f32.gmra.mxu1 %vm3408_vm4, %v14291_v59  ;;  %v4857_v6 = vpop.f32.mrf.mxu0  ;;  %v14297_v59 = vld [vmem:[#allocation94_spill] sm:$0xff] }
 0x396   : > { %v4652_v55 = vadd.f32 %v8504_v18, %v12687_v7  ;;  %8805 = vmatprep.mubr.msk.f32.mxu1 %vm3408_vm4, %v14292_v51  ;;  %v12848_v19 = vadd.f32 %v4827_v25, %v4649_v16  ;;  %v14298_v51 = vld [vmem:[#allocation97_spill] sm:$0xff] }
 0x397   : > { %v4572_v34 = vpop.f32.mrf.mxu1  ;;  %v8563_v27 = vpop.f32.mrf.mxu0 }
 0x398   : > { %v4651_v58 = vadd.f32 %v4572_v34, %v12693_v32  ;;  %v12851_v23 = vadd.f32 %v8554_v43, %v4652_v55  ;;  %v14295_v43 = vld [vmem:[#allocation35_spill] sm:$0xff] }
 0x399   : > { %v8507_v37 = vpop.f32.mrf.mxu1  ;;  %8806 = vmatmul.mubr.msk.f32.gmra.mxu1 %vm3408_vm4, %v14293_v39  ;;  %v4867_v45 = vpop.f32.mrf.mxu0  ;;  %v14299_v39 = vld [vmem:[#allocation95_spill] sm:$0xff] }
 0x39a   : > { %v4654_v41 = vadd.f32 %v8507_v37, %v12701_v44  ;;  %8808 = vmatprep.mubr.msk.f32.mxu1 %vm3408_vm4, %v14294_v5  ;;  %v12858_v7 = vadd.f32 %v4837_v24, %v4651_v58  ;;  %v5999_v24 = vrot.slane %v12671_v56, 2  ;;  %v6002_v56 = vrot.slane %v12685_v52, 2 }
 0x39b   : > { %v4582_v25 = vpop.f32.mrf.mxu1  ;;  %v8566_v47 = vpop.f32.mrf.mxu0 }
 0x39c   : > { %v4653_v40 = vadd.f32 %v4582_v25, %v12707_v62  ;;  %v12861_v20 = vadd.f32 %v8557_v26, %v4654_v41  ;;  %v6000_v62 = vrot.slane %v12673_v11, 2 }
 0x39d   : > { %v8510_v32 = vpop.f32.mrf.mxu1  ;;  %8809 = vmatmul.mubr.msk.f32.gmra.mxu1 %vm3408_vm4, %v14295_v43  ;;  %v4877_v14 = vpop.f32.mrf.mxu0 }
 0x39e   : > { %v4656_v54 = vadd.f32 %v8510_v32, %v12713_v4  ;;  %8811 = vmatprep.mubr.msk.f32.mxu1 %vm3408_vm4, %v14296_v29  ;;  %v12868_v44 = vadd.f32 %v4847_v48, %v4653_v40  ;;  %v6001_v11 = vsel %vm1130_vm3, %v5999_v24, %v6000_v62  ;;  %v6003_v52 = vsel %vm1130_vm3, %v6000_v62, %v6002_v56 }
 0x39f   : > { %v4592_v46 = vpop.f32.mrf.mxu1  ;;  %v8569_v50 = vpop.f32.mrf.mxu0 }
 0x3a0   : > { %v4655_v26 = vadd.f32 %v4592_v46, %v12718_v9  ;;  %v12873_v16 = vadd.f32 %v8560_v30, %v4656_v54 }
 0x3a1   : > { %v8513_v18 = vpop.f32.mrf.mxu1  ;;  %8812 = vmatmul.mubr.msk.f32.gmra.mxu1 %vm3408_vm4, %v14297_v59  ;;  %v4887_v4 = vpop.f32.mrf.mxu0 }
 0x3a2   : > { %v4658_v55 = vadd.f32 %v8513_v18, %v12722_v0  ;;  %8814 = vmatprep.mubr.msk.f32.mxu1 %vm3408_vm4, %v14298_v51  ;;  %v12881_v48 = vadd.f32 %v4857_v6, %v4655_v26 }
 0x3a3   : > { %v4602_v34 = vpop.f32.mrf.mxu1  ;;  %v12884_v9 = vpop.f32.mrf.mxu0 }
 0x3a4   : > { %v4657_v30 = vadd.f32 %v4602_v34, %v12726_v33  ;;  %v12887_v58 = vadd.f32 %v8563_v27, %v4658_v55 }
 0x3a5   : > { %v8516_v37 = vpop.f32.mrf.mxu1  ;;  %8815 = vmatmul.mubr.msk.f32.gmra.mxu1 %vm3408_vm4, %v14299_v39  ;;  %v12891_v0 = vpop.f32.mrf.mxu0 }
 0x3a6   : > { %v4660_v41 = vadd.f32 %v8516_v37, %v12730_v49  ;;  %8817 = vmatprep.mubr.msk.f32.mxu1 %vm3408_vm4, %v6001_v11  ;;  %v12896_v6 = vadd.f32 %v4867_v45, %v4657_v30 }
 0x3a7   : > { %v4612_v5 = vpop.f32.mrf.mxu1  ;;  %v12898_v25 = vpop.f32.mrf.mxu0 }
 0x3a8   : > { %v4659_v33 = vadd.f32 %v4612_v5, %v12734_v35  ;;  %v12901_v27 = vadd.f32 %v8566_v47, %v4660_v41 }
 0x3a9   : > { %v8519_v40 = vpop.f32.mrf.mxu1  ;;  %8818 = vmatmul.mubr.msk.f32.gmra.mxu1 %vm3408_vm4, %v6003_v52  ;;  %v12904_v32 = vpop.f32.mrf.mxu0 }
 0x3aa   : > { %v4662_v49 = vadd.f32 %v8519_v40, %v12738_v42  ;;  %v12907_v43 = vadd.f32 %v4877_v14, %v4659_v33 }
 0x3ab   : > { %v4622_v54 = vpop.f32.mrf.mxu1  ;;  %v12909_v29 = vpop.f32.mrf.mxu0 }
 0x3ac   : > { %v4661_v45 = vadd.f32 %v4622_v54, %v12742_v57  ;;  %v12912_v24 = vadd.f32 %v8569_v50, %v4662_v49 }
 0x3ad   : > { %v8574_v46 = vpop.f32.mrf.mxu1  ;;  %v12914_v35 = vpop.f32.mrf.mxu0 }
 0x3ae   : > { %v12917_v47 = vadd.f32 %v8574_v46, %v12751_v3  ;;  %v12919_v62 = vadd.f32 %v4887_v4, %v4661_v45 }
 0x3af   : > { %v5006_v26 = vpop.f32.mrf.mxu1  ;;  %v12921_v18 = vpop.f32.mrf.mxu0 }
 0x3b0   : > { %v12924_v42 = vadd.f32 %v5006_v26, %v12758_v22 }
 0x3b1   : > { %v8577_v14 = vpop.f32.mrf.mxu1  ;;  %v12926_v59 = vpop.f32.mrf.mxu0 }
 0x3b2   : > { %v12929_v57 = vadd.f32 %v8577_v14, %v12761_v21 }
 0x3b3   : > { %v5016_v50 = vpop.f32.mrf.mxu1  ;;  %v12931_v55 = vpop.f32.mrf.mxu0 }
 0x3b4   : > { %v12934_v3 = vadd.f32 %v5016_v50, %v12768_v12 }
 0x3b5   : > { %v8580_v4 = vpop.f32.mrf.mxu1  ;;  %v12936_v51 = vpop.f32.mrf.mxu0 }
 0x3b6   : > { %v12939_v56 = vadd.f32 %v8580_v4, %v12771_v8 }
 0x3b7   : > { %v5026_v22 = vpop.f32.mrf.mxu1  ;;  %v12941_v34 = vpop.f32.mrf.mxu0 }
 0x3b8   : > { %v12944_v11 = vadd.f32 %v5026_v22, %v12778_v38 }
 0x3b9   : > { %v8583_v21 = vpop.f32.mrf.mxu1  ;;  %v12946_v30 = vpop.f32.mrf.mxu0 }
 0x3ba   : > { %v12949_v37 = vadd.f32 %v8583_v21, %v12781_v36 }
 0x3bb   : > { %v5036_v12 = vpop.f32.mrf.mxu1  ;;  %v12951_v39 = vpop.f32.mrf.mxu0 }
 0x3bc   : > { %v12954_v41 = vadd.f32 %v5036_v12, %v12788_v1 }
 0x3bd   : > { %v8586_v8 = vpop.f32.mrf.mxu1  ;;  %v12956_v52 = vpop.f32.mrf.mxu0 }
 0x3be   : > { %v12959_v5 = vadd.f32 %v8586_v8, %v12791_v60 }
 0x3bf   : > { %v5046_v38 = vpop.f32.mrf.mxu1  ;;  %v12961_v33 = vpop.f32.mrf.mxu0 }
 0x3c0   : > { %v12964_v40 = vadd.f32 %v5046_v38, %v12798_v17 }
 0x3c1   : > { %v8589_v36 = vpop.f32.mrf.mxu1  ;;  %v12966_v49 = vpop.f32.mrf.mxu0 }
 0x3c2   : > { %v12969_v54 = vadd.f32 %v8589_v36, %v12801_v63 }
 0x3c3   : > { %v5056_v1 = vpop.f32.mrf.mxu1  ;;  %v12971_v45 = vpop.f32.mrf.mxu0 }
 0x3c4   : > { %v12974_v46 = vadd.f32 %v5056_v1, %v12808_v28 }
 0x3c5   : > { %v8592_v60 = vpop.f32.mrf.mxu1  ;;  %v12976_v26 = vpop.f32.mrf.mxu0 }
 0x3c6   : > { %14300 = vst [vmem:[#allocation96_spill] sm:$0xff] %v12976_v26  ;;  %v12979_v14 = vadd.f32 %v8592_v60, %v12811_v31 }
 0x3c7   : > { %v5066_v17 = vpop.f32.mrf.mxu1  ;;  %v12981_v50 = vpop.f32.mrf.mxu0 }
 0x3c8   : > { %14301 = vst [vmem:[#allocation100_spill] sm:$0xff] %v12981_v50  ;;  %v12984_v4 = vadd.f32 %v5066_v17, %v12818_v61 }
 0x3c9   : > { %v8595_v63 = vpop.f32.mrf.mxu1  ;;  %v12986_v22 = vpop.f32.mrf.mxu0 }
 0x3ca   : > { %14302 = vst [vmem:[#allocation107_spill] sm:$0xff] %v12986_v22  ;;  %v12989_v21 = vadd.f32 %v8595_v63, %v12821_v53 }
 0x3cb   : > { %v5076_v28 = vpop.f32.mrf.mxu1  ;;  %v12991_v12 = vpop.f32.mrf.mxu0 }
 0x3cc   : > { %14303 = vst [vmem:[#allocation109_spill] sm:$0xff] %v12991_v12  ;;  %v12994_v8 = vadd.f32 %v5076_v28, %v12828_v2 }
 0x3cd   : > { %v8598_v31 = vpop.f32.mrf.mxu1  ;;  %v12996_v38 = vpop.f32.mrf.mxu0 }
 0x3ce   : > { %14304 = vst [vmem:[#allocation98_spill] sm:$0xff] %v12996_v38  ;;  %v12999_v36 = vadd.f32 %v8598_v31, %v12831_v13 }
 0x3cf   : > { %v5086_v61 = vpop.f32.mrf.mxu1  ;;  %v8657_v1 = vpop.f32.mrf.mxu0 }
 0x3d0   : > { %v13002_v60 = vadd.f32 %v5086_v61, %v12838_v15 }
 0x3d1   : > { %v8601_v17 = vpop.f32.mrf.mxu1  ;;  %v13004_v53 = vpop.f32.mrf.mxu0 }
 0x3d2   : > { %14305 = vst [vmem:[#allocation99_spill] sm:$0xff] %v13002_v60  ;;  %14306 = vst [vmem:[#allocation111_spill] sm:$0xff] %v13004_v53  ;;  %v13007_v63 = vadd.f32 %v8601_v17, %v12841_v10 }
 0x3d3   : > { %v5096_v12 = vpop.f32.mrf.mxu1  ;;  %v8660_v2 = vpop.f32.mrf.mxu0 }
 0x3d4   : > { %14307 = vst [vmem:[#allocation113_spill] sm:$0xff] %v13007_v63  ;;  %v13010_v28 = vadd.f32 %v5096_v12, %v12848_v19 }
 0x3d5   : > { %v8604_v38 = vpop.f32.mrf.mxu1  ;;  %v5394_v22 = vpop.f32.mrf.mxu0 }
 0x3d6   : > { %14308 = vst [vmem:[#allocation101_spill] sm:$0xff] %v13010_v28  ;;  %v13013_v13 = vadd.f32 %v8604_v38, %v12851_v23 }
 0x3d7   : > { %v5106_v31 = vpop.f32.mrf.mxu1  ;;  %v8663_v50 = vpop.f32.mrf.mxu0 }
 0x3d8   : > { %14309 = vst [vmem:[#allocation103_spill] sm:$0xff] %v13013_v13  ;;  %v13016_v15 = vadd.f32 %v5106_v31, %v12858_v7 }
 0x3d9   : > { %v8607_v61 = vpop.f32.mrf.mxu1  ;;  %v5404_v53 = vpop.f32.mrf.mxu0 }
 0x3da   : > { %14310 = vst [vmem:[#allocation115_spill] sm:$0xff] %v13016_v15  ;;  %v5188_v10 = vadd.f32 %v8607_v61, %v12861_v20 }
 0x3db   : > { %v5116_v17 = vpop.f32.mrf.mxu1  ;;  %v8666_v63 = vpop.f32.mrf.mxu0 }
 0x3dc   : > { %v13020_v26 = vadd.f32 %v5116_v17, %v12868_v44  ;;  %v13022_v19 = vadd.f32 %v8657_v1, %v5188_v10 }
 0x3dd   : > { %v8610_v12 = vpop.f32.mrf.mxu1  ;;  %v5414_v28 = vpop.f32.mrf.mxu0 }
 0x3de   : > { %14311 = vst [vmem:[#allocation116_spill] sm:$0xff] %v13020_v26  ;;  %v5190_v23 = vadd.f32 %v8610_v12, %v12873_v16 }
 0x3df   : > { %v5126_v38 = vpop.f32.mrf.mxu1  ;;  %v8669_v13 = vpop.f32.mrf.mxu0 }
 0x3e0   : > { %v5189_v7 = vadd.f32 %v5126_v38, %v12881_v48  ;;  %v13026_v31 = vadd.f32 %v8660_v2, %v5190_v23 }
 0x3e1   : > { %v8613_v15 = vpop.f32.mrf.mxu1  ;;  %v5424_v60 = vpop.f32.mrf.mxu0 }
 0x3e2   : > { %v5192_v20 = vadd.f32 %v8613_v15, %v12887_v58  ;;  %v13029_v61 = vadd.f32 %v5394_v22, %v5189_v7 }
 0x3e3   : > { %v5136_v44 = vpop.f32.mrf.mxu1  ;;  %v13031_v17 = vpop.f32.mrf.mxu0 }
 0x3e4   : > { %v5191_v1 = vadd.f32 %v5136_v44, %v12896_v6  ;;  %v13034_v10 = vadd.f32 %v8663_v50, %v5192_v20 }
 0x3e5   : > { %v8616_v16 = vpop.f32.mrf.mxu1  ;;  %v13036_v12 = vpop.f32.mrf.mxu0 }
 0x3e6   : > { %v5194_v48 = vadd.f32 %v8616_v16, %v12901_v27  ;;  %v5459_v2 = vadd.f32 %v5404_v53, %v5191_v1 }
 0x3e7   : > { %v5146_v23 = vpop.f32.mrf.mxu1  ;;  %v13039_v38 = vpop.f32.mrf.mxu0 }
 0x3e8   : > { %14312 = vst [vmem:[#allocation118_spill] sm:$0xff] %v13039_v38  ;;  %v5193_v58 = vadd.f32 %v5146_v23, %v12907_v43  ;;  %v5462_v22 = vadd.f32 %v8666_v63, %v5194_v48 }
 0x3e9   : > { %v8619_v15 = vpop.f32.mrf.mxu1  ;;  %v13042_v7 = vpop.f32.mrf.mxu0 }
 0x3ea   : > { %14313 = vst [vmem:[#allocation119_spill] sm:$0xff] %v13042_v7  ;;  %v5196_v26 = vadd.f32 %v8619_v15, %v12912_v24  ;;  %v13045_v6 = vadd.f32 %v5414_v28, %v5193_v58 }
 0x3eb   : > { %v5156_v50 = vpop.f32.mrf.mxu1  ;;  %v13047_v20 = vpop.f32.mrf.mxu0 }
 0x3ec   : > { %14314 = vst [vmem:[#allocation121_spill] sm:$0xff] %v13047_v20  ;;  %v5195_v44 = vadd.f32 %v5156_v50, %v12919_v62  ;;  %v13050_v27 = vadd.f32 %v8669_v13, %v5196_v26 }
 0x3ed   : > { %v8674_v53 = vpop.f32.mrf.mxu1  ;;  %v13052_v1 = vpop.f32.mrf.mxu0 }
 0x3ee   : > { %14315 = vst [vmem:[#allocation104_spill] sm:$0xff] %v13052_v1  ;;  %v13054_v16 = vadd.f32 %v5424_v60, %v5195_v44 }
 0x3ef   : > { %v13056_v43 = vpop.f32.mrf.mxu1  ;;  %v13058_v63 = vpop.f32.mrf.mxu0 }
 0x3f0   : > { %14316 = vst [vmem:[#allocation106_spill] sm:$0xff] %v13058_v63 }
 0x3f1   : > { %v13060_v48 = vpop.f32.mrf.mxu1  ;;  %v13062_v24 = vpop.f32.mrf.mxu0 }
 0x3f2   : > { %14317 = vst [vmem:[#allocation108_spill] sm:$0xff] %v13062_v24 }
 0x3f3   : > { %v13064_v28 = vpop.f32.mrf.mxu1  ;;  %v13068_v62 = vpop.f32.mrf.mxu0 }
 0x3f4   : > { %14318 = vst [vmem:[#allocation110_spill] sm:$0xff] %v13068_v62 }
 0x3f5   : > { %v13066_v23 = vpop.f32.mrf.mxu1  ;;  %v13074_v60 = vpop.f32.mrf.mxu0 }
 0x3f6   : > { %14319 = vst [vmem:[#allocation122_spill] sm:$0xff] %v13074_v60 }
 0x3f7   : > { %v13070_v26 = vpop.f32.mrf.mxu1  ;;  %v13080_v50 = vpop.f32.mrf.mxu0 }
 0x3f8   : > { %14321 = vst [vmem:[#allocation112_spill] sm:$0xff] %v13080_v50 }
 0x3f9   : > { %v13072_v13 = vpop.f32.mrf.mxu1  ;;  %v13086_v63 = vpop.f32.mrf.mxu0 }
 0x3fa   : > { %14324 = vst [vmem:[#allocation120_spill] sm:$0xff] %v13086_v63 }
 0x3fb   : > { %v13076_v58 = vpop.f32.mrf.mxu1  ;;  %v13092_v20 = vpop.f32.mrf.mxu0 }
 0x3fc   : > { %14327 = vst [vmem:[#allocation125_spill] sm:$0xff] %v13092_v20 }
 0x3fd   : > { %v13078_v15 = vpop.f32.mrf.mxu1  ;;  %v13098_v38 = vpop.f32.mrf.mxu0 }
 0x3fe   : > { %14320 = vst [vmem:[#allocation124_spill] sm:$0xff] %v13078_v15  ;;  %14330 = vst [vmem:[#allocation129_spill] sm:$0xff] %v13098_v38 }
 0x3ff   : > { %v13082_v44 = vpop.f32.mrf.mxu1 }
 0x400   : > { %14322 = vst [vmem:[#allocation114_spill] sm:$0xff] %v13082_v44  ;;  %v13104_v44 = vpop.f32.mrf.mxu0 }
 0x401   : > { %v13084_v24 = vpop.f32.mrf.mxu1  ;;  %14333 = vst [vmem:[#allocation132_spill] sm:$0xff] %v13104_v44 }
 0x402   : > { %14323 = vst [vmem:[#allocation117_spill] sm:$0xff] %v13084_v24 }
 0x403   : > { %v13088_v1 = vpop.f32.mrf.mxu1 }
 0x404   : > { %14325 = vst [vmem:[#allocation123_spill] sm:$0xff] %v13088_v1  ;;  %v13110_v1 = vpop.f32.mrf.mxu0 }
 0x405   : > { %v13090_v62 = vpop.f32.mrf.mxu1  ;;  %14336 = vst [vmem:[#allocation51_spill] sm:$0xff] %v13110_v1 }
 0x406   : > { %14326 = vst [vmem:[#allocation126_spill] sm:$0xff] %v13090_v62 }
 0x407   : > { %v13094_v7 = vpop.f32.mrf.mxu1 }
 0x408   : > { %14328 = vst [vmem:[#allocation127_spill] sm:$0xff] %v13094_v7  ;;  %v13116_v7 = vpop.f32.mrf.mxu0 }
 0x409   : > { %v13096_v60 = vpop.f32.mrf.mxu1  ;;  %14339 = vst [vmem:[#allocation54_spill] sm:$0xff] %v13116_v7 }
 0x40a   : > { %14329 = vst [vmem:[#allocation128_spill] sm:$0xff] %v13096_v60 }
 0x40b   : > { %v13100_v15 = vpop.f32.mrf.mxu1 }
 0x40c   : > { %14331 = vst [vmem:[#allocation130_spill] sm:$0xff] %v13100_v15  ;;  %v13120_v15 = vpop.f32.mrf.mxu0 }
 0x40d   : > { %v13102_v50 = vpop.f32.mrf.mxu1  ;;  %14341 = vst [vmem:[#allocation56_spill] sm:$0xff] %v13120_v15 }
 0x40e   : > { %14332 = vst [vmem:[#allocation131_spill] sm:$0xff] %v13102_v50 }
 0x40f   : > { %v13106_v24 = vpop.f32.mrf.mxu1 }
 0x410   : > { %14334 = vst [vmem:[#allocation47_spill] sm:$0xff] %v13106_v24 }
 0x411   : > { %v13108_v63 = vpop.f32.mrf.mxu1 }
 0x412   : > { %14335 = vst [vmem:[#allocation50_spill] sm:$0xff] %v13108_v63  ;;  %v13127_v63 = vpop.f32.mrf.mxu0 }
 0x413   : > { %v13112_v62 = vpop.f32.mrf.mxu1  ;;  %14344 = vst [vmem:[#allocation60_spill] sm:$0xff] %v13127_v63  ;;  %v5434_v63 = vadd.f32 %v12884_v9, %v12917_v47  ;;  %v5437_v9 = vadd.f32 %v12914_v35, %v12944_v11  ;;  %v5440_v47 = vadd.f32 %v12921_v18, %v12949_v37  ;;  %v5443_v18 = vadd.f32 %v12946_v30, %v12974_v46  ;;  %v14345_v37 = vld [vmem:[#allocation99_spill] sm:$0xff]  ;;  %v14349_v46 = vld [vmem:[#allocation101_spill] sm:$0xff] }
 0x414   : > { %14337 = vst [vmem:[#allocation36_spill] sm:$0xff] %v13112_v62 }
 0x415   : > { %v13114_v20 = vpop.f32.mrf.mxu1 }
 0x416   : > { %14338 = vst [vmem:[#allocation53_spill] sm:$0xff] %v13114_v20 }
 0x417   : > { %v13118_v60 = vpop.f32.mrf.mxu1 }
 0x418   : > { %14340 = vst [vmem:[#allocation43_spill] sm:$0xff] %v13118_v60  ;;  %v13135_v60 = vpop.f32.mrf.mxu0 }
 0x419   : > { %v8707_v38 = vpop.f32.mrf.mxu1 }
 0x41a   : > { %v13123_v50 = vadd.f32 %v8707_v38, %v13022_v19 }
 0x41b   : > { %v13125_v44 = vpop.f32.mrf.mxu1 }
 0x41c   : > { %14342 = vst [vmem:[#allocation57_spill] sm:$0xff] %v13123_v50  ;;  %14343 = vst [vmem:[#allocation59_spill] sm:$0xff] %v13125_v44  ;;  %v13144_v44 = vpop.f32.mrf.mxu0 }
 0x41d   : > { %v8710_v24 = vpop.f32.mrf.mxu1 }
 0x41e   : > { %v13130_v1 = vadd.f32 %v8710_v24, %v13026_v31  ;;  %v5436_v24 = vadd.f32 %v12898_v25, %v12929_v57  ;;  %v5442_v25 = vadd.f32 %v12931_v55, %v12959_v5  ;;  %v5446_v57 = vadd.f32 %v12951_v39, %v12979_v14  ;;  %v14346_v39 = vld [vmem:[#allocation96_spill] sm:$0xff]  ;;  %v14350_v14 = vld [vmem:[#allocation107_spill] sm:$0xff] }
 0x41f   : > { %v5659_v62 = vpop.f32.mrf.mxu1  ;;  %v5445_v55 = vadd.f32 %v12956_v52, %v12984_v4  ;;  %v13208_v4 = vadd.f32 %v14350_v14, %v14349_v46  ;;  %v14363_v46 = vld [vmem:[#allocation104_spill] sm:$0xff] }
 0x420   : > { %v13133_v20 = vadd.f32 %v5659_v62, %v13029_v61  ;;  %v5433_v61 = vadd.f32 %v12891_v0, %v12924_v42  ;;  %v5699_v62 = vadd.f32 %v8674_v53, %v5434_v63  ;;  %v5439_v0 = vadd.f32 %v12926_v59, %v12954_v41 }
 0x421   : > { %v8713_v7 = vpop.f32.mrf.mxu1  ;;  %v5701_v30 = vadd.f32 %v13060_v48, %v5436_v24  ;;  %v13194_v41 = vadd.f32 %v14346_v39, %v14345_v37  ;;  %v5705_v63 = vadd.f32 %v13072_v13, %v5440_v47  ;;  %v14356_v24 = vld [vmem:[#allocation116_spill] sm:$0xff]  ;;  %v14359_v13 = vld [vmem:[#allocation114_spill] sm:$0xff] }
 0x422   : > { %v13138_v15 = vadd.f32 %v8713_v7, %v13034_v10  ;;  %v5435_v10 = vadd.f32 %v12904_v32, %v12934_v3  ;;  %v5441_v32 = vadd.f32 %v12936_v51, %v12964_v40  ;;  %v5698_v35 = vadd.f32 %v13056_v43, %v5433_v61  ;;  %v13176_v3 = vpop.f32.mrf.mxu0 }
 0x423   : > { %v5669_v19 = vpop.f32.mrf.mxu1  ;;  %v5448_v51 = vadd.f32 %v12961_v33, %v12989_v21  ;;  %v5968_v52 = vadd.f32 %v13031_v17, %v5699_v62  ;;  %v14351_v17 = vld [vmem:[#allocation103_spill] sm:$0xff]  ;;  %v5704_v48 = vadd.f32 %v13076_v58, %v5439_v0  ;;  %v14360_v58 = vld [vmem:[#allocation117_spill] sm:$0xff] }
 0x424   : > { %v13140_v38 = vadd.f32 %v5669_v19, %v5459_v2  ;;  %v5438_v2 = vadd.f32 %v12909_v29, %v12939_v56  ;;  %v5444_v29 = vadd.f32 %v12941_v34, %v12969_v54  ;;  %v5447_v56 = vadd.f32 %v12966_v49, %v12994_v8  ;;  %v14347_v49 = vld [vmem:[#allocation113_spill] sm:$0xff]  ;;  %v14348_v54 = vld [vmem:[#allocation100_spill] sm:$0xff]  ;;  %v13213_v8 = vld [vmem:[%s13671_s4] ss:$0 sm:$0xff]  ;;  %v13220_v53 = vpop.f32.mrf.mxu0 }
 0x425   : > { %v8716_v50 = vpop.f32.mrf.mxu1  ;;  %v13189_v34 = vadd.f32 %v12971_v45, %v12999_v36  ;;  %v5700_v33 = vadd.f32 %v13064_v28, %v5435_v10  ;;  %v13204_v45 = vadd.f32 %v14348_v54, %v14347_v49  ;;  %v5702_v36 = vadd.f32 %v13070_v26, %v5437_v9  ;;  %v14353_v28 = vld [vmem:[#allocation124_spill] sm:$0xff]  ;;  %v14355_v19 = vld [vmem:[#allocation98_spill] sm:$0xff]  ;;  %v14357_v10 = vld [vmem:[#allocation111_spill] sm:$0xff] }
 0x426   : > { %v13146_v31 = vadd.f32 %v8716_v50, %v5462_v22  ;;  %v5703_v40 = vadd.f32 %v13066_v23, %v5438_v2  ;;  %v5967_v43 = vadd.f32 %v13036_v12, %v5698_v35  ;;  %v5707_v23 = vadd.f32 %v14353_v28, %v5442_v25  ;;  %v14354_v50 = vld [vmem:[#allocation115_spill] sm:$0xff]  ;;  %v14358_v12 = vld [vmem:[#allocation118_spill] sm:$0xff]  ;;  %v13242_v39 = vpop.f32.mrf.mxu0 }
 0x427   : > { %v5679_v7 = vpop.f32.mrf.mxu1  ;;  %v13228_v61 = vadd.f32 %v14355_v19, %v14354_v50  ;;  %v13232_v2 = vadd.f32 %v14357_v10, %v14356_v24  ;;  %v5970_v9 = vadd.f32 %v14358_v12, %v5701_v30  ;;  %v5706_v47 = vadd.f32 %v14359_v13, %v5441_v32  ;;  %v14364_v30 = vld [vmem:[#allocation123_spill] sm:$0xff] }
 0x428   : > { %v13161_v22 = vadd.f32 %v5679_v7, %v13045_v6  ;;  %v14352_v6 = vld [vmem:[#allocation109_spill] sm:$0xff]  ;;  %v5709_v0 = vadd.f32 %v14360_v58, %v5444_v29  ;;  %v5971_v14 = vadd.f32 %v14363_v46, %v5702_v36  ;;  %v14369_v10 = vld [vmem:[#allocation127_spill] sm:$0xff]  ;;  %v13261_v13 = vpop.f32.mrf.mxu0 }
 0x429   : > { %v8719_v42 = vpop.f32.mrf.mxu1  ;;  %v5710_v36 = vadd.f32 %v14369_v10, %v5445_v55 }
 0x42a   : > { %v13179_v59 = vadd.f32 %v8719_v42, %v13050_v27  ;;  %v13218_v27 = vadd.f32 %v14352_v6, %v14351_v17  ;;  %v14361_v42 = vld [vmem:[#allocation119_spill] sm:$0xff]  ;;  %v14365_v17 = vld [vmem:[#allocation106_spill] sm:$0xff]  ;;  %v14366_v6 = vld [vmem:[#allocation108_spill] sm:$0xff] }
 0x42b   : > { %v5689_v11 = vpop.f32.mrf.mxu1  ;;  %v5969_v35 = vadd.f32 %v14361_v42, %v5700_v33  ;;  %v5974_v29 = vadd.f32 %v14365_v17, %v5705_v63  ;;  %v14367_v33 = vld [vmem:[#allocation110_spill] sm:$0xff] }
 0x42c   : > { %v13197_v5 = vadd.f32 %v5689_v11, %v13054_v16  ;;  %v14362_v11 = vld [vmem:[#allocation121_spill] sm:$0xff] }
 0x42d   : > { %v8774_v21 = vpop.f32.mrf.mxu1  ;;  %v5972_v37 = vadd.f32 %v14362_v11, %v5703_v40 }
 0x42e   : > { %v6236_v16 = vadd.f32 %v8774_v21, %v5968_v52  ;;  %v5708_v21 = vadd.f32 %v14364_v30, %v5443_v18  ;;  %v14370_v18 = vld [vmem:[#allocation122_spill] sm:$0xff]  ;;  %v14375_v30 = vld [vmem:[#allocation131_spill] sm:$0xff] }
 0x42f   : > { %v6076_v26 = vpop.f32.mrf.mxu1  ;;  %v5975_v12 = vadd.f32 %v14370_v18, %v5706_v47  ;;  %v14380_v18 = vld [vmem:[#allocation51_spill] sm:$0xff] }
 0x430   : > { %v13235_v7 = vadd.f32 %v13213_v8, %v6236_v16  ;;  %v6235_v62 = vadd.f32 %v6076_v26, %v5967_v43  ;;  %v5973_v16 = vadd.f32 %v14366_v6, %v5704_v48  ;;  %v5976_v43 = vadd.f32 %v14367_v33, %v5707_v23  ;;  %v14368_v26 = vld [vmem:[#allocation126_spill] sm:$0xff] }
 0x431   : > { %v8777_v25 = vpop.f32.mrf.mxu1  ;;  %v5711_v24 = vadd.f32 %v14368_v26, %v5446_v57 }
 0x432   : > { %v6307_v52 = vsub.f32 0.0, %v13235_v7  ;;  %v13246_v49 = vadd.f32 %v13213_v8, %v6235_v62  ;;  %v6238_v54 = vadd.f32 %v8777_v25, %v5970_v9  ;;  %v14371_v9 = vld [vmem:[#allocation112_spill] sm:$0xff] }
 0x433   : > { %v6086_v32 = vpop.f32.mrf.mxu1  ;;  %v5978_v63 = vadd.f32 %v14371_v9, %v5709_v0  ;;  %v14372_v25 = vld [vmem:[#allocation128_spill] sm:$0xff] }
 0x434   : > { %v6340_v40 = vmul.f32 1.442695, %v6307_v52  ;;  %v6306_v28 = vsub.f32 0.0, %v13246_v49  ;;  %v13255_v50 = vadd.f32 %v13213_v8, %v6238_v54  ;;  %v6237_v19 = vadd.f32 %v6086_v32, %v5969_v35  ;;  %v14373_v35 = vld [vmem:[#allocation130_spill] sm:$0xff]  ;;  %v14374_v52 = vld [vmem:[#allocation120_spill] sm:$0xff] }
 0x435   : > { %v8780_v62 = vpop.f32.mrf.mxu1  ;;  %v5713_v42 = vadd.f32 %v14372_v25, %v5448_v51  ;;  %v5712_v57 = vadd.f32 %v14373_v35, %v5447_v56  ;;  %v13270_v54 = vadd.f32 %v14374_v52, %v5708_v21  ;;  %v5715_v32 = vadd.f32 %v14375_v30, %v13189_v34  ;;  %v14376_v51 = vld [vmem:[#allocation125_spill] sm:$0xff]  ;;  %v13284_v21 = vpop.f32.mrf.mxu0  ;;  %v14378_v34 = vld [vmem:[#allocation47_spill] sm:$0xff] }
 0x436   : > { %8999 = vpow2.f32 %v6340_v40  ;;  %v6338_v48 = vmul.f32 1.442695, %v6306_v28  ;;  %v6309_v23 = vsub.f32 0.0, %v13255_v50  ;;  %v13265_v58 = vadd.f32 %v13213_v8, %v6237_v19  ;;  %v14377_v56 = vld [vmem:[#allocation129_spill] sm:$0xff] }
 0x437   : > { %v6240_v11 = vadd.f32 %v8780_v62, %v5972_v37  ;;  %v6096_v55 = vpop.f32.mrf.mxu1  ;;  %v13279_v33 = vadd.f32 %v14376_v51, %v5711_v24  ;;  %v13282_v37 = vadd.f32 %v14377_v56, %v5710_v36  ;;  %v5714_v19 = vadd.f32 %v14378_v34, %v13194_v41  ;;  %v14379_v62 = vld [vmem:[#allocation132_spill] sm:$0xff] }
 0x438   : > { %9001 = vpow2.f32 %v6338_v48  ;;  %v6344_v47 = vmul.f32 1.442695, %v6309_v23  ;;  %v6308_v0 = vsub.f32 0.0, %v13265_v58  ;;  %v6239_v46 = vadd.f32 %v6096_v55, %v5971_v14  ;;  %v14382_v41 = vld [vmem:[#allocation36_spill] sm:$0xff] }
 0x439   : > { %v13276_v17 = vadd.f32 %v13213_v8, %v6240_v11  ;;  %v8783_v6 = vpop.f32.mrf.mxu1  ;;  %v13293_v24 = vadd.f32 %v14379_v62, %v5713_v42  ;;  %v13296_v36 = vadd.f32 %v14380_v18, %v5712_v57  ;;  %v5716_v35 = vadd.f32 %v14382_v41, %v13208_v4  ;;  %v14383_v42 = vld [vmem:[#allocation54_spill] sm:$0xff]  ;;  %v8763_v57 = vpop.f32.mrf.mxu0  ;;  %v14386_v56 = vld [vmem:[#allocation56_spill] sm:$0xff] }
 0x43a   : > { %9003 = vpow2.f32 %v6344_v47  ;;  %v6342_v40 = vmul.f32 1.442695, %v6308_v0  ;;  %v13287_v28 = vadd.f32 %v13213_v8, %v6239_v46  ;;  %v6242_v14 = vadd.f32 %v8783_v6, %v5974_v29  ;;  %v14381_v29 = vld [vmem:[#allocation50_spill] sm:$0xff]  ;;  %v14388_v62 = vld [vmem:[#allocation60_spill] sm:$0xff] }
 0x43b   : > { %v6311_v26 = vsub.f32 0.0, %v13276_v17  ;;  %v6106_v10 = vpop.f32.mrf.mxu1  ;;  %v5717_v25 = vadd.f32 %v14381_v29, %v13204_v45  ;;  %v13307_v52 = vadd.f32 %v14383_v42, %v5715_v32  ;;  %v14385_v45 = vld [vmem:[#allocation43_spill] sm:$0xff] }
 0x43c   : > { %9005 = vpow2.f32 %v6342_v40  ;;  %v6310_v9 = vsub.f32 0.0, %v13287_v28  ;;  %v13300_v48 = vadd.f32 %v13213_v8, %v6242_v14  ;;  %v6241_v23 = vadd.f32 %v6106_v10, %v5973_v16  ;;  %v14384_v16 = vld [vmem:[#allocation53_spill] sm:$0xff] }
 0x43d   : > { %v6348_v11 = vmul.f32 1.442695, %v6311_v26  ;;  %v8786_v55 = vpop.f32.mrf.mxu1  ;;  %v5719_v6 = vadd.f32 %v14384_v16, %v13218_v27  ;;  %v5718_v51 = vadd.f32 %v14385_v45, %v13228_v61  ;;  %v13318_v40 = vadd.f32 %v14386_v56, %v5714_v19  ;;  %v5938_v19 = vpop.f32.mrf.mxu0 }
 0x43e   : > { %v6346_v47 = vmul.f32 1.442695, %v6310_v9  ;;  %v6313_v0 = vsub.f32 0.0, %v13300_v48  ;;  %v13311_v46 = vadd.f32 %v13213_v8, %v6241_v23  ;;  %v6244_v30 = vadd.f32 %v8786_v55, %v5976_v43  ;;  %v14387_v43 = vld [vmem:[#allocation59_spill] sm:$0xff] }
 0x43f   : > { %9007 = vpow2.f32 %v6348_v11  ;;  %v6116_v4 = vpop.f32.mrf.mxu1  ;;  %v5720_v26 = vadd.f32 %v14387_v43, %v13232_v2  ;;  %v13327_v18 = vadd.f32 %v14388_v62, %v5717_v25  ;;  %v13330_v61 = vadd.f32 %v13135_v60, %v5716_v35  ;;  %v14389_v25 = vld [vmem:[#allocation57_spill] sm:$0xff] }
 0x440   : > { %9009 = vpow2.f32 %v6346_v47  ;;  %v6352_v32 = vmul.f32 1.442695, %v6313_v0  ;;  %v6312_v14 = vsub.f32 0.0, %v13311_v46  ;;  %v13322_v34 = vadd.f32 %v13213_v8, %v6244_v30 }
 0x441   : > { %v6243_v10 = vadd.f32 %v6116_v4, %v5975_v12  ;;  %v8789_v27 = vpop.f32.mrf.mxu1  ;;  %v13337_v2 = vadd.f32 %v13144_v44, %v5719_v6  ;;  %v13340_v12 = vadd.f32 %v13176_v3, %v5718_v51  ;;  %v13344_v60 = vadd.f32 %v13220_v53, %v14389_v25  ;;  %v8766_v53 = vpop.f32.mrf.mxu0 }
 0x442   : > { %9011 = vpow2.f32 %v6352_v32  ;;  %v6350_v9 = vmul.f32 1.442695, %v6312_v14  ;;  %v6315_v23 = vsub.f32 0.0, %v13322_v34  ;;  %v6246_v29 = vadd.f32 %v8789_v27, %v5978_v63 }
 0x443   : > { %v9000_v41 = vpop.eup %8999  ;;  %v13334_v11 = vadd.f32 %v13213_v8, %v6243_v10  ;;  %v6126_v55 = vpop.f32.mrf.mxu1  ;;  %v13352_v16 = vadd.f32 %v13242_v39, %v5720_v26  ;;  %v13356_v3 = vadd.f32 %v13261_v13, %v13130_v1  ;;  %v13365_v39 = vadd.f32 %v13284_v21, %v13133_v20 }
 0x444   : > { %v6403_v35 = vadd.f32 1.0, %v9000_v41  ;;  %9013 = vpow2.f32 %v6350_v9  ;;  %v6356_v42 = vmul.f32 1.442695, %v6315_v23  ;;  %v13347_v63 = vadd.f32 %v13213_v8, %v6246_v29  ;;  %v5948_v62 = vpop.f32.mrf.mxu0 }
 0x445   : > { %v9002_v47 = vpop.eup %9001  ;;  %v6314_v0 = vsub.f32 0.0, %v13334_v11  ;;  %v6245_v30 = vadd.f32 %v6126_v55, %v13270_v54  ;;  %v8792_v44 = vpop.f32.mrf.mxu1  ;;  %v13373_v27 = vadd.f32 %v8763_v57, %v13138_v15  ;;  %v13381_v55 = vadd.f32 %v5938_v19, %v13140_v38 }
 0x446   : > { %9015 = vrcp.f32 %v6403_v35  ;;  %v6402_v6 = vadd.f32 1.0, %v9002_v47  ;;  %v6317_v45 = vsub.f32 0.0, %v13347_v63  ;;  %v6248_v51 = vadd.f32 %v8792_v44, %v13279_v33  ;;  %v8769_v25 = vpop.f32.mrf.mxu0 }
 0x447   : > { %v9004_v4 = vpop.eup %9003  ;;  %9017 = vpow2.f32 %v6356_v42  ;;  %v6354_v56 = vmul.f32 1.442695, %v6314_v0  ;;  %v13361_v54 = vadd.f32 %v13213_v8, %v6245_v30  ;;  %v6136_v32 = vpop.f32.mrf.mxu1  ;;  %v13389_v30 = vadd.f32 %v8766_v53, %v13146_v31 }
 0x448   : > { %9019 = vrcp.f32 %v6402_v6  ;;  %v6405_v1 = vadd.f32 1.0, %v9004_v4  ;;  %v6360_v13 = vmul.f32 1.442695, %v6317_v45  ;;  %v13368_v14 = vadd.f32 %v13213_v8, %v6248_v51 }
 0x449   : > { %v9006_v43 = vpop.eup %9005  ;;  %9021 = vpow2.f32 %v6354_v56  ;;  %v6316_v33 = vsub.f32 0.0, %v13361_v54  ;;  %v6247_v26 = vadd.f32 %v6136_v32, %v13282_v37  ;;  %v8795_v10 = vpop.f32.mrf.mxu1  ;;  %v13397_v4 = vadd.f32 %v5948_v62, %v13161_v22 }
 0x44a   : > { %9023 = vrcp.f32 %v6405_v1  ;;  %v6404_v20 = vadd.f32 1.0, %v9006_v43  ;;  %v6319_v21 = vsub.f32 0.0, %v13368_v14  ;;  %v6250_v9 = vadd.f32 %v8795_v10, %v13293_v24  ;;  %v5958_v56 = vpop.f32.mrf.mxu0 }
 0x44b   : > { %9025 = vpow2.f32 %v6360_v13  ;;  %v6358_v23 = vmul.f32 1.442695, %v6316_v33  ;;  %v13378_v29 = vadd.f32 %v13213_v8, %v6247_v26  ;;  %v6146_v41 = vpop.f32.mrf.mxu1  ;;  %v13401_v13 = vadd.f32 %v8769_v25, %v13179_v59 }
 0x44c   : > { %v9008_v37 = vpop.eup %9007  ;;  %9027 = vrcp.f32 %v6404_v20  ;;  %v6364_v15 = vmul.f32 1.442695, %v6319_v21  ;;  %v13384_v57 = vadd.f32 %v13213_v8, %v6250_v9  ;;  %v6249_v35 = vadd.f32 %v6146_v41, %v13296_v36 }
 0x44d   : > { %v9010_v42 = vpop.eup %9009  ;;  %v6407_v24 = vadd.f32 1.0, %v9008_v37  ;;  %9029 = vpow2.f32 %v6358_v23  ;;  %v6318_v47 = vsub.f32 0.0, %v13378_v29  ;;  %v8798_v0 = vpop.f32.mrf.mxu1  ;;  %v13409_v20 = vadd.f32 %v5958_v56, %v13197_v5 }
 0x44e   : > { %v6406_v38 = vadd.f32 1.0, %v9010_v42  ;;  %9031 = vpow2.f32 %v6364_v15  ;;  %v6321_v19 = vsub.f32 0.0, %v13384_v57  ;;  %v13393_v44 = vadd.f32 %v13213_v8, %v6249_v35 }
 0x44f   : > { %v9012_v6 = vpop.eup %9011  ;;  %9033 = vrcp.f32 %v6407_v24  ;;  %v6362_v45 = vmul.f32 1.442695, %v6318_v47  ;;  %v6252_v36 = vadd.f32 %v8798_v0, %v13307_v52  ;;  %v6156_v51 = vpop.f32.mrf.mxu1  ;;  %v14390_v24 = vld [vmem:[#allocation11_spill] sm:$0xff] }
 0x450   : > { %9035 = vrcp.f32 %v6406_v38  ;;  %v6409_v31 = vadd.f32 1.0, %v9012_v6  ;;  %v6368_v53 = vmul.f32 1.442695, %v6321_v19  ;;  %v6320_v32 = vsub.f32 0.0, %v13393_v44 }
 0x451   : > { %v9014_v1 = vpop.eup %9013  ;;  %9037 = vpow2.f32 %v6362_v45  ;;  %v13404_v43 = vadd.f32 %v13213_v8, %v6252_v36  ;;  %v6251_v52 = vadd.f32 %v6156_v51, %v13318_v40  ;;  %v8801_v33 = vpop.f32.mrf.mxu1 }
 0x452   : > { %9039 = vrcp.f32 %v6409_v31  ;;  %v6408_v22 = vadd.f32 1.0, %v9014_v1  ;;  %v6366_v26 = vmul.f32 1.442695, %v6320_v32  ;;  %v6254_v10 = vadd.f32 %v8801_v33, %v13327_v18 }
 0x453   : > { %v9016_v62 = vpop.eup %9015  ;;  %9041 = vpow2.f32 %v6368_v53  ;;  %v6323_v59 = vsub.f32 0.0, %v13404_v43  ;;  %v13413_v21 = vadd.f32 %v13213_v8, %v6251_v52  ;;  %v6166_v9 = vpop.f32.mrf.mxu1 }
 0x454   : > { %v9018_v23 = vpop.eup %9017  ;;  %v6499_v40 = vmul.f32 %v9016_v62, %v13235_v7  ;;  %9043 = vrcp.f32 %v6408_v22  ;;  %v13417_v41 = vadd.f32 %v13213_v8, %v6254_v10  ;;  %v6253_v18 = vadd.f32 %v6166_v9, %v13330_v61 }
 0x455   : > { %v9020_v37 = vpop.eup %9019  ;;  %v6411_v25 = vadd.f32 1.0, %v9018_v23  ;;  %9045 = vpow2.f32 %v6366_v26  ;;  %v6372_v5 = vmul.f32 1.442695, %v6323_v59  ;;  %v6322_v15 = vsub.f32 0.0, %v13413_v21  ;;  %v8804_v35 = vpop.f32.mrf.mxu1  ;;  %v14392_v26 = vld [vmem:[#allocation13_spill] sm:$0xff] }
 0x456   : > { %v9022_v42 = vpop.eup %9021  ;;  %v6531_v47 = vadd.f32 %v6499_v40, %v14390_v24  ;;  %v6498_v0 = vmul.f32 %v9020_v37, %v13246_v49  ;;  %v6325_v7 = vsub.f32 0.0, %v13417_v41  ;;  %v13425_v38 = vadd.f32 %v13213_v8, %v6253_v18  ;;  %v14391_v49 = vld [vmem:[#allocation10_spill] sm:$0xff] }
 0x457   : > { %v9024_v19 = vpop.eup %9023  ;;  %9047 = vrcp.f32 %v6411_v25  ;;  %v6410_v61 = vadd.f32 1.0, %v9022_v42  ;;  %v6370_v6 = vmul.f32 1.442695, %v6322_v15  ;;  %v6256_v45 = vadd.f32 %v8804_v35, %v13337_v2  ;;  %v6176_v36 = vpop.f32.mrf.mxu1  ;;  %v14393_v25 = vld [vmem:[#allocation12_spill] sm:$0xff] }
 0x458   : > { %v9026_v51 = vpop.eup %9025  ;;  %6563 = vst.msk [vmem:[%s13430_s28 + $0x8] sm:$0xff] %vm275_vm0, %v6531_v47  ;;  %v6530_v56 = vadd.f32 %v6498_v0, %v14391_v49  ;;  %v6501_v31 = vmul.f32 %v9024_v19, %v13255_v50  ;;  %9049 = vpow2.f32 %v6372_v5  ;;  %v6376_v53 = vmul.f32 1.442695, %v6325_v7 }
 0x459   : > { %v9028_v32 = vpop.eup %9027  ;;  %9051 = vrcp.f32 %v6410_v61  ;;  %v6413_v1 = vadd.f32 1.0, %v9026_v51  ;;  %v6324_v2 = vsub.f32 0.0, %v13425_v38  ;;  %v13438_v52 = vadd.f32 %v13213_v8, %v6256_v45  ;;  %v8807_v33 = vpop.f32.mrf.mxu1  ;;  %v14394_v45 = vld [vmem:[#allocation15_spill] sm:$0xff] }
 0x45a   : > { %v9030_v22 = vpop.eup %9029  ;;  %6562 = vst.msk [vmem:[%s13430_s28] sm:$0xff] %vm275_vm0, %v6530_v56  ;;  %v6533_v10 = vadd.f32 %v6501_v31, %v14392_v26  ;;  %v6500_v62 = vmul.f32 %v9028_v32, %v13265_v58  ;;  %9053 = vpow2.f32 %v6370_v6  ;;  %v6255_v50 = vadd.f32 %v6176_v36, %v13340_v12  ;;  %v14395_v56 = vld [vmem:[#allocation14_spill] sm:$0xff]  ;;  %v14396_v26 = vld [vmem:[#allocation17_spill] sm:$0xff] }
 0x45b   : > { %v9032_v59 = vpop.eup %9031  ;;  %9055 = vrcp.f32 %v6413_v1  ;;  %v6412_v9 = vadd.f32 1.0, %v9030_v22  ;;  %v6374_v23 = vmul.f32 1.442695, %v6324_v2  ;;  %v6327_v40 = vsub.f32 0.0, %v13438_v52  ;;  %v6186_v18 = vpop.f32.mrf.mxu1 }
 0x45c   : > { %v9034_v37 = vpop.eup %9033  ;;  %6565 = vst.msk [vmem:[%s13430_s28 + $0x18] sm:$0xff] %vm275_vm0, %v6533_v10  ;;  %v6532_v5 = vadd.f32 %v6500_v62, %v14393_v25  ;;  %v6415_v15 = vadd.f32 1.0, %v9032_v59  ;;  %9057 = vpow2.f32 %v6376_v53  ;;  %v13450_v58 = vadd.f32 %v13213_v8, %v6255_v50 }
 0x45d   : > { %v9036_v35 = vpop.eup %9035  ;;  %v6503_v12 = vmul.f32 %v9034_v37, %v13276_v17  ;;  %9059 = vrcp.f32 %v6412_v9  ;;  %v6380_v42 = vmul.f32 1.442695, %v6327_v40  ;;  %v6258_v24 = vadd.f32 %v8807_v33, %v13344_v60  ;;  %v8810_v47 = vpop.f32.mrf.mxu1 }
 0x45e   : > { %v9038_v0 = vpop.eup %9037  ;;  %6564 = vst.msk [vmem:[%s13430_s28 + $0x10] sm:$0xff] %vm275_vm0, %v6532_v5  ;;  %v6502_v7 = vmul.f32 %v9036_v35, %v13287_v28  ;;  %9061 = vrcp.f32 %v6415_v15  ;;  %v6326_v19 = vsub.f32 0.0, %v13450_v58  ;;  %v6257_v61 = vadd.f32 %v6186_v18, %v13352_v16  ;;  %v14397_v18 = vld [vmem:[#allocation16_spill] sm:$0xff] }
 0x45f   : > { %v9040_v6 = vpop.eup %9039  ;;  %v6535_v36 = vadd.f32 %v6503_v12, %v14394_v45  ;;  %v6414_v17 = vadd.f32 1.0, %v9038_v0  ;;  %9063 = vpow2.f32 %v6374_v23  ;;  %v13461_v60 = vadd.f32 %v13213_v8, %v6258_v24  ;;  %v6196_v51 = vpop.f32.mrf.mxu1 }
 0x460   : > { %v9042_v49 = vpop.eup %9041  ;;  %v6534_v31 = vadd.f32 %v6502_v7, %v14395_v56  ;;  %v6505_v28 = vmul.f32 %v9040_v6, %v13300_v48  ;;  %9065 = vpow2.f32 %v6380_v42  ;;  %v6378_v53 = vmul.f32 1.442695, %v6326_v19  ;;  %v14398_v7 = vld [vmem:[#allocation19_spill] sm:$0xff] }
 0x461   : > { %v9044_v32 = vpop.eup %9043  ;;  %6567 = vst.msk [vmem:[%s13430_s28 + $0x28] sm:$0xff] %vm275_vm0, %v6535_v36  ;;  %9067 = vrcp.f32 %v6414_v17  ;;  %v6417_v16 = vadd.f32 1.0, %v9042_v49  ;;  %v6329_v1 = vsub.f32 0.0, %v13461_v60  ;;  %v13469_v2 = vadd.f32 %v13213_v8, %v6257_v61  ;;  %v8813_v33 = vpop.f32.mrf.mxu1  ;;  %v14399_v49 = vld [vmem:[#allocation18_spill] sm:$0xff] }
 0x462   : > { %v9046_v22 = vpop.eup %9045  ;;  %6566 = vst.msk [vmem:[%s13430_s28 + $0x20] sm:$0xff] %vm275_vm0, %v6534_v31  ;;  %v6537_v10 = vadd.f32 %v6505_v28, %v14396_v26  ;;  %v6504_v48 = vmul.f32 %v9044_v32, %v13311_v46  ;;  %9069 = vpow2.f32 %v6378_v53  ;;  %v6260_v62 = vadd.f32 %v8810_v47, %v13356_v3  ;;  %v14400_v26 = vld [vmem:[#allocation21_spill] sm:$0xff] }
 0x463   : > { %9071 = vrcp.f32 %v6417_v16  ;;  %v6416_v50 = vadd.f32 1.0, %v9046_v22  ;;  %v6384_v59 = vmul.f32 1.442695, %v6329_v1  ;;  %v6328_v9 = vsub.f32 0.0, %v13469_v2  ;;  %v6206_v23 = vpop.f32.mrf.mxu1 }
 0x464   : > { %v9048_v40 = vpop.eup %9047  ;;  %6569 = vst.msk [vmem:[%s13430_s28 + $0x38] sm:$0xff] %vm275_vm0, %v6537_v10  ;;  %v6536_v37 = vadd.f32 %v6504_v48, %v14397_v18  ;;  %v13481_v25 = vadd.f32 %v13213_v8, %v6260_v62  ;;  %v6259_v46 = vadd.f32 %v6196_v51, %v13365_v39  ;;  %v6262_v5 = vadd.f32 %v8813_v33, %v13373_v27 }
 0x465   : > { %v9050_v3 = vpop.eup %9049  ;;  %v6507_v15 = vmul.f32 %v9048_v40, %v13322_v34  ;;  %9073 = vrcp.f32 %v6416_v50  ;;  %v6382_v35 = vmul.f32 1.442695, %v6328_v9  ;;  %v6261_v12 = vadd.f32 %v6206_v23, %v13381_v55  ;;  %v8816_v42 = vpop.f32.mrf.mxu1  ;;  %v14401_v23 = vld [vmem:[#allocation20_spill] sm:$0xff] }
 0x466   : > { %v9052_v24 = vpop.eup %9051  ;;  %6568 = vst.msk [vmem:[%s13430_s28 + $0x30] sm:$0xff] %vm275_vm0, %v6536_v37  ;;  %v6419_v47 = vadd.f32 1.0, %v9050_v3  ;;  %9075 = vpow2.f32 %v6384_v59  ;;  %v6331_v0 = vsub.f32 0.0, %v13481_v25  ;;  %v13491_v39 = vadd.f32 %v13213_v8, %v6259_v46 }
 0x467   : > { %v9054_v27 = vpop.eup %9053  ;;  %v6539_v19 = vadd.f32 %v6507_v15, %v14398_v7  ;;  %v6506_v34 = vmul.f32 %v9052_v24, %v13334_v11  ;;  %9077 = vpow2.f32 %v6382_v35  ;;  %v13496_v55 = vadd.f32 %v13213_v8, %v6262_v5  ;;  %v6216_v61 = vpop.f32.mrf.mxu1  ;;  %v14403_v7 = vld [vmem:[#allocation22_spill] sm:$0xff] }
 0x468   : > { %v9056_v6 = vpop.eup %9055  ;;  %9079 = vrcp.f32 %v6419_v47  ;;  %v6418_v45 = vadd.f32 1.0, %v9054_v27  ;;  %v6388_v36 = vmul.f32 1.442695, %v6331_v0  ;;  %v6330_v17 = vsub.f32 0.0, %v13491_v39 }
 0x469   : > { %v9058_v51 = vpop.eup %9057  ;;  %6571 = vst.msk [vmem:[%s13430_s28 + $0x48] sm:$0xff] %vm275_vm0, %v6539_v19  ;;  %v6538_v56 = vadd.f32 %v6506_v34, %v14399_v49  ;;  %v6509_v31 = vmul.f32 %v9056_v6, %v13347_v63  ;;  %v6333_v11 = vsub.f32 0.0, %v13496_v55  ;;  %v13505_v28 = vadd.f32 %v13213_v8, %v6261_v12  ;;  %v8819_v53 = vpop.f32.mrf.mxu1 }
 0x46a   : > { %v9060_v32 = vpop.eup %9059  ;;  %9081 = vrcp.f32 %v6418_v45  ;;  %v6421_v16 = vadd.f32 1.0, %v9058_v51  ;;  %v6386_v1 = vmul.f32 1.442695, %v6330_v17  ;;  %v6264_v33 = vadd.f32 %v8816_v42, %v13389_v30 }
 0x46b   : > { %v9062_v22 = vpop.eup %9061  ;;  %6570 = vst.msk [vmem:[%s13430_s28 + $0x40] sm:$0xff] %vm275_vm0, %v6538_v56  ;;  %v6541_v10 = vadd.f32 %v6509_v31, %v14400_v26  ;;  %v6508_v63 = vmul.f32 %v9060_v32, %v13361_v54  ;;  %9083 = vpow2.f32 %v6388_v36  ;;  %v6392_v48 = vmul.f32 1.442695, %v6333_v11  ;;  %v6226_v37 = vpop.f32.mrf.mxu1 }
 0x46c   : > { %v9064_v62 = vpop.eup %9063  ;;  %v6511_v50 = vmul.f32 %v9062_v22, %v13368_v14  ;;  %9085 = vrcp.f32 %v6421_v16  ;;  %v6332_v59 = vsub.f32 0.0, %v13505_v28  ;;  %v13515_v9 = vadd.f32 %v13213_v8, %v6264_v33  ;;  %v14402_v14 = vld [vmem:[#allocation23_spill] sm:$0xff] }
 0x46d   : > { %v9066_v30 = vpop.eup %9065  ;;  %6573 = vst.msk [vmem:[%s13430_s28 + $0x58] sm:$0xff] %vm275_vm0, %v6541_v10  ;;  %v6540_v40 = vadd.f32 %v6508_v63, %v14401_v23  ;;  %v6420_v18 = vadd.f32 1.0, %v9064_v62  ;;  %9087 = vpow2.f32 %v6386_v1  ;;  %v6263_v54 = vadd.f32 %v6216_v61, %v13397_v4  ;;  %v14406_v10 = vld [vmem:[#allocation27_spill] sm:$0xff] }
 0x46e   : > { %v9068_v46 = vpop.eup %9067  ;;  %v6543_v5 = vadd.f32 %v6511_v50, %v14402_v14  ;;  %v6423_v3 = vadd.f32 1.0, %v9066_v30  ;;  %9089 = vpow2.f32 %v6392_v48  ;;  %v6390_v15 = vmul.f32 1.442695, %v6332_v59 }
 0x46f   : > { %v9070_v35 = vpop.eup %9069  ;;  %6572 = vst.msk [vmem:[%s13430_s28 + $0x50] sm:$0xff] %vm275_vm0, %v6540_v40  ;;  %v6510_v12 = vmul.f32 %v9068_v46, %v13378_v29  ;;  %9091 = vrcp.f32 %v6420_v18  ;;  %v6335_v42 = vsub.f32 0.0, %v13515_v9  ;;  %v13527_v24 = vadd.f32 %v13213_v8, %v6263_v54 }
 0x470   : > { %v9072_v47 = vpop.eup %9071  ;;  %6575 = vst.msk [vmem:[%s13430_s28 + $0x68] sm:$0xff] %vm275_vm0, %v6543_v5  ;;  %9093 = vrcp.f32 %v6423_v3  ;;  %v6422_v4 = vadd.f32 1.0, %v9070_v35  ;;  %v6266_v0 = vadd.f32 %v8819_v53, %v13401_v13  ;;  %v6265_v27 = vadd.f32 %v6226_v37, %v13409_v20  ;;  %v14404_v20 = vld [vmem:[#allocation25_spill] sm:$0xff]  ;;  %v14409_v35 = vld [vmem:[#allocation28_spill] sm:$0xff] }
 0x471   : > { %v6542_v19 = vadd.f32 %v6510_v12, %v14403_v7  ;;  %v6513_v29 = vmul.f32 %v9072_v47, %v13384_v57  ;;  %9095 = vpow2.f32 %v6390_v15  ;;  %v6396_v34 = vmul.f32 1.442695, %v6335_v42  ;;  %v14411_v7 = vld [vmem:[#allocation30_spill] sm:$0xff] }
 0x472   : > { %v9074_v61 = vpop.eup %9073  ;;  %9097 = vrcp.f32 %v6422_v4  ;;  %v6334_v6 = vsub.f32 0.0, %v13527_v24  ;;  %v13537_v45 = vadd.f32 %v13213_v8, %v6266_v0  ;;  %v13540_v36 = vadd.f32 %v13213_v8, %v6265_v27  ;;  %v14405_v8 = vld [vmem:[#allocation24_spill] sm:$0xff]  ;;  %v14410_v4 = vld [vmem:[#allocation31_spill] sm:$0xff] }
 0x473   : > { %v9076_v13 = vpop.eup %9075  ;;  %6574 = vst.msk [vmem:[%s13430_s28 + $0x60] sm:$0xff] %vm275_vm0, %v6542_v19  ;;  %v6545_v17 = vadd.f32 %v6513_v29, %v14404_v20  ;;  %v6512_v57 = vmul.f32 %v9074_v61, %v13393_v44  ;;  %9099 = vpow2.f32 %v6396_v34 }
 0x474   : > { %v9078_v51 = vpop.eup %9077  ;;  %v6425_v49 = vadd.f32 1.0, %v9076_v13  ;;  %v6394_v56 = vmul.f32 1.442695, %v6334_v6  ;;  %v6337_v31 = vsub.f32 0.0, %v13537_v45  ;;  %v6336_v11 = vsub.f32 0.0, %v13540_v36  ;;  %v14412_v13 = vld [vmem:[#allocation38_spill] sm:$0xff] }
 0x475   : > { %v9080_v53 = vpop.eup %9079  ;;  %6577 = vst.msk [vmem:[%s13430_s28 + $0x78] sm:$0xff] %vm275_vm0, %v6545_v17  ;;  %v6544_v32 = vadd.f32 %v6512_v57, %v14405_v8  ;;  %v6424_v16 = vadd.f32 1.0, %v9078_v51  ;;  %v14413_v51 = vld [vmem:[#allocation32_spill] sm:$0xff] }
 0x476   : > { %v6515_v1 = vmul.f32 %v9080_v53, %v13404_v43  ;;  %9101 = vrcp.f32 %v6425_v49  ;;  %v6400_v44 = vmul.f32 1.442695, %v6337_v31  ;;  %v6398_v33 = vmul.f32 1.442695, %v6336_v11  ;;  %v14407_v43 = vld [vmem:[#allocation26_spill] sm:$0xff]  ;;  %v14414_v8 = vld [vmem:[#allocation40_spill] sm:$0xff] }
 0x477   : > { %v9082_v22 = vpop.eup %9081  ;;  %6576 = vst.msk [vmem:[%s13430_s28 + $0x70] sm:$0xff] %vm275_vm0, %v6544_v32  ;;  %9103 = vrcp.f32 %v6424_v16 }
 0x478   : > { %v9084_v26 = vpop.eup %9083  ;;  %v6547_v63 = vadd.f32 %v6515_v1, %v14406_v10  ;;  %v6514_v48 = vmul.f32 %v9082_v22, %v13413_v21  ;;  %9105 = vpow2.f32 %v6394_v56  ;;  %v14408_v21 = vld [vmem:[#allocation29_spill] sm:$0xff] }
 0x479   : > { %v9086_v62 = vpop.eup %9085  ;;  %v6427_v50 = vadd.f32 1.0, %v9084_v26  ;;  %9107 = vpow2.f32 %v6400_v44  ;;  %v14415_v44 = vld [vmem:[#allocation39_spill] sm:$0xff] }
 0x47a   : > { %v9088_v59 = vpop.eup %9087  ;;  %6579 = vst.msk [vmem:[%s13430_s28 + $0x88] sm:$0xff] %vm275_vm0, %v6547_v63  ;;  %v6546_v30 = vadd.f32 %v6514_v48, %v14407_v43  ;;  %v6517_v23 = vmul.f32 %v9086_v62, %v13417_v41  ;;  %9109 = vpow2.f32 %v6398_v33  ;;  %v14417_v48 = vld [vmem:[#allocation41_spill] sm:$0xff]  ;;  %v14418_v62 = vld [vmem:[#allocation46_spill] sm:$0xff] }
 0x47b   : > { %v9090_v40 = vpop.eup %9089  ;;  %9111 = vrcp.f32 %v6427_v50  ;;  %v6426_v18 = vadd.f32 1.0, %v9088_v59 }
 0x47c   : > { %v9092_v54 = vpop.eup %9091  ;;  %6578 = vst.msk [vmem:[%s13430_s28 + $0x80] sm:$0xff] %vm275_vm0, %v6546_v30  ;;  %v6549_v37 = vadd.f32 %v6517_v23, %v14408_v21  ;;  %v6429_v46 = vadd.f32 1.0, %v9090_v40  ;;  %v14419_v23 = vld [vmem:[#allocation45_spill] sm:$0xff] }
 0x47d   : > { %v9094_v14 = vpop.eup %9093  ;;  %v6516_v5 = vmul.f32 %v9092_v54, %v13425_v38  ;;  %9113 = vrcp.f32 %v6426_v18  ;;  %v14420_v54 = vld [vmem:[#allocation49_spill] sm:$0xff] }
 0x47e   : > { %v9096_v3 = vpop.eup %9095  ;;  %6581 = vst.msk [vmem:[%s13430_s28 + $0x98] sm:$0xff] %vm275_vm0, %v6549_v37  ;;  %v6519_v41 = vmul.f32 %v9094_v14, %v13438_v52  ;;  %9115 = vrcp.f32 %v6429_v46 }
 0x47f   : > { %v9098_v15 = vpop.eup %9097  ;;  %v6548_v12 = vadd.f32 %v6516_v5, %v14409_v35  ;;  %v6428_v42 = vadd.f32 1.0, %v9096_v3 }
 0x480   : > { %v9100_v47 = vpop.eup %9099  ;;  %v6551_v0 = vadd.f32 %v6519_v41, %v14410_v4  ;;  %v6518_v27 = vmul.f32 %v9098_v15, %v13450_v58 }
 0x481   : > { %6580 = vst.msk [vmem:[%s13430_s28 + $0x90] sm:$0xff] %vm275_vm0, %v6548_v12  ;;  %9117 = vrcp.f32 %v6428_v42  ;;  %v6431_v38 = vadd.f32 1.0, %v9100_v47 }
 0x482   : > { %6583 = vst.msk [vmem:[%s13430_s28 + $0xa8] sm:$0xff] %vm275_vm0, %v6551_v0  ;;  %v6550_v52 = vadd.f32 %v6518_v27, %v14411_v7 }
 0x483   : > { %v9102_v19 = vpop.eup %9101  ;;  %9119 = vrcp.f32 %v6431_v38 }
 0x484   : > { %v9104_v29 = vpop.eup %9103  ;;  %6582 = vst.msk [vmem:[%s13430_s28 + $0xa0] sm:$0xff] %vm275_vm0, %v6550_v52  ;;  %v6521_v34 = vmul.f32 %v9102_v19, %v13461_v60 }
 0x485   : > { %v9106_v61 = vpop.eup %9105  ;;  %v6520_v58 = vmul.f32 %v9104_v29, %v13469_v2 }
 0x486   : > { %v9108_v6 = vpop.eup %9107  ;;  %v6553_v20 = vadd.f32 %v6521_v34, %v14412_v13  ;;  %v6430_v17 = vadd.f32 1.0, %v9106_v61 }
 0x487   : > { %v9110_v57 = vpop.eup %9109  ;;  %v6552_v49 = vadd.f32 %v6520_v58, %v14413_v51  ;;  %v6433_v56 = vadd.f32 1.0, %v9108_v6 }
 0x488   : > { %v9112_v31 = vpop.eup %9111  ;;  %6585 = vst.msk [vmem:[%s13430_s28 + $0xb8] sm:$0xff] %vm275_vm0, %v6553_v20  ;;  %9121 = vrcp.f32 %v6430_v17  ;;  %v6432_v11 = vadd.f32 1.0, %v9110_v57 }
 0x489   : > { %6584 = vst.msk [vmem:[%s13430_s28 + $0xb0] sm:$0xff] %vm275_vm0, %v6552_v49  ;;  %v6523_v60 = vmul.f32 %v9112_v31, %v13481_v25  ;;  %9123 = vrcp.f32 %v6433_v56  ;;  %v14416_v25 = vld [vmem:[#allocation42_spill] sm:$0xff] }
 0x48a   : > { %v9114_v2 = vpop.eup %9113  ;;  %9125 = vrcp.f32 %v6432_v11 }
 0x48b   : > { %v9116_v53 = vpop.eup %9115  ;;  %v6555_v32 = vadd.f32 %v6523_v60, %v14414_v8  ;;  %v6522_v16 = vmul.f32 %v9114_v2, %v13491_v39 }
 0x48c   : > { %v6525_v1 = vmul.f32 %v9116_v53, %v13496_v55 }
 0x48d   : > { %6587 = vst.msk [vmem:[%s13430_s28 + $0xc8] sm:$0xff] %vm275_vm0, %v6555_v32  ;;  %v6554_v33 = vadd.f32 %v6522_v16, %v14415_v44 }
 0x48e   : > { %v9118_v22 = vpop.eup %9117  ;;  %v6557_v26 = vadd.f32 %v6525_v1, %v14416_v25 }
 0x48f   : > { %6586 = vst.msk [vmem:[%s13430_s28 + $0xc0] sm:$0xff] %vm275_vm0, %v6554_v33  ;;  %v6524_v10 = vmul.f32 %v9118_v22, %v13505_v28 }
 0x490   : > { %v9120_v63 = vpop.eup %9119  ;;  %6589 = vst.msk [vmem:[%s13430_s28 + $0xd8] sm:$0xff] %vm275_vm0, %v6557_v26 }
 0x491   : > { %v6556_v39 = vadd.f32 %v6524_v10, %v14417_v48  ;;  %v6527_v55 = vmul.f32 %v9120_v63, %v13515_v9 }
 0x493   : > { %6588 = vst.msk [vmem:[%s13430_s28 + $0xd0] sm:$0xff] %vm275_vm0, %v6556_v39  ;;  %v6559_v50 = vadd.f32 %v6527_v55, %v14418_v62 }
 0x495   : > { %v9122_v59 = vpop.eup %9121  ;;  %6591 = vst.msk [vmem:[%s13430_s28 + $0xe8] sm:$0xff] %vm275_vm0, %v6559_v50 }
 0x496   : > { %v9124_v43 = vpop.eup %9123  ;;  %v6526_v28 = vmul.f32 %v9122_v59, %v13527_v24  ;;  %v14421_v24 = vld [vmem:[#allocation48_spill] sm:$0xff] }
 0x497   : > { %v9126_v30 = vpop.eup %9125  ;;  %v6529_v9 = vmul.f32 %v9124_v43, %v13537_v45 }
 0x498   : > { %v6558_v40 = vadd.f32 %v6526_v28, %v14419_v23  ;;  %v6528_v18 = vmul.f32 %v9126_v30, %v13540_v36 }
 0x499   : > { %v6561_v21 = vadd.f32 %v6529_v9, %v14420_v54 }
 0x49a   : > { %6590 = vst.msk [vmem:[%s13430_s28 + $0xe0] sm:$0xff] %vm275_vm0, %v6558_v40  ;;  %v6560_v45 = vadd.f32 %v6528_v18, %v14421_v24 }
 0x49b   : > { %6593 = vst.msk [vmem:[%s13430_s28 + $0xf8] sm:$0xff] %vm275_vm0, %v6561_v21 }
 0x49c   : > { %6592 = vst.msk [vmem:[%s13430_s28 + $0xf0] sm:$0xff] %vm275_vm0, %v6560_v45 }
 0x49d   : > { %9180 = shalt.err (!%p9177_p10)
}
 0x49e   : > { %s9181_s29 = scalar_lea.hbm %s13615_s10, 4096  ;;  %s9185_s15 = scalar_lea.hbm %s13672_s5, 8192 }
 0x49f   : > { %p9182_p0 = scmp.ne.s32.totalorder %s13615_s10, %s9181_s29  ;;  %p9186_p1 = scmp.lt.s32.totalorder %s13615_s10, %s13672_s5 }
 0x4a0   : > { %p9187_p3 = scmp.lt.s32.totalorder %s9185_s15, %s9181_s29 }
 0x4a1   : > { %p9183_p2 = pnand %p9182_p0, %p14422_p12 }
 0x4a2   : > { %p9188_p6 = por %p9187_p3, %p9186_p1 }
 0x4a3   : > { %p9184_p9 = pneg %p9183_p2 }
 0x4a5   : > { %p9189_p11 = pnand %p9188_p6, %p9184_p9 }
 0x4a7   : > { %9192 = shalt.err (!%p9189_p11)
}
 0x4a8   : > { %s9238_s25 = smov 128   ;;  %s9239_s7 = smov 8  }
 0x4a9   : > { %8822 = dma.vmem_to_hbm [thread:$0]  (%p14422_p12), %s13617_s8, 4096, %s13615_s10, %s6595_s22, %s9238_s25, %s9238_s25, %s9239_s7  }
 0x4aa PF: > { %s6623_s9 = sand.u32 1, %s9219_s18   ;;  %p14423_p13 = scmp.ne.s32.totalorder %s13858_s6, 0 }
 0x4ab   : > { %p14424_p4 = scmp.ge.s32.totalorder %s9231_s21, 2  ;;  %s6624_s11 = scalar_lea.sflag [#allocation6], %s6623_s9 }
 0x4ad   : > { %p8829_p5 = pnand %p14424_p4, %p14423_p13 }
 0x4af   : > { %p8830_p7 = pneg %p8829_p5 }
 0x4b1   : > { %9214 = dma.done.wait (%p8830_p7), %s6624_s11, 4096  }
 0x4b2   : > { %9216 = vsyncadd (%p8830_p7), %s6624_s11, 4294963200  ;;  %p18_p8 = scmp.ge.s32.totalorder %s9295_s24, 4   ;;  %s14425_s18 = smov %s9223_s19 }
 0x4b3   : > { %s14426_s19 = smov %s9227_s20  ;;  %s14427_s20 = smov %s9307_s27 }
 0x4b4   : > { %s14428_s21 = smov %s9295_s24  ;;  %20 = sbr.rel (!%p18_p8) target bundleno = 5 (0x5), region = 103 }
 0x4b9   :  { %6629 = vsyncpa [#allocation5], 1 }
 0x4ba   :  { %6631 = vsyncpa [#allocation5 + $0x1], 1 }
 0x4bb   :  { %6632 = vsyncpa [#allocation6], 1 }
 0x4bc   :  { %6634 = vsyncpa [#allocation6 + $0x1], 1 }

</bundles_post_ra>
